<compile_context>
chip_gen: v6e
topology: v6e:2x2x1
jax: 0.10.0
libtpu: 0.0.40
codegen_flags: <defaults>
</compile_context>

<pallas_src>
import numpy as np

import jax
import jax.numpy as jnp
from jax.experimental import pallas as pl
from jax.experimental.pallas import tpu as pltpu


# ----------------------------------------------------------------------------
# One-time parameter re-layout (PyTorch layout -> kernel operands).
# Activation layout inside the kernel:  rows = features, lanes = b*32 + w.
# ----------------------------------------------------------------------------
def pack_params(params, dtype=jnp.bfloat16):
    w1 = np.asarray(params["conv1_w"], np.float32)   # (6, 3, 5, 5)
    b1 = np.asarray(params["conv1_b"], np.float32)
    w2 = np.asarray(params["conv2_w"], np.float32)   # (16, 6, 5, 5)
    b2 = np.asarray(params["conv2_b"], np.float32)
    fw1 = np.asarray(params["fc1_w"], np.float32)    # (120, 400)
    fb1 = np.asarray(params["fc1_b"], np.float32)
    fw2 = np.asarray(params["fc2_w"], np.float32)    # (84, 120)
    fb2 = np.asarray(params["fc2_b"], np.float32)
    fw3 = np.asarray(params["fc3_w"], np.float32)    # (10, 84)
    fb3 = np.asarray(params["fc3_b"], np.float32)

    # conv1 "banded" weights, one matrix per kernel column j:
    #   a1[j][co*28 + oh, c*32 + oh + i] = w1[co, c, i, j]
    # so  (a1[j] @ X_shifted_by_j)[co*28+oh, b*32+ow] = conv1[b, co, oh, ow] tap-j sum.
    a1 = np.zeros((5, 168, 96), np.float32)
    oh = np.arange(28)
    for j in range(5):
        for co in range(6):
            for c in range(3):
                for i in range(5):
                    a1[j, co * 28 + oh, c * 32 + oh + i] = w1[co, c, i, j]

    # pool1 row selectors (even/odd output rows); 88 rows = 84 used + 4 zero pad
    # so the next contraction dim (K) is a multiple of 8.
    s1 = np.zeros((2, 88, 168), np.float32)
    for co in range(6):
        for ph in range(14):
            s1[0, co * 14 + ph, co * 28 + 2 * ph] = 1.0
            s1[1, co * 14 + ph, co * 28 + 2 * ph + 1] = 1.0
    b1c = np.zeros((88, 1), np.float32)
    b1c[:84, 0] = np.repeat(b1, 14)

    # conv2 banded weights: a2[j][ko*10 + qh, c*14 + qh + i] = w2[ko, c, i, j]
    a2 = np.zeros((5, 160, 88), np.float32)
    qh = np.arange(10)
    for j in range(5):
        for ko in range(16):
            for c in range(6):
                for i in range(5):
                    a2[j, ko * 10 + qh, c * 14 + qh + i] = w2[ko, c, i, j]

    # pool2 row selectors.
    s2 = np.zeros((2, 80, 160), np.float32)
    for ko in range(16):
        for s in range(5):
            s2[0, ko * 5 + s, ko * 10 + 2 * s] = 1.0
            s2[1, ko * 5 + s, ko * 10 + 2 * s + 1] = 1.0
    b2c = np.repeat(b2, 5).astype(np.float32).reshape(80, 1)

    # fc1 split by the pooled-width offset t (PyTorch flatten order ko*25+s*5+t):
    #   f1w[t][o, ko*5 + s] = fc1_w[o, ko*25 + s*5 + t]
    f1w = fw1.reshape(120, 16, 5, 5).transpose(3, 0, 1, 2).reshape(5, 120, 80)
    f1b = fb1.reshape(120, 1)

    # fc2 / fc3 in natural (out, in) layout; pad the 84-wide dims to 88 (K mult of 8)
    # and fc3's output rows to 16 (zero rows -> zero logits rows 10..15).
    f2w = np.zeros((88, 120), np.float32)
    f2w[:84] = fw2
    f2b = np.zeros((88, 1), np.float32)
    f2b[:84, 0] = fb2
    f3w = np.zeros((16, 88), np.float32)
    f3w[:10, :84] = fw3
    f3b = np.zeros((16, 1), np.float32)
    f3b[:10, 0] = fb3

    cvt = lambda a: jnp.asarray(a, dtype)
    return dict(a1=cvt(a1), s1=cvt(s1), b1=jnp.asarray(b1c),
                a2=cvt(a2), s2=cvt(s2), b2=jnp.asarray(b2c),
                f1w=cvt(f1w), f1b=jnp.asarray(f1b),
                f2w=cvt(f2w), f2b=jnp.asarray(f2b),
                f3w=cvt(f3w), f3b=jnp.asarray(f3b))


# ----------------------------------------------------------------------------
# The fused whole-network kernel (one grid step = one tile of B images).
# Activations: rows = feature index, lanes = b*32 + within-image width index.
# ----------------------------------------------------------------------------
def _lenet_kernel(x_ref, a1_ref, s1_ref, b1_ref, a2_ref, s2_ref, b2_ref,
                  f1w_ref, f1b_ref, f2w_ref, f2b_ref, f3w_ref, f3b_ref,
                  o_ref):
    bf16 = jnp.bfloat16

    def lsh(v, s):
        # Shift lanes left by s: out[:, l] = v[:, (l + s) % L].  Wrapped /
        # cross-image lanes only ever land in garbage output lanes (ow >= 28).
        if s == 0:
            return v
        return jnp.concatenate([v[:, s:], v[:, :s]], axis=1)

    def mm(a, b):
        return jnp.dot(a, b, preferred_element_type=jnp.float32)

    x = x_ref[0]                                              # (96, L) bf16

    # conv1: 5 banded matmuls (one per kernel column j) -> (168, L) f32.
    z1 = mm(a1_ref[0], x)
    for j in range(1, 5):
        z1 = z1 + mm(a1_ref[j], lsh(x, j))

    # 2x2/2 max-pool: lane-pair max (pool over width), then even/odd row
    # selection matmuls + max (pool over height, rows compacted to co*14+ph).
    m1 = jnp.maximum(z1, lsh(z1, 1)).astype(bf16)             # (168, L)
    p1 = jnp.maximum(mm(s1_ref[0], m1), mm(s1_ref[1], m1))    # (88, L) f32
    p1 = jnp.maximum(p1 + b1_ref[...], 0.0).astype(bf16)      # pool1 (bias shared
    #  per window and ReLU monotone -> pooling before bias+ReLU is exact).

    # conv2: same banded scheme (width stride is now 2 lanes per pooled pixel).
    z2 = mm(a2_ref[0], p1)
    for j in range(1, 5):
        z2 = z2 + mm(a2_ref[j], lsh(p1, 2 * j))               # (160, L) f32
    m2 = jnp.maximum(z2, lsh(z2, 2)).astype(bf16)
    p2 = jnp.maximum(mm(s2_ref[0], m2), mm(s2_ref[1], m2))    # (80, L) f32
    p2 = jnp.maximum(p2 + b2_ref[...], 0.0).astype(bf16)      # pool2

    # flatten + fc1: 5 matmuls, one per pooled-width offset t (K = 80 each).
    h1 = mm(f1w_ref[0], p2)
    for t in range(1, 5):
        h1 = h1 + mm(f1w_ref[t], lsh(p2, 4 * t))              # (120, L) f32
    h1 = jnp.maximum(h1 + f1b_ref[...], 0.0).astype(bf16)

    # fc2 + ReLU, fc3 (rows 10..15 of the output are zero padding).
    h2 = jnp.maximum(mm(f2w_ref[...], h1) + f2b_ref[...], 0.0).astype(bf16)
    o_ref[0] = mm(f3w_ref[...], h2) + f3b_ref[...]            # (16, L) f32
    # Valid logits for image b live at lane b*32, rows 0..9 (extracted outside).


def net_forward(packed, x, block_batch=16):
    n = x.shape[0]
    # Images per grid step: multiple of 4 (so lanes = B*32 is a multiple of 128),
    # capped at 16 so VMEM stays tiny on every generation; large N gives many
    # grid steps (>=2) so the "parallel" axis feeds both v7x TensorCores.
    bpi = min(block_batch, 4 * ((n + 3) // 4))
    nb = -(-n // bpi)
    npad = nb * bpi
    lanes = bpi * 32

    # Cheap host-side re-layout of the raw input (no im2col blow-up):
    # (N,3,32,32) -> (nb, 96, B*32) bf16, row = c*32+h, lane = b*32+w.
    xin = jnp.pad(x, ((0, npad - n), (0, 0), (0, 0), (0, 0)))
    xin = xin.reshape(nb, bpi, 3, 32, 32).transpose(0, 2, 3, 1, 4)
    xin = xin.reshape(nb, 96, lanes).astype(jnp.bfloat16)

    weights = (packed["a1"], packed["s1"], packed["b1"],
               packed["a2"], packed["s2"], packed["b2"],
               packed["f1w"], packed["f1b"], packed["f2w"], packed["f2b"],
               packed["f3w"], packed["f3b"])

    def resident(a):  # full array, constant index map -> loaded once, stays in VMEM
        nd = a.ndim
        return pl.BlockSpec(a.shape, lambda g, nd=nd: (0,) * nd)

    out = pl.pallas_call(
        _lenet_kernel,
        out_shape=jax.ShapeDtypeStruct((nb, 16, lanes), jnp.float32),
        grid=(nb,),
        in_specs=[pl.BlockSpec((1, 96, lanes), lambda g: (g, 0, 0))]
                 + [resident(a) for a in weights],
        out_specs=pl.BlockSpec((1, 16, lanes), lambda g: (g, 0, 0)),
        compiler_params=pltpu.CompilerParams(
            dimension_semantics=("parallel",)),
    )(xin, *weights)

    # Unpack the tiny result: logits for image (g, b) are rows 0..9, lane b*32.
    logits = out.reshape(nb, 16, bpi, 32)[:, :10, :, 0]       # (nb, 10, B)
    logits = logits.transpose(0, 2, 1).reshape(npad, 10)
    return logits[:n]


# ----------------------------------------------------------------------------
# Parameters (deterministic, PyTorch-like fan-in uniform init; PyTorch layout
# is kept for the pure-JAX reference, re-laid-out once by pack_params).
# ----------------------------------------------------------------------------
def init_params(key):
    ks = jax.random.split(key, 10)

    def u(k, shape, fan_in):
        bound = 1.0 / jnp.sqrt(float(fan_in))
        return jax.random.uniform(k, shape, jnp.float32, -bound, bound)

    return {
        "conv1_w": u(ks[0], (6, 3, 5, 5), 3 * 25),
        "conv1_b": u(ks[1], (6,), 3 * 25),
        "conv2_w": u(ks[2], (16, 6, 5, 5), 6 * 25),
        "conv2_b": u(ks[3], (16,), 6 * 25),
        "fc1_w": u(ks[4], (120, 400), 400),
        "fc1_b": u(ks[5], (120,), 400),
        "fc2_w": u(ks[6], (84, 120), 120),
        "fc2_b": u(ks[7], (84,), 120),
        "fc3_w": u(ks[8], (10, 84), 84),
        "fc3_b": u(ks[9], (10,), 84),
    }


# Pure-JAX reference (not part of the kernel path) for a correctness check.
def net_forward_ref(params, x):
    dn = ("NCHW", "OIHW", "NCHW")
    y = jax.lax.conv_general_dilated(x, params["conv1_w"], (1, 1), "VALID",
                                     dimension_numbers=dn)
    y = jax.nn.relu(y + params["conv1_b"][None, :, None, None])
    y = jax.lax.reduce_window(y, -jnp.inf, jax.lax.max,
                              (1, 1, 2, 2), (1, 1, 2, 2), "VALID")
    y = jax.lax.conv_general_dilated(y, params["conv2_w"], (1, 1), "VALID",
                                     dimension_numbers=dn)
    y = jax.nn.relu(y + params["conv2_b"][None, :, None, None])
    y = jax.lax.reduce_window(y, -jnp.inf, jax.lax.max,
                              (1, 1, 2, 2), (1, 1, 2, 2), "VALID")
    y = y.reshape(y.shape[0], 16 * 5 * 5)
    y = jax.nn.relu(y @ params["fc1_w"].T + params["fc1_b"])
    y = jax.nn.relu(y @ params["fc2_w"].T + params["fc2_b"])
    y = y @ params["fc3_w"].T + params["fc3_b"]
    return y


if __name__ == "__main__":
    key = jax.random.PRNGKey(0)
    pkey, xkey = jax.random.split(key)
    params = init_params(pkey)
    packed = pack_params(params)            # one-time weight re-layout (bf16)
    # Input implied by fc1 = Linear(16*5*5, 120): CIFAR-style (N, 3, 32, 32).
    x = jax.random.normal(xkey, (2, 3, 32, 32), jnp.float32)

    out = jax.jit(net_forward)(packed, x)
    out = jax.block_until_ready(out)
    assert out.shape == (2, 10), out.shape

    ref = net_forward_ref(params, x)
    max_err = float(jnp.max(jnp.abs(out - ref)))
    assert jnp.allclose(out, ref, rtol=5e-2, atol=5e-2), max_err

    print("KERNEL_OK")
</pallas_src>

<mosaic_0001>
module attributes {stable_mosaic.version = 11 : i64} {
  func.func @_lenet_kernel(%arg0: i32, %arg1: memref<1x96x128xbf16, #tpu.memory_space<vmem>>, %arg2: memref<5x168x96xbf16, #tpu.memory_space<vmem>>, %arg3: memref<2x88x168xbf16, #tpu.memory_space<vmem>>, %arg4: memref<88x1xf32, #tpu.memory_space<vmem>>, %arg5: memref<5x160x88xbf16, #tpu.memory_space<vmem>>, %arg6: memref<2x80x160xbf16, #tpu.memory_space<vmem>>, %arg7: memref<80x1xf32, #tpu.memory_space<vmem>>, %arg8: memref<5x120x80xbf16, #tpu.memory_space<vmem>>, %arg9: memref<120x1xf32, #tpu.memory_space<vmem>>, %arg10: memref<88x120xbf16, #tpu.memory_space<vmem>>, %arg11: memref<88x1xf32, #tpu.memory_space<vmem>>, %arg12: memref<16x88xbf16, #tpu.memory_space<vmem>>, %arg13: memref<16x1xf32, #tpu.memory_space<vmem>>, %arg14: memref<1x16x128xf32, #tpu.memory_space<vmem>>) attributes {dimension_semantics = [#tpu.dimension_semantics<parallel>], iteration_bounds = array<i64: 1>, scalar_prefetch = 0 : i64, scratch_operands = 0 : i64, tpu.core_type = #tpu.core_type<tc>, window_params = [{transform_indices = @transform_0, window_bounds = array<i64: 1, 96, 128>}, {pipeline_mode = #tpu.pipeline_mode<synchronous>, transform_indices = @transform_1, window_bounds = array<i64: 5, 168, 96>}, {pipeline_mode = #tpu.pipeline_mode<synchronous>, transform_indices = @transform_2, window_bounds = array<i64: 2, 88, 168>}, {pipeline_mode = #tpu.pipeline_mode<synchronous>, transform_indices = @transform_3, window_bounds = array<i64: 88, 1>}, {pipeline_mode = #tpu.pipeline_mode<synchronous>, transform_indices = @transform_4, window_bounds = array<i64: 5, 160, 88>}, {pipeline_mode = #tpu.pipeline_mode<synchronous>, transform_indices = @transform_5, window_bounds = array<i64: 2, 80, 160>}, {pipeline_mode = #tpu.pipeline_mode<synchronous>, transform_indices = @transform_6, window_bounds = array<i64: 80, 1>}, {pipeline_mode = #tpu.pipeline_mode<synchronous>, transform_indices = @transform_7, window_bounds = array<i64: 5, 120, 80>}, {pipeline_mode = #tpu.pipeline_mode<synchronous>, transform_indices = @transform_8, window_bounds = array<i64: 120, 1>}, {pipeline_mode = #tpu.pipeline_mode<synchronous>, transform_indices = @transform_9, window_bounds = array<i64: 88, 120>}, {pipeline_mode = #tpu.pipeline_mode<synchronous>, transform_indices = @transform_10, window_bounds = array<i64: 88, 1>}, {pipeline_mode = #tpu.pipeline_mode<synchronous>, transform_indices = @transform_11, window_bounds = array<i64: 16, 88>}, {pipeline_mode = #tpu.pipeline_mode<synchronous>, transform_indices = @transform_12, window_bounds = array<i64: 16, 1>}, {transform_indices = @transform_13, window_bounds = array<i64: 1, 16, 128>}]} {
    %c0 = arith.constant 0 : index
    %c0_0 = arith.constant 0 : index
    %c0_1 = arith.constant 0 : index
    %0 = vector.load %arg1[%c0, %c0_0, %c0_1] : memref<1x96x128xbf16, #tpu.memory_space<vmem>>, vector<1x96x128xbf16>
    %1 = vector.shape_cast %0 : vector<1x96x128xbf16> to vector<96x128xbf16>
    %c0_2 = arith.constant 0 : index
    %c0_3 = arith.constant 0 : index
    %c0_4 = arith.constant 0 : index
    %2 = vector.load %arg2[%c0_2, %c0_3, %c0_4] : memref<5x168x96xbf16, #tpu.memory_space<vmem>>, vector<1x168x96xbf16>
    %3 = vector.shape_cast %2 : vector<1x168x96xbf16> to vector<168x96xbf16>
    %cst = arith.constant dense<0.000000e+00> : vector<168x128xf32>
    %4 = tpu.matmul %3, %1, %cst {dimension_numbers = #tpu.dot_dimension_numbers<[1], [0], [0], [1], [0, 0, 1, 1], [], []>} : vector<168x96xbf16>, vector<96x128xbf16>, vector<168x128xf32> -> vector<168x128xf32>
    %c1 = arith.constant 1 : index
    %c0_5 = arith.constant 0 : index
    %c0_6 = arith.constant 0 : index
    %5 = vector.load %arg2[%c1, %c0_5, %c0_6] : memref<5x168x96xbf16, #tpu.memory_space<vmem>>, vector<1x168x96xbf16>
    %6 = vector.shape_cast %5 : vector<1x168x96xbf16> to vector<168x96xbf16>
    %7 = vector.extract_strided_slice %1 {offsets = [0, 1], sizes = [96, 127], strides = [1, 1]} : vector<96x128xbf16> to vector<96x127xbf16>
    %8 = vector.extract_strided_slice %1 {offsets = [0, 0], sizes = [96, 1], strides = [1, 1]} : vector<96x128xbf16> to vector<96x1xbf16>
    %9 = tpu.concatenate %7, %8 in 1 : vector<96x127xbf16>, vector<96x1xbf16> -> vector<96x128xbf16>
    %cst_7 = arith.constant dense<0.000000e+00> : vector<168x128xf32>
    %10 = tpu.matmul %6, %9, %cst_7 {dimension_numbers = #tpu.dot_dimension_numbers<[1], [0], [0], [1], [0, 0, 1, 1], [], []>} : vector<168x96xbf16>, vector<96x128xbf16>, vector<168x128xf32> -> vector<168x128xf32>
    %11 = arith.addf %4, %10 : vector<168x128xf32>
    %c2 = arith.constant 2 : index
    %c0_8 = arith.constant 0 : index
    %c0_9 = arith.constant 0 : index
    %12 = vector.load %arg2[%c2, %c0_8, %c0_9] : memref<5x168x96xbf16, #tpu.memory_space<vmem>>, vector<1x168x96xbf16>
    %13 = vector.shape_cast %12 : vector<1x168x96xbf16> to vector<168x96xbf16>
    %14 = vector.extract_strided_slice %1 {offsets = [0, 2], sizes = [96, 126], strides = [1, 1]} : vector<96x128xbf16> to vector<96x126xbf16>
    %15 = vector.extract_strided_slice %1 {offsets = [0, 0], sizes = [96, 2], strides = [1, 1]} : vector<96x128xbf16> to vector<96x2xbf16>
    %16 = tpu.concatenate %14, %15 in 1 : vector<96x126xbf16>, vector<96x2xbf16> -> vector<96x128xbf16>
    %cst_10 = arith.constant dense<0.000000e+00> : vector<168x128xf32>
    %17 = tpu.matmul %13, %16, %cst_10 {dimension_numbers = #tpu.dot_dimension_numbers<[1], [0], [0], [1], [0, 0, 1, 1], [], []>} : vector<168x96xbf16>, vector<96x128xbf16>, vector<168x128xf32> -> vector<168x128xf32>
    %18 = arith.addf %11, %17 : vector<168x128xf32>
    %c3 = arith.constant 3 : index
    %c0_11 = arith.constant 0 : index
    %c0_12 = arith.constant 0 : index
    %19 = vector.load %arg2[%c3, %c0_11, %c0_12] : memref<5x168x96xbf16, #tpu.memory_space<vmem>>, vector<1x168x96xbf16>
    %20 = vector.shape_cast %19 : vector<1x168x96xbf16> to vector<168x96xbf16>
    %21 = vector.extract_strided_slice %1 {offsets = [0, 3], sizes = [96, 125], strides = [1, 1]} : vector<96x128xbf16> to vector<96x125xbf16>
    %22 = vector.extract_strided_slice %1 {offsets = [0, 0], sizes = [96, 3], strides = [1, 1]} : vector<96x128xbf16> to vector<96x3xbf16>
    %23 = tpu.concatenate %21, %22 in 1 : vector<96x125xbf16>, vector<96x3xbf16> -> vector<96x128xbf16>
    %cst_13 = arith.constant dense<0.000000e+00> : vector<168x128xf32>
    %24 = tpu.matmul %20, %23, %cst_13 {dimension_numbers = #tpu.dot_dimension_numbers<[1], [0], [0], [1], [0, 0, 1, 1], [], []>} : vector<168x96xbf16>, vector<96x128xbf16>, vector<168x128xf32> -> vector<168x128xf32>
    %25 = arith.addf %18, %24 : vector<168x128xf32>
    %c4 = arith.constant 4 : index
    %c0_14 = arith.constant 0 : index
    %c0_15 = arith.constant 0 : index
    %26 = vector.load %arg2[%c4, %c0_14, %c0_15] : memref<5x168x96xbf16, #tpu.memory_space<vmem>>, vector<1x168x96xbf16>
    %27 = vector.shape_cast %26 : vector<1x168x96xbf16> to vector<168x96xbf16>
    %28 = vector.extract_strided_slice %1 {offsets = [0, 4], sizes = [96, 124], strides = [1, 1]} : vector<96x128xbf16> to vector<96x124xbf16>
    %29 = vector.extract_strided_slice %1 {offsets = [0, 0], sizes = [96, 4], strides = [1, 1]} : vector<96x128xbf16> to vector<96x4xbf16>
    %30 = tpu.concatenate %28, %29 in 1 : vector<96x124xbf16>, vector<96x4xbf16> -> vector<96x128xbf16>
    %cst_16 = arith.constant dense<0.000000e+00> : vector<168x128xf32>
    %31 = tpu.matmul %27, %30, %cst_16 {dimension_numbers = #tpu.dot_dimension_numbers<[1], [0], [0], [1], [0, 0, 1, 1], [], []>} : vector<168x96xbf16>, vector<96x128xbf16>, vector<168x128xf32> -> vector<168x128xf32>
    %32 = arith.addf %25, %31 : vector<168x128xf32>
    %33 = vector.extract_strided_slice %32 {offsets = [0, 1], sizes = [168, 127], strides = [1, 1]} : vector<168x128xf32> to vector<168x127xf32>
    %34 = vector.extract_strided_slice %32 {offsets = [0, 0], sizes = [168, 1], strides = [1, 1]} : vector<168x128xf32> to vector<168x1xf32>
    %35 = tpu.concatenate %33, %34 in 1 : vector<168x127xf32>, vector<168x1xf32> -> vector<168x128xf32>
    %36 = arith.maximumf %32, %35 : vector<168x128xf32>
    %37 = arith.truncf %36 : vector<168x128xf32> to vector<168x128xbf16>
    %c0_17 = arith.constant 0 : index
    %c0_18 = arith.constant 0 : index
    %c0_19 = arith.constant 0 : index
    %38 = vector.load %arg3[%c0_17, %c0_18, %c0_19] : memref<2x88x168xbf16, #tpu.memory_space<vmem>>, vector<1x88x168xbf16>
    %39 = vector.shape_cast %38 : vector<1x88x168xbf16> to vector<88x168xbf16>
    %cst_20 = arith.constant dense<0.000000e+00> : vector<88x128xf32>
    %40 = tpu.matmul %39, %37, %cst_20 {dimension_numbers = #tpu.dot_dimension_numbers<[1], [0], [0], [1], [0, 0, 1, 1], [], []>} : vector<88x168xbf16>, vector<168x128xbf16>, vector<88x128xf32> -> vector<88x128xf32>
    %c1_21 = arith.constant 1 : index
    %c0_22 = arith.constant 0 : index
    %c0_23 = arith.constant 0 : index
    %41 = vector.load %arg3[%c1_21, %c0_22, %c0_23] : memref<2x88x168xbf16, #tpu.memory_space<vmem>>, vector<1x88x168xbf16>
    %42 = vector.shape_cast %41 : vector<1x88x168xbf16> to vector<88x168xbf16>
    %cst_24 = arith.constant dense<0.000000e+00> : vector<88x128xf32>
    %43 = tpu.matmul %42, %37, %cst_24 {dimension_numbers = #tpu.dot_dimension_numbers<[1], [0], [0], [1], [0, 0, 1, 1], [], []>} : vector<88x168xbf16>, vector<168x128xbf16>, vector<88x128xf32> -> vector<88x128xf32>
    %44 = arith.maximumf %40, %43 : vector<88x128xf32>
    %c0_25 = arith.constant 0 : index
    %c0_26 = arith.constant 0 : index
    %45 = vector.load %arg4[%c0_25, %c0_26] : memref<88x1xf32, #tpu.memory_space<vmem>>, vector<88x1xf32>
    %46 = vector.broadcast %45 : vector<88x1xf32> to vector<88x128xf32>
    %47 = arith.addf %44, %46 : vector<88x128xf32>
    %cst_27 = arith.constant 0.000000e+00 : f32
    %48 = vector.broadcast %cst_27 : f32 to vector<88x128xf32>
    %49 = arith.maximumf %47, %48 : vector<88x128xf32>
    %50 = arith.truncf %49 : vector<88x128xf32> to vector<88x128xbf16>
    %c0_28 = arith.constant 0 : index
    %c0_29 = arith.constant 0 : index
    %c0_30 = arith.constant 0 : index
    %51 = vector.load %arg5[%c0_28, %c0_29, %c0_30] : memref<5x160x88xbf16, #tpu.memory_space<vmem>>, vector<1x160x88xbf16>
    %52 = vector.shape_cast %51 : vector<1x160x88xbf16> to vector<160x88xbf16>
    %cst_31 = arith.constant dense<0.000000e+00> : vector<160x128xf32>
    %53 = tpu.matmul %52, %50, %cst_31 {dimension_numbers = #tpu.dot_dimension_numbers<[1], [0], [0], [1], [0, 0, 1, 1], [], []>} : vector<160x88xbf16>, vector<88x128xbf16>, vector<160x128xf32> -> vector<160x128xf32>
    %c1_32 = arith.constant 1 : index
    %c0_33 = arith.constant 0 : index
    %c0_34 = arith.constant 0 : index
    %54 = vector.load %arg5[%c1_32, %c0_33, %c0_34] : memref<5x160x88xbf16, #tpu.memory_space<vmem>>, vector<1x160x88xbf16>
    %55 = vector.shape_cast %54 : vector<1x160x88xbf16> to vector<160x88xbf16>
    %56 = vector.extract_strided_slice %50 {offsets = [0, 2], sizes = [88, 126], strides = [1, 1]} : vector<88x128xbf16> to vector<88x126xbf16>
    %57 = vector.extract_strided_slice %50 {offsets = [0, 0], sizes = [88, 2], strides = [1, 1]} : vector<88x128xbf16> to vector<88x2xbf16>
    %58 = tpu.concatenate %56, %57 in 1 : vector<88x126xbf16>, vector<88x2xbf16> -> vector<88x128xbf16>
    %cst_35 = arith.constant dense<0.000000e+00> : vector<160x128xf32>
    %59 = tpu.matmul %55, %58, %cst_35 {dimension_numbers = #tpu.dot_dimension_numbers<[1], [0], [0], [1], [0, 0, 1, 1], [], []>} : vector<160x88xbf16>, vector<88x128xbf16>, vector<160x128xf32> -> vector<160x128xf32>
    %60 = arith.addf %53, %59 : vector<160x128xf32>
    %c2_36 = arith.constant 2 : index
    %c0_37 = arith.constant 0 : index
    %c0_38 = arith.constant 0 : index
    %61 = vector.load %arg5[%c2_36, %c0_37, %c0_38] : memref<5x160x88xbf16, #tpu.memory_space<vmem>>, vector<1x160x88xbf16>
    %62 = vector.shape_cast %61 : vector<1x160x88xbf16> to vector<160x88xbf16>
    %63 = vector.extract_strided_slice %50 {offsets = [0, 4], sizes = [88, 124], strides = [1, 1]} : vector<88x128xbf16> to vector<88x124xbf16>
    %64 = vector.extract_strided_slice %50 {offsets = [0, 0], sizes = [88, 4], strides = [1, 1]} : vector<88x128xbf16> to vector<88x4xbf16>
    %65 = tpu.concatenate %63, %64 in 1 : vector<88x124xbf16>, vector<88x4xbf16> -> vector<88x128xbf16>
    %cst_39 = arith.constant dense<0.000000e+00> : vector<160x128xf32>
    %66 = tpu.matmul %62, %65, %cst_39 {dimension_numbers = #tpu.dot_dimension_numbers<[1], [0], [0], [1], [0, 0, 1, 1], [], []>} : vector<160x88xbf16>, vector<88x128xbf16>, vector<160x128xf32> -> vector<160x128xf32>
    %67 = arith.addf %60, %66 : vector<160x128xf32>
    %c3_40 = arith.constant 3 : index
    %c0_41 = arith.constant 0 : index
    %c0_42 = arith.constant 0 : index
    %68 = vector.load %arg5[%c3_40, %c0_41, %c0_42] : memref<5x160x88xbf16, #tpu.memory_space<vmem>>, vector<1x160x88xbf16>
    %69 = vector.shape_cast %68 : vector<1x160x88xbf16> to vector<160x88xbf16>
    %70 = vector.extract_strided_slice %50 {offsets = [0, 6], sizes = [88, 122], strides = [1, 1]} : vector<88x128xbf16> to vector<88x122xbf16>
    %71 = vector.extract_strided_slice %50 {offsets = [0, 0], sizes = [88, 6], strides = [1, 1]} : vector<88x128xbf16> to vector<88x6xbf16>
    %72 = tpu.concatenate %70, %71 in 1 : vector<88x122xbf16>, vector<88x6xbf16> -> vector<88x128xbf16>
    %cst_43 = arith.constant dense<0.000000e+00> : vector<160x128xf32>
    %73 = tpu.matmul %69, %72, %cst_43 {dimension_numbers = #tpu.dot_dimension_numbers<[1], [0], [0], [1], [0, 0, 1, 1], [], []>} : vector<160x88xbf16>, vector<88x128xbf16>, vector<160x128xf32> -> vector<160x128xf32>
    %74 = arith.addf %67, %73 : vector<160x128xf32>
    %c4_44 = arith.constant 4 : index
    %c0_45 = arith.constant 0 : index
    %c0_46 = arith.constant 0 : index
    %75 = vector.load %arg5[%c4_44, %c0_45, %c0_46] : memref<5x160x88xbf16, #tpu.memory_space<vmem>>, vector<1x160x88xbf16>
    %76 = vector.shape_cast %75 : vector<1x160x88xbf16> to vector<160x88xbf16>
    %77 = vector.extract_strided_slice %50 {offsets = [0, 8], sizes = [88, 120], strides = [1, 1]} : vector<88x128xbf16> to vector<88x120xbf16>
    %78 = vector.extract_strided_slice %50 {offsets = [0, 0], sizes = [88, 8], strides = [1, 1]} : vector<88x128xbf16> to vector<88x8xbf16>
    %79 = tpu.concatenate %77, %78 in 1 : vector<88x120xbf16>, vector<88x8xbf16> -> vector<88x128xbf16>
    %cst_47 = arith.constant dense<0.000000e+00> : vector<160x128xf32>
    %80 = tpu.matmul %76, %79, %cst_47 {dimension_numbers = #tpu.dot_dimension_numbers<[1], [0], [0], [1], [0, 0, 1, 1], [], []>} : vector<160x88xbf16>, vector<88x128xbf16>, vector<160x128xf32> -> vector<160x128xf32>
    %81 = arith.addf %74, %80 : vector<160x128xf32>
    %82 = vector.extract_strided_slice %81 {offsets = [0, 2], sizes = [160, 126], strides = [1, 1]} : vector<160x128xf32> to vector<160x126xf32>
    %83 = vector.extract_strided_slice %81 {offsets = [0, 0], sizes = [160, 2], strides = [1, 1]} : vector<160x128xf32> to vector<160x2xf32>
    %84 = tpu.concatenate %82, %83 in 1 : vector<160x126xf32>, vector<160x2xf32> -> vector<160x128xf32>
    %85 = arith.maximumf %81, %84 : vector<160x128xf32>
    %86 = arith.truncf %85 : vector<160x128xf32> to vector<160x128xbf16>
    %c0_48 = arith.constant 0 : index
    %c0_49 = arith.constant 0 : index
    %c0_50 = arith.constant 0 : index
    %87 = vector.load %arg6[%c0_48, %c0_49, %c0_50] : memref<2x80x160xbf16, #tpu.memory_space<vmem>>, vector<1x80x160xbf16>
    %88 = vector.shape_cast %87 : vector<1x80x160xbf16> to vector<80x160xbf16>
    %cst_51 = arith.constant dense<0.000000e+00> : vector<80x128xf32>
    %89 = tpu.matmul %88, %86, %cst_51 {dimension_numbers = #tpu.dot_dimension_numbers<[1], [0], [0], [1], [0, 0, 1, 1], [], []>} : vector<80x160xbf16>, vector<160x128xbf16>, vector<80x128xf32> -> vector<80x128xf32>
    %c1_52 = arith.constant 1 : index
    %c0_53 = arith.constant 0 : index
    %c0_54 = arith.constant 0 : index
    %90 = vector.load %arg6[%c1_52, %c0_53, %c0_54] : memref<2x80x160xbf16, #tpu.memory_space<vmem>>, vector<1x80x160xbf16>
    %91 = vector.shape_cast %90 : vector<1x80x160xbf16> to vector<80x160xbf16>
    %cst_55 = arith.constant dense<0.000000e+00> : vector<80x128xf32>
    %92 = tpu.matmul %91, %86, %cst_55 {dimension_numbers = #tpu.dot_dimension_numbers<[1], [0], [0], [1], [0, 0, 1, 1], [], []>} : vector<80x160xbf16>, vector<160x128xbf16>, vector<80x128xf32> -> vector<80x128xf32>
    %93 = arith.maximumf %89, %92 : vector<80x128xf32>
    %c0_56 = arith.constant 0 : index
    %c0_57 = arith.constant 0 : index
    %94 = vector.load %arg7[%c0_56, %c0_57] : memref<80x1xf32, #tpu.memory_space<vmem>>, vector<80x1xf32>
    %95 = vector.broadcast %94 : vector<80x1xf32> to vector<80x128xf32>
    %96 = arith.addf %93, %95 : vector<80x128xf32>
    %cst_58 = arith.constant 0.000000e+00 : f32
    %97 = vector.broadcast %cst_58 : f32 to vector<80x128xf32>
    %98 = arith.maximumf %96, %97 : vector<80x128xf32>
    %99 = arith.truncf %98 : vector<80x128xf32> to vector<80x128xbf16>
    %c0_59 = arith.constant 0 : index
    %c0_60 = arith.constant 0 : index
    %c0_61 = arith.constant 0 : index
    %100 = vector.load %arg8[%c0_59, %c0_60, %c0_61] : memref<5x120x80xbf16, #tpu.memory_space<vmem>>, vector<1x120x80xbf16>
    %101 = vector.shape_cast %100 : vector<1x120x80xbf16> to vector<120x80xbf16>
    %cst_62 = arith.constant dense<0.000000e+00> : vector<120x128xf32>
    %102 = tpu.matmul %101, %99, %cst_62 {dimension_numbers = #tpu.dot_dimension_numbers<[1], [0], [0], [1], [0, 0, 1, 1], [], []>} : vector<120x80xbf16>, vector<80x128xbf16>, vector<120x128xf32> -> vector<120x128xf32>
    %c1_63 = arith.constant 1 : index
    %c0_64 = arith.constant 0 : index
    %c0_65 = arith.constant 0 : index
    %103 = vector.load %arg8[%c1_63, %c0_64, %c0_65] : memref<5x120x80xbf16, #tpu.memory_space<vmem>>, vector<1x120x80xbf16>
    %104 = vector.shape_cast %103 : vector<1x120x80xbf16> to vector<120x80xbf16>
    %105 = vector.extract_strided_slice %99 {offsets = [0, 4], sizes = [80, 124], strides = [1, 1]} : vector<80x128xbf16> to vector<80x124xbf16>
    %106 = vector.extract_strided_slice %99 {offsets = [0, 0], sizes = [80, 4], strides = [1, 1]} : vector<80x128xbf16> to vector<80x4xbf16>
    %107 = tpu.concatenate %105, %106 in 1 : vector<80x124xbf16>, vector<80x4xbf16> -> vector<80x128xbf16>
    %cst_66 = arith.constant dense<0.000000e+00> : vector<120x128xf32>
    %108 = tpu.matmul %104, %107, %cst_66 {dimension_numbers = #tpu.dot_dimension_numbers<[1], [0], [0], [1], [0, 0, 1, 1], [], []>} : vector<120x80xbf16>, vector<80x128xbf16>, vector<120x128xf32> -> vector<120x128xf32>
    %109 = arith.addf %102, %108 : vector<120x128xf32>
    %c2_67 = arith.constant 2 : index
    %c0_68 = arith.constant 0 : index
    %c0_69 = arith.constant 0 : index
    %110 = vector.load %arg8[%c2_67, %c0_68, %c0_69] : memref<5x120x80xbf16, #tpu.memory_space<vmem>>, vector<1x120x80xbf16>
    %111 = vector.shape_cast %110 : vector<1x120x80xbf16> to vector<120x80xbf16>
    %112 = vector.extract_strided_slice %99 {offsets = [0, 8], sizes = [80, 120], strides = [1, 1]} : vector<80x128xbf16> to vector<80x120xbf16>
    %113 = vector.extract_strided_slice %99 {offsets = [0, 0], sizes = [80, 8], strides = [1, 1]} : vector<80x128xbf16> to vector<80x8xbf16>
    %114 = tpu.concatenate %112, %113 in 1 : vector<80x120xbf16>, vector<80x8xbf16> -> vector<80x128xbf16>
    %cst_70 = arith.constant dense<0.000000e+00> : vector<120x128xf32>
    %115 = tpu.matmul %111, %114, %cst_70 {dimension_numbers = #tpu.dot_dimension_numbers<[1], [0], [0], [1], [0, 0, 1, 1], [], []>} : vector<120x80xbf16>, vector<80x128xbf16>, vector<120x128xf32> -> vector<120x128xf32>
    %116 = arith.addf %109, %115 : vector<120x128xf32>
    %c3_71 = arith.constant 3 : index
    %c0_72 = arith.constant 0 : index
    %c0_73 = arith.constant 0 : index
    %117 = vector.load %arg8[%c3_71, %c0_72, %c0_73] : memref<5x120x80xbf16, #tpu.memory_space<vmem>>, vector<1x120x80xbf16>
    %118 = vector.shape_cast %117 : vector<1x120x80xbf16> to vector<120x80xbf16>
    %119 = vector.extract_strided_slice %99 {offsets = [0, 12], sizes = [80, 116], strides = [1, 1]} : vector<80x128xbf16> to vector<80x116xbf16>
    %120 = vector.extract_strided_slice %99 {offsets = [0, 0], sizes = [80, 12], strides = [1, 1]} : vector<80x128xbf16> to vector<80x12xbf16>
    %121 = tpu.concatenate %119, %120 in 1 : vector<80x116xbf16>, vector<80x12xbf16> -> vector<80x128xbf16>
    %cst_74 = arith.constant dense<0.000000e+00> : vector<120x128xf32>
    %122 = tpu.matmul %118, %121, %cst_74 {dimension_numbers = #tpu.dot_dimension_numbers<[1], [0], [0], [1], [0, 0, 1, 1], [], []>} : vector<120x80xbf16>, vector<80x128xbf16>, vector<120x128xf32> -> vector<120x128xf32>
    %123 = arith.addf %116, %122 : vector<120x128xf32>
    %c4_75 = arith.constant 4 : index
    %c0_76 = arith.constant 0 : index
    %c0_77 = arith.constant 0 : index
    %124 = vector.load %arg8[%c4_75, %c0_76, %c0_77] : memref<5x120x80xbf16, #tpu.memory_space<vmem>>, vector<1x120x80xbf16>
    %125 = vector.shape_cast %124 : vector<1x120x80xbf16> to vector<120x80xbf16>
    %126 = vector.extract_strided_slice %99 {offsets = [0, 16], sizes = [80, 112], strides = [1, 1]} : vector<80x128xbf16> to vector<80x112xbf16>
    %127 = vector.extract_strided_slice %99 {offsets = [0, 0], sizes = [80, 16], strides = [1, 1]} : vector<80x128xbf16> to vector<80x16xbf16>
    %128 = tpu.concatenate %126, %127 in 1 : vector<80x112xbf16>, vector<80x16xbf16> -> vector<80x128xbf16>
    %cst_78 = arith.constant dense<0.000000e+00> : vector<120x128xf32>
    %129 = tpu.matmul %125, %128, %cst_78 {dimension_numbers = #tpu.dot_dimension_numbers<[1], [0], [0], [1], [0, 0, 1, 1], [], []>} : vector<120x80xbf16>, vector<80x128xbf16>, vector<120x128xf32> -> vector<120x128xf32>
    %130 = arith.addf %123, %129 : vector<120x128xf32>
    %c0_79 = arith.constant 0 : index
    %c0_80 = arith.constant 0 : index
    %131 = vector.load %arg9[%c0_79, %c0_80] : memref<120x1xf32, #tpu.memory_space<vmem>>, vector<120x1xf32>
    %132 = vector.broadcast %131 : vector<120x1xf32> to vector<120x128xf32>
    %133 = arith.addf %130, %132 : vector<120x128xf32>
    %cst_81 = arith.constant 0.000000e+00 : f32
    %134 = vector.broadcast %cst_81 : f32 to vector<120x128xf32>
    %135 = arith.maximumf %133, %134 : vector<120x128xf32>
    %136 = arith.truncf %135 : vector<120x128xf32> to vector<120x128xbf16>
    %c0_82 = arith.constant 0 : index
    %c0_83 = arith.constant 0 : index
    %137 = vector.load %arg10[%c0_82, %c0_83] : memref<88x120xbf16, #tpu.memory_space<vmem>>, vector<88x120xbf16>
    %cst_84 = arith.constant dense<0.000000e+00> : vector<88x128xf32>
    %138 = tpu.matmul %137, %136, %cst_84 {dimension_numbers = #tpu.dot_dimension_numbers<[1], [0], [0], [1], [0, 0, 1, 1], [], []>} : vector<88x120xbf16>, vector<120x128xbf16>, vector<88x128xf32> -> vector<88x128xf32>
    %c0_85 = arith.constant 0 : index
    %c0_86 = arith.constant 0 : index
    %139 = vector.load %arg11[%c0_85, %c0_86] : memref<88x1xf32, #tpu.memory_space<vmem>>, vector<88x1xf32>
    %140 = vector.broadcast %139 : vector<88x1xf32> to vector<88x128xf32>
    %141 = arith.addf %138, %140 : vector<88x128xf32>
    %cst_87 = arith.constant 0.000000e+00 : f32
    %142 = vector.broadcast %cst_87 : f32 to vector<88x128xf32>
    %143 = arith.maximumf %141, %142 : vector<88x128xf32>
    %144 = arith.truncf %143 : vector<88x128xf32> to vector<88x128xbf16>
    %c0_88 = arith.constant 0 : index
    %c0_89 = arith.constant 0 : index
    %145 = vector.load %arg12[%c0_88, %c0_89] : memref<16x88xbf16, #tpu.memory_space<vmem>>, vector<16x88xbf16>
    %cst_90 = arith.constant dense<0.000000e+00> : vector<16x128xf32>
    %146 = tpu.matmul %145, %144, %cst_90 {dimension_numbers = #tpu.dot_dimension_numbers<[1], [0], [0], [1], [0, 0, 1, 1], [], []>} : vector<16x88xbf16>, vector<88x128xbf16>, vector<16x128xf32> -> vector<16x128xf32>
    %c0_91 = arith.constant 0 : index
    %c0_92 = arith.constant 0 : index
    %147 = vector.load %arg13[%c0_91, %c0_92] : memref<16x1xf32, #tpu.memory_space<vmem>>, vector<16x1xf32>
    %148 = vector.broadcast %147 : vector<16x1xf32> to vector<16x128xf32>
    %149 = arith.addf %146, %148 : vector<16x128xf32>
    %c0_93 = arith.constant 0 : index
    %c0_94 = arith.constant 0 : index
    %c0_95 = arith.constant 0 : index
    %150 = vector.load %arg14[%c0_93, %c0_94, %c0_95] : memref<1x16x128xf32, #tpu.memory_space<vmem>>, vector<1x16x128xf32>
    %151 = vector.shape_cast %150 : vector<1x16x128xf32> to vector<16x128xf32>
    %152 = vector.shape_cast %149 : vector<16x128xf32> to vector<1x16x128xf32>
    tpu.vector_store %arg14[%c0_93, %c0_94, %c0_95], %152 {strides = array<i32>} : memref<1x16x128xf32, #tpu.memory_space<vmem>>, vector<1x16x128xf32>,
    return
  }
  func.func @transform_0(%arg0: i32) -> (i32, i32, i32) {
    %c0_i32 = arith.constant 0 : i32
    %c0_i32_0 = arith.constant 0 : i32
    %c0_i32_1 = arith.constant 0 : i32
    return %arg0, %c0_i32, %c0_i32_0 : i32, i32, i32
  }
  func.func @transform_1(%arg0: i32) -> (i32, i32, i32) {
    %c0_i32 = arith.constant 0 : i32
    %c0_i32_0 = arith.constant 0 : i32
    %c0_i32_1 = arith.constant 0 : i32
    %c0_i32_2 = arith.constant 0 : i32
    return %c0_i32, %c0_i32_0, %c0_i32_1 : i32, i32, i32
  }
  func.func @transform_2(%arg0: i32) -> (i32, i32, i32) {
    %c0_i32 = arith.constant 0 : i32
    %c0_i32_0 = arith.constant 0 : i32
    %c0_i32_1 = arith.constant 0 : i32
    %c0_i32_2 = arith.constant 0 : i32
    return %c0_i32, %c0_i32_0, %c0_i32_1 : i32, i32, i32
  }
  func.func @transform_3(%arg0: i32) -> (i32, i32) {
    %c0_i32 = arith.constant 0 : i32
    %c0_i32_0 = arith.constant 0 : i32
    %c0_i32_1 = arith.constant 0 : i32
    return %c0_i32, %c0_i32_0 : i32, i32
  }
  func.func @transform_4(%arg0: i32) -> (i32, i32, i32) {
    %c0_i32 = arith.constant 0 : i32
    %c0_i32_0 = arith.constant 0 : i32
    %c0_i32_1 = arith.constant 0 : i32
    %c0_i32_2 = arith.constant 0 : i32
    return %c0_i32, %c0_i32_0, %c0_i32_1 : i32, i32, i32
  }
  func.func @transform_5(%arg0: i32) -> (i32, i32, i32) {
    %c0_i32 = arith.constant 0 : i32
    %c0_i32_0 = arith.constant 0 : i32
    %c0_i32_1 = arith.constant 0 : i32
    %c0_i32_2 = arith.constant 0 : i32
    return %c0_i32, %c0_i32_0, %c0_i32_1 : i32, i32, i32
  }
  func.func @transform_6(%arg0: i32) -> (i32, i32) {
    %c0_i32 = arith.constant 0 : i32
    %c0_i32_0 = arith.constant 0 : i32
    %c0_i32_1 = arith.constant 0 : i32
    return %c0_i32, %c0_i32_0 : i32, i32
  }
  func.func @transform_7(%arg0: i32) -> (i32, i32, i32) {
    %c0_i32 = arith.constant 0 : i32
    %c0_i32_0 = arith.constant 0 : i32
    %c0_i32_1 = arith.constant 0 : i32
    %c0_i32_2 = arith.constant 0 : i32
    return %c0_i32, %c0_i32_0, %c0_i32_1 : i32, i32, i32
  }
  func.func @transform_8(%arg0: i32) -> (i32, i32) {
    %c0_i32 = arith.constant 0 : i32
    %c0_i32_0 = arith.constant 0 : i32
    %c0_i32_1 = arith.constant 0 : i32
    return %c0_i32, %c0_i32_0 : i32, i32
  }
  func.func @transform_9(%arg0: i32) -> (i32, i32) {
    %c0_i32 = arith.constant 0 : i32
    %c0_i32_0 = arith.constant 0 : i32
    %c0_i32_1 = arith.constant 0 : i32
    return %c0_i32, %c0_i32_0 : i32, i32
  }
  func.func @transform_10(%arg0: i32) -> (i32, i32) {
    %c0_i32 = arith.constant 0 : i32
    %c0_i32_0 = arith.constant 0 : i32
    %c0_i32_1 = arith.constant 0 : i32
    return %c0_i32, %c0_i32_0 : i32, i32
  }
  func.func @transform_11(%arg0: i32) -> (i32, i32) {
    %c0_i32 = arith.constant 0 : i32
    %c0_i32_0 = arith.constant 0 : i32
    %c0_i32_1 = arith.constant 0 : i32
    return %c0_i32, %c0_i32_0 : i32, i32
  }
  func.func @transform_12(%arg0: i32) -> (i32, i32) {
    %c0_i32 = arith.constant 0 : i32
    %c0_i32_0 = arith.constant 0 : i32
    %c0_i32_1 = arith.constant 0 : i32
    return %c0_i32, %c0_i32_0 : i32, i32
  }
  func.func @transform_13(%arg0: i32) -> (i32, i32, i32) {
    %c0_i32 = arith.constant 0 : i32
    %c0_i32_0 = arith.constant 0 : i32
    %c0_i32_1 = arith.constant 0 : i32
    return %arg0, %c0_i32, %c0_i32_0 : i32, i32, i32
  }
}

</mosaic_0001>

<bundles_post_ra>
// kernel: net_forward.1
= control target key start
LH: loop header
LB: loop body
LE: loop exit
PB: predicated region body
PF: predicated region fallthrough
CT: control target
= control target key end

     0   :  { %v8980_v1 = vmov 0.0   ;;  %s6923_s29 = smov 127   ;;  %vm6924_vm0 = vmmov 0   ;;  %s6925_s21 = smov 126   ;;  %vm207_vm1 = vcmask 785408   ;;  %vm1570_vm2 = vcmask 326656   ;;  %s8966_s0 = inlined_call_operand.vmem [shape: bf16[1,96,128], index: 0, kind: input, shape index: {}]   ;;  %s8967_s1 = inlined_call_operand.vmem [shape: bf16[5,168,96], index: 1, kind: input, shape index: {}]   ;;  %s8968_s2 = inlined_call_operand.vmem [shape: bf16[2,88,168], index: 2, kind: input, shape index: {}]   ;;  %s8969_s3 = inlined_call_operand.vmem [shape: f32[88,1], index: 3, kind: input, shape index: {}]   ;;  %s8970_s4 = inlined_call_operand.vmem [shape: bf16[5,160,88], index: 4, kind: input, shape index: {}]   ;;  %s8971_s6 = inlined_call_operand.vmem [shape: f32[80,1], index: 6, kind: input, shape index: {}]   ;;  %s8972_s5 = inlined_call_operand.vmem [shape: bf16[2,80,160], index: 5, kind: input, shape index: {}]   ;;  %s8973_s7 = inlined_call_operand.vmem [shape: bf16[5,120,80], index: 7, kind: input, shape index: {}]   ;;  %s8974_s8 = inlined_call_operand.vmem [shape: f32[120,1], index: 8, kind: input, shape index: {}]   ;;  %s8975_s10 = inlined_call_operand.vmem [shape: f32[88,1], index: 10, kind: input, shape index: {}]   ;;  %s8976_s12 = inlined_call_operand.vmem [shape: f32[16,1], index: 12, kind: input, shape index: {}]   ;;  %s8977_s9 = inlined_call_operand.vmem [shape: bf16[88,120], index: 9, kind: input, shape index: {}]   ;;  %s8978_s11 = inlined_call_operand.vmem [shape: bf16[16,88], index: 11, kind: input, shape index: {}]   ;;  %s8979_s13 = inlined_call_operand.vmem [shape: f32[1,16,128], index: 13, kind: output, shape index: {}]  }
   0x1   :  { %v6700_v0 = vld [vmem:[%s8966_s0 + $0x28] sm:$0xff]   ;;  %5967 = vmatprep.subr.bf16.mxu0 %v8980_v1  ;;  %6023 = vmatprep.subr.bf16.mxu1 %v8980_v1  ;;  %v6701_v2 = vld [vmem:[%s8966_s0 + $0x20] sm:$0xff]   ;;  %v6702_v3 = vld [vmem:[%s8966_s0 + $0x18] sm:$0xff]   ;;  %s6926_s23 = smov 125   ;;  %s6927_s14 = smov 124   ;;  %vm1589_vm3 = vcmask 1043456  }
   0x2   :  { %140 = vrot.lane.b32.xlu0 %v6700_v0, %s6923_s29  ;;  %6024 = vmatpush3.bf16.msra.mxu1 %v6700_v0  ;;  %v6703_v4 = vld [vmem:[%s8966_s0 + $0x10] sm:$0xff]   ;;  %v6704_v5 = vld [vmem:[%s8966_s0 + $0x8] sm:$0xff]   ;;  %v6705_v6 = vld [vmem:[%s8966_s0] sm:$0xff]   ;;  %vm2059_vm4 = vcmask 719872   ;;  %s6930_s28 = smov 122   ;;  %vm3344_vm5 = vcmask 261120  }
   0x3   :  { %6025 = vmatprep.subr.bf16.mxu1 %v8980_v1  ;;  %136 = vrot.lane.b32.xlu1 %v6702_v3, %s6923_s29  ;;  %v6707_v7 = vld [vmem:[%s8967_s1] sm:$0xff]   ;;  %v6709_v8 = vld [vmem:[%s8967_s1 + $0x8] sm:$0xff]   ;;  %v6711_v9 = vld [vmem:[%s8967_s1 + $0x10] sm:$0xff]   ;;  %vm3766_vm6 = vcmask 654336   ;;  %s6931_s16 = smov 112   ;;  %s6932_s18 = smov 116  }
   0x4   :  { %5979 = vmatprep.mubr.msk.bf16.mxu0 %vm6924_vm0, %v8980_v1  ;;  %6035 = vmatprep.mubr.msk.bf16.mxu1 %vm6924_vm0, %v8980_v1  ;;  %v6713_v10 = vld [vmem:[%s8967_s1 + $0x18] sm:$0xff]   ;;  %v6715_v11 = vld [vmem:[%s8967_s1 + $0x20] sm:$0xff]   ;;  %v6717_v12 = vld [vmem:[%s8967_s1 + $0x28] sm:$0xff]   ;;  %vm2952_vm7 = vcmask 982016  }
   0x5   :  { %v6719_v13 = vld [vmem:[%s8967_s1 + $0x30] sm:$0xff]   ;;  %v6721_v14 = vld [vmem:[%s8967_s1 + $0x38] sm:$0xff]   ;;  %v6723_v15 = vld [vmem:[%s8967_s1 + $0x40] sm:$0xff]  }
   0x6   :  { %138 = vrot.lane.b32.xlu0 %v6701_v2, %s6923_s29  ;;  %6026 = vmatpush3.bf16.msra.mxu1 %v6701_v2  ;;  %v6725_v16 = vld [vmem:[%s8967_s1 + $0x48] sm:$0xff]   ;;  %v6727_v17 = vld [vmem:[%s8967_s1 + $0x50] ss:$0 sps:$4 sm:$0xff]   ;;  %v6706_v26 = vld [vmem:[%s8967_s1 + $0x54] sm:$0xff]  }
   0x7   :  { %6027 = vmatprep.subr.bf16.mxu1 %v8980_v1  ;;  %134 = vrot.lane.b32.xlu1 %v6703_v4, %s6923_s29  ;;  %v6708_v30 = vld [vmem:[%s8967_s1 + $0x5c] sm:$0xff]   ;;  %v6710_v34 = vld [vmem:[%s8967_s1 + $0x64] sm:$0xff]   ;;  %v6712_v38 = vld [vmem:[%s8967_s1 + $0x6c] sm:$0xff]  }
   0x8   :  { %v6729_v40 = vld [vmem:[%s8967_s1 + $0xfc] sm:$0xff]   ;;  %v6714_v41 = vld [vmem:[%s8967_s1 + $0x74] sm:$0xff]   ;;  %v6731_v42 = vld [vmem:[%s8967_s1 + $0x104] sm:$0xff]  }
   0x9   :  { %v6716_v43 = vld [vmem:[%s8967_s1 + $0x7c] sm:$0xff]   ;;  %v6733_v44 = vld [vmem:[%s8967_s1 + $0x10c] sm:$0xff]   ;;  %v6718_v45 = vld [vmem:[%s8967_s1 + $0x84] sm:$0xff]  }
   0xa   :  { %132 = vrot.lane.b32.xlu0 %v6704_v5, %s6923_s29  ;;  %6028 = vmatpush3.bf16.msra.mxu1 %v6702_v3  ;;  %v6735_v46 = vld [vmem:[%s8967_s1 + $0x114] sm:$0xff]   ;;  %v6720_v47 = vld [vmem:[%s8967_s1 + $0x8c] sm:$0xff]   ;;  %v6737_v48 = vld [vmem:[%s8967_s1 + $0x11c] sm:$0xff]  }
   0xb   :  { %6029 = vmatprep.subr.bf16.mxu1 %v8980_v1  ;;  %130 = vrot.lane.b32.xlu1 %v6705_v6, %s6923_s29  ;;  %v6722_v49 = vld [vmem:[%s8967_s1 + $0x94] sm:$0xff]   ;;  %v6739_v50 = vld [vmem:[%s8967_s1 + $0x124] sm:$0xff]   ;;  %v6724_v51 = vld [vmem:[%s8967_s1 + $0x9c] sm:$0xff]  }
   0xc   :  { %v6741_v52 = vld [vmem:[%s8967_s1 + $0x12c] sm:$0xff]   ;;  %v6726_v53 = vld [vmem:[%s8967_s1 + $0xa4] ss:$0 sps:$4 sm:$0xff]   ;;  %v6743_v55 = vld [vmem:[%s8967_s1 + $0x134] sm:$0xff]  }
   0xd   :  { %v6728_v61 = vld [vmem:[%s8967_s1 + $0xa8] sm:$0xff]   ;;  %v6745_v63 = vld [vmem:[%s8967_s1 + $0x13c] sm:$0xff]  }
   0xe   :  { %605 = vrot.lane.b32.xlu0 %v6700_v0, %s6925_s21  ;;  %6030 = vmatpush3.bf16.msra.mxu1 %v6703_v4 }
   0xf   :  { %6031 = vmatprep.subr.bf16.mxu1 %v8980_v1  ;;  %603 = vrot.lane.b32.xlu1 %v6701_v2, %s6925_s21 }
  0x12   :  { %601 = vrot.lane.b32.xlu0 %v6702_v3, %s6925_s21  ;;  %6032 = vmatpush3.bf16.msra.mxu1 %v6704_v5 }
  0x13   :  { %6033 = vmatprep.subr.bf16.mxu1 %v8980_v1  ;;  %599 = vrot.lane.b32.xlu1 %v6703_v4, %s6925_s21 }
  0x16   :  { %597 = vrot.lane.b32.xlu0 %v6704_v5, %s6925_s21  ;;  %6034 = vmatpush3.bf16.msra.mxu1 %v6705_v6 }
  0x17   :  { %6135 = vmatprep.subr.bf16.mxu1 %v8980_v1  ;;  %595 = vrot.lane.b32.xlu1 %v6705_v6, %s6925_s21 }
  0x19   :  { %6036 = vmatmul.mubr.msk.bf16.vlgmr.msra.gmra.mxu1 %vm207_vm1, %v6707_v7  ;;  %v6747_v7 = vld [vmem:[%s8967_s1 + $0x144] sm:$0xff]  }
  0x1a   :  { %878 = vrot.lane.b32.xlu0 %v6700_v0, %s6926_s23  ;;  %6039 = vmatprep.mubr.msk.bf16.mxu1 %vm6924_vm0, %v8980_v1 }
  0x1b   :  { %1151 = vrot.lane.b32.xlu1 %v6700_v0, %s6927_s14 }
  0x1e   :  { %876 = vrot.lane.b32.xlu0 %v6701_v2, %s6926_s23 }
  0x1f   :  { %1149 = vrot.lane.b32.xlu1 %v6701_v2, %s6927_s14 }
  0x21   :  { %6040 = vmatmul.mubr.msk.bf16.gmra.mxu1 %vm207_vm1, %v6709_v8 }
  0x22   :  { %874 = vrot.lane.b32.xlu0 %v6702_v3, %s6926_s23  ;;  %6043 = vmatprep.mubr.msk.bf16.mxu1 %vm6924_vm0, %v8980_v1 }
  0x23   :  { %1147 = vrot.lane.b32.xlu1 %v6702_v3, %s6927_s14 }
  0x26   :  { %872 = vrot.lane.b32.xlu0 %v6703_v4, %s6926_s23 }
  0x27   :  { %1145 = vrot.lane.b32.xlu1 %v6703_v4, %s6927_s14 }
  0x29   :  { %6044 = vmatmul.mubr.msk.bf16.gmra.mxu1 %vm207_vm1, %v6711_v9 }
  0x2a   :  { %870 = vrot.lane.b32.xlu0 %v6704_v5, %s6926_s23  ;;  %6047 = vmatprep.mubr.msk.bf16.mxu1 %vm6924_vm0, %v8980_v1 }
  0x2b   :  { %1143 = vrot.lane.b32.xlu1 %v6704_v5, %s6927_s14  ;;  %v6730_v5 = vld [vmem:[%s8967_s1 + $0xb0] sm:$0xff]  }
  0x2e   :  { %868 = vrot.lane.b32.xlu0 %v6705_v6, %s6926_s23 }
  0x2f   :  { %1141 = vrot.lane.b32.xlu1 %v6705_v6, %s6927_s14 }
  0x31   :  { %6048 = vmatmul.mubr.msk.bf16.gmra.mxu1 %vm207_vm1, %v6713_v10 }
  0x32   :  { %6051 = vmatprep.mubr.msk.bf16.mxu1 %vm6924_vm0, %v8980_v1 }
  0x39   :  { %6052 = vmatmul.mubr.msk.bf16.gmra.mxu1 %vm207_vm1, %v6715_v11 }
  0x3a   :  { %6055 = vmatprep.mubr.msk.bf16.mxu1 %vm6924_vm0, %v8980_v1 }
  0x41   :  { %6056 = vmatmul.mubr.msk.bf16.gmra.mxu1 %vm207_vm1, %v6717_v12  ;;  %v6732_v12 = vld [vmem:[%s8967_s1 + $0xb8] sm:$0xff]  }
  0x42   :  { %6059 = vmatprep.mubr.msk.bf16.mxu1 %vm6924_vm0, %v8980_v1 }
  0x49   :  { %6060 = vmatmul.mubr.msk.bf16.gmra.mxu1 %vm207_vm1, %v6719_v13 }
  0x4a   :  { %6063 = vmatprep.mubr.msk.bf16.mxu1 %vm6924_vm0, %v8980_v1 }
  0x51   :  { %6064 = vmatmul.mubr.msk.bf16.gmra.mxu1 %vm207_vm1, %v6721_v14 }
  0x52   :  { %6067 = vmatprep.mubr.msk.bf16.mxu1 %vm6924_vm0, %v8980_v1 }
  0x59   :  { %6068 = vmatmul.mubr.msk.bf16.gmra.mxu1 %vm207_vm1, %v6723_v15  ;;  %v6749_v15 = vld [vmem:[%s8967_s1 + $0x14c] ss:$0 sps:$4 sm:$0xff]  }
  0x5a   :  { %6071 = vmatprep.mubr.msk.bf16.mxu1 %vm6924_vm0, %v8980_v1 }
  0x61   :  { %6072 = vmatmul.mubr.msk.bf16.gmra.mxu1 %vm207_vm1, %v6725_v16 }
  0x62   :  { %6075 = vmatprep.mubr.msk.bf16.mxu1 %vm6924_vm0, %v8980_v1 }
  0x69   :  { %6076 = vmatmul.mubr.msk.bf16.gmra.mxu1 %vm207_vm1, %v6727_v17 }
  0x6a   :  { %6147 = vmatprep.mubr.msk.bf16.mxu1 %vm6924_vm0, %v8980_v1 }
  0x74   :  { %v141_v18 = vpop.permute.xlu0 %140 }
  0x75   :  { %5968 = vmatpush3.bf16.msra.mxu0 %v141_v18  ;;  %v137_v20 = vpop.permute.xlu1 %136 }
  0x76   :  { %5969 = vmatprep.subr.bf16.mxu0 %v8980_v1 }
  0x78   :  { %v139_v19 = vpop.permute.xlu0 %138 }
  0x79   :  { %5970 = vmatpush3.bf16.msra.mxu0 %v139_v19  ;;  %v135_v22 = vpop.permute.xlu1 %134 }
  0x7a   :  { %5971 = vmatprep.subr.bf16.mxu0 %v8980_v1 }
  0x7c   :  { %v133_v21 = vpop.permute.xlu0 %132 }
  0x7d   :  { %5972 = vmatpush3.bf16.msra.mxu0 %v137_v20  ;;  %v131_v25 = vpop.permute.xlu1 %130  ;;  %v6734_v20 = vld [vmem:[%s8967_s1 + $0xc0] sm:$0xff]  }
  0x7e   :  { %5973 = vmatprep.subr.bf16.mxu0 %v8980_v1 }
  0x80   :  { %v606_v23 = vpop.permute.xlu0 %605 }
  0x81   :  { %5974 = vmatpush3.bf16.msra.mxu0 %v135_v22  ;;  %v604_v29 = vpop.permute.xlu1 %603 }
  0x82   :  { %5975 = vmatprep.subr.bf16.mxu0 %v8980_v1 }
  0x84   :  { %v602_v24 = vpop.permute.xlu0 %601 }
  0x85   :  { %5976 = vmatpush3.bf16.msra.mxu0 %v133_v21  ;;  %v600_v33 = vpop.permute.xlu1 %599 }
  0x86   :  { %5977 = vmatprep.subr.bf16.mxu0 %v8980_v1 }
  0x88   :  { %v598_v27 = vpop.permute.xlu0 %597 }
  0x89   :  { %5978 = vmatpush3.bf16.msra.mxu0 %v131_v25  ;;  %v596_v37 = vpop.permute.xlu1 %595  ;;  %v6736_v25 = vld [vmem:[%s8967_s1 + $0xc8] sm:$0xff]  }
  0x8a   :  { %6079 = vmatprep.subr.bf16.mxu0 %v8980_v1 }
  0x8c   :  { %5980 = vmatmul.mubr.msk.bf16.vlgmr.msra.gmra.mxu0 %vm207_vm1, %v6706_v26  ;;  %v879_v28 = vpop.permute.xlu0 %878 }
  0x8d   :  { %5983 = vmatprep.mubr.msk.bf16.mxu0 %vm6924_vm0, %v8980_v1  ;;  %6080 = vmatpush3.bf16.msra.mxu0 %v606_v23  ;;  %v1152_v54 = vpop.permute.xlu1 %1151 }
  0x8e   :  { %6136 = vmatpush3.bf16.msra.mxu1 %v879_v28  ;;  %6081 = vmatprep.subr.bf16.mxu0 %v8980_v1 }
  0x8f   :  { %6137 = vmatprep.subr.bf16.mxu1 %v8980_v1 }
  0x90   :  { %v877_v31 = vpop.permute.xlu0 %876 }
  0x91   :  { %6082 = vmatpush3.bf16.msra.mxu0 %v604_v29  ;;  %v1150_v59 = vpop.permute.xlu1 %1149 }
  0x92   :  { %6138 = vmatpush3.bf16.msra.mxu1 %v877_v31  ;;  %6083 = vmatprep.subr.bf16.mxu0 %v8980_v1 }
  0x93   :  { %6139 = vmatprep.subr.bf16.mxu1 %v8980_v1 }
  0x94   :  { %5984 = vmatmul.mubr.msk.bf16.gmra.mxu0 %vm207_vm1, %v6708_v30  ;;  %v875_v32 = vpop.permute.xlu0 %874  ;;  %v6738_v30 = vld [vmem:[%s8967_s1 + $0xd0] sm:$0xff]  }
  0x95   :  { %5987 = vmatprep.mubr.msk.bf16.mxu0 %vm6924_vm0, %v8980_v1  ;;  %6084 = vmatpush3.bf16.msra.mxu0 %v602_v24  ;;  %v1148_v2 = vpop.permute.xlu1 %1147 }
  0x96   :  { %6140 = vmatpush3.bf16.msra.mxu1 %v875_v32  ;;  %6085 = vmatprep.subr.bf16.mxu0 %v8980_v1 }
  0x97   :  { %6141 = vmatprep.subr.bf16.mxu1 %v8980_v1 }
  0x98   :  { %v873_v35 = vpop.permute.xlu0 %872 }
  0x99   :  { %6086 = vmatpush3.bf16.msra.mxu0 %v600_v33  ;;  %v1146_v8 = vpop.permute.xlu1 %1145 }
  0x9a   :  { %6142 = vmatpush3.bf16.msra.mxu1 %v873_v35  ;;  %6087 = vmatprep.subr.bf16.mxu0 %v8980_v1  ;;  %v6740_v35 = vld [vmem:[%s8967_s1 + $0xd8] sm:$0xff]  }
  0x9b   :  { %6143 = vmatprep.subr.bf16.mxu1 %v8980_v1 }
  0x9c   :  { %5988 = vmatmul.mubr.msk.bf16.gmra.mxu0 %vm207_vm1, %v6710_v34  ;;  %v871_v36 = vpop.permute.xlu0 %870 }
  0x9d   :  { %5991 = vmatprep.mubr.msk.bf16.mxu0 %vm6924_vm0, %v8980_v1  ;;  %6088 = vmatpush3.bf16.msra.mxu0 %v598_v27  ;;  %v1144_v13 = vpop.permute.xlu1 %1143 }
  0x9e   :  { %6144 = vmatpush3.bf16.msra.mxu1 %v871_v36  ;;  %6089 = vmatprep.subr.bf16.mxu0 %v8980_v1 }
  0x9f   :  { %6145 = vmatprep.subr.bf16.mxu1 %v8980_v1 }
  0xa0   :  { %v869_v39 = vpop.permute.xlu0 %868 }
  0xa1   :  { %6090 = vmatpush3.bf16.msra.mxu0 %v596_v37  ;;  %v1142_v18 = vpop.permute.xlu1 %1141 }
  0xa2   :  { %6146 = vmatpush3.bf16.msra.mxu1 %v869_v39  ;;  %6191 = vmatprep.subr.bf16.mxu0 %v8980_v1 }
  0xa4   :  { %5992 = vmatmul.mubr.msk.bf16.gmra.mxu0 %vm207_vm1, %v6712_v38 }
  0xa5   :  { %5995 = vmatprep.mubr.msk.bf16.mxu0 %vm6924_vm0, %v8980_v1  ;;  %6148 = vmatmul.mubr.msk.bf16.vlgmr.msra.gmra.mxu1 %vm207_vm1, %v6729_v40  ;;  %v6742_v40 = vld [vmem:[%s8967_s1 + $0xe0] sm:$0xff]  }
  0xa6   :  { %6151 = vmatprep.mubr.msk.bf16.mxu1 %vm6924_vm0, %v8980_v1 }
  0xac   :  { %5996 = vmatmul.mubr.msk.bf16.gmra.mxu0 %vm207_vm1, %v6714_v41 }
  0xad   :  { %5999 = vmatprep.mubr.msk.bf16.mxu0 %vm6924_vm0, %v8980_v1  ;;  %6152 = vmatmul.mubr.msk.bf16.gmra.mxu1 %vm207_vm1, %v6731_v42 }
  0xae   :  { %6155 = vmatprep.mubr.msk.bf16.mxu1 %vm6924_vm0, %v8980_v1 }
  0xb4   :  { %6000 = vmatmul.mubr.msk.bf16.gmra.mxu0 %vm207_vm1, %v6716_v43 }
  0xb5   :  { %6003 = vmatprep.mubr.msk.bf16.mxu0 %vm6924_vm0, %v8980_v1  ;;  %6156 = vmatmul.mubr.msk.bf16.gmra.mxu1 %vm207_vm1, %v6733_v44 }
  0xb6   :  { %6159 = vmatprep.mubr.msk.bf16.mxu1 %vm6924_vm0, %v8980_v1 }
  0xbc   :  { %6004 = vmatmul.mubr.msk.bf16.gmra.mxu0 %vm207_vm1, %v6718_v45  ;;  %v6744_v45 = vld [vmem:[%s8967_s1 + $0xe8] sm:$0xff]  }
  0xbd   :  { %6007 = vmatprep.mubr.msk.bf16.mxu0 %vm6924_vm0, %v8980_v1  ;;  %6160 = vmatmul.mubr.msk.bf16.gmra.mxu1 %vm207_vm1, %v6735_v46 }
  0xbe   :  { %6163 = vmatprep.mubr.msk.bf16.mxu1 %vm6924_vm0, %v8980_v1 }
  0xc4   :  { %6008 = vmatmul.mubr.msk.bf16.gmra.mxu0 %vm207_vm1, %v6720_v47 }
  0xc5   :  { %6011 = vmatprep.mubr.msk.bf16.mxu0 %vm6924_vm0, %v8980_v1  ;;  %6164 = vmatmul.mubr.msk.bf16.gmra.mxu1 %vm207_vm1, %v6737_v48 }
  0xc6   :  { %6167 = vmatprep.mubr.msk.bf16.mxu1 %vm6924_vm0, %v8980_v1 }
  0xcc   :  { %6012 = vmatmul.mubr.msk.bf16.gmra.mxu0 %vm207_vm1, %v6722_v49 }
  0xcd   :  { %6015 = vmatprep.mubr.msk.bf16.mxu0 %vm6924_vm0, %v8980_v1  ;;  %6168 = vmatmul.mubr.msk.bf16.gmra.mxu1 %vm207_vm1, %v6739_v50  ;;  %v6746_v50 = vld [vmem:[%s8967_s1 + $0xf0] sm:$0xff]  }
  0xce   :  { %6171 = vmatprep.mubr.msk.bf16.mxu1 %vm6924_vm0, %v8980_v1 }
  0xd4   :  { %6016 = vmatmul.mubr.msk.bf16.gmra.mxu0 %vm207_vm1, %v6724_v51 }
  0xd5   :  { %6019 = vmatprep.mubr.msk.bf16.mxu0 %vm6924_vm0, %v8980_v1  ;;  %6172 = vmatmul.mubr.msk.bf16.gmra.mxu1 %vm207_vm1, %v6741_v52 }
  0xd6   :  { %6175 = vmatprep.mubr.msk.bf16.mxu1 %vm6924_vm0, %v8980_v1 }
  0xd9   :  { %v7242_v56 = vpop.f32.mrf.mxu1 }
  0xdb   :  { %v6037_v57 = vpop.f32.mrf.mxu1 }
  0xdc   :  { %6020 = vmatmul.mubr.msk.bf16.gmra.mxu0 %vm207_vm1, %v6726_v53  ;;  %v6750_v57 = vld [vmem:[%s8967_s1 + $0x150] sm:$0xff]  }
  0xdd   :  { %6091 = vmatprep.mubr.msk.bf16.mxu0 %vm6924_vm0, %v8980_v1  ;;  %6176 = vmatmul.mubr.msk.bf16.gmra.mxu1 %vm207_vm1, %v6743_v55  ;;  %v7248_v58 = vpop.f32.mrf.mxu1  ;;  %v6748_v55 = vld [vmem:[%s8967_s1 + $0xf8] ss:$0 sps:$4 sm:$0xff]  }
  0xde   :  { %6179 = vmatprep.mubr.msk.bf16.mxu1 %vm6924_vm0, %v8980_v1 }
  0xdf   :  { %v6038_v60 = vpop.f32.mrf.mxu1 }
  0xe0   :  { %v6752_v60 = vld [vmem:[%s8967_s1 + $0x160] sm:$0xff]  }
  0xe1   :  { %v7255_v62 = vpop.f32.mrf.mxu1 }
  0xe3   :  { %v6041_v0 = vpop.f32.mrf.mxu1 }
  0xe4   :  { %6092 = vmatmul.mubr.msk.bf16.vlgmr.msra.gmra.mxu0 %vm207_vm1, %v6728_v61 }
  0xe5   :  { %6095 = vmatprep.mubr.msk.bf16.mxu0 %vm6924_vm0, %v8980_v1  ;;  %6192 = vmatpush3.bf16.msra.mxu0 %v1152_v54  ;;  %v7263_v3 = vpop.f32.mrf.mxu1 }
  0xe6   :  { %6180 = vmatmul.mubr.msk.bf16.gmra.mxu1 %vm207_vm1, %v6745_v63  ;;  %6193 = vmatprep.subr.bf16.mxu0 %v8980_v1 }
  0xe7   :  { %6183 = vmatprep.mubr.msk.bf16.mxu1 %vm6924_vm0, %v8980_v1  ;;  %v6042_v4 = vpop.f32.mrf.mxu1 }
  0xe9   :  { %6194 = vmatpush3.bf16.msra.mxu0 %v1150_v59  ;;  %v7272_v6 = vpop.f32.mrf.mxu1  ;;  %v6751_v59 = vld [vmem:[%s8967_s1 + $0x158] sm:$0xff]  }
  0xea   :  { %6195 = vmatprep.subr.bf16.mxu0 %v8980_v1 }
  0xeb   :  { %v6045_v9 = vpop.f32.mrf.mxu1 }
  0xec   :  { %6096 = vmatmul.mubr.msk.bf16.gmra.mxu0 %vm207_vm1, %v6730_v5  ;;  %v6754_v9 = vld [vmem:[%s8967_s1 + $0x170] sm:$0xff]  }
  0xed   :  { %6099 = vmatprep.mubr.msk.bf16.mxu0 %vm6924_vm0, %v8980_v1  ;;  %6196 = vmatpush3.bf16.msra.mxu0 %v1148_v2  ;;  %v7281_v10 = vpop.f32.mrf.mxu1  ;;  %v6753_v2 = vld [vmem:[%s8967_s1 + $0x168] sm:$0xff]  }
  0xee   :  { %6184 = vmatmul.mubr.msk.bf16.gmra.mxu1 %vm207_vm1, %v6747_v7  ;;  %6197 = vmatprep.subr.bf16.mxu0 %v8980_v1 }
  0xef   :  { %6187 = vmatprep.mubr.msk.bf16.mxu1 %vm6924_vm0, %v8980_v1  ;;  %v6046_v11 = vpop.f32.mrf.mxu1 }
  0xf1   :  { %6198 = vmatpush3.bf16.msra.mxu0 %v1146_v8  ;;  %v7290_v14 = vpop.f32.mrf.mxu1 }
  0xf2   :  { %6199 = vmatprep.subr.bf16.mxu0 %v8980_v1 }
  0xf3   :  { %v6049_v16 = vpop.f32.mrf.mxu1 }
  0xf4   :  { %6100 = vmatmul.mubr.msk.bf16.gmra.mxu0 %vm207_vm1, %v6732_v12  ;;  %v6755_v16 = vld [vmem:[%s8967_s1 + $0x178] sm:$0xff]  }
  0xf5   :  { %6103 = vmatprep.mubr.msk.bf16.mxu0 %vm6924_vm0, %v8980_v1  ;;  %6200 = vmatpush3.bf16.msra.mxu0 %v1144_v13  ;;  %v7299_v17 = vpop.f32.mrf.mxu1 }
  0xf6   :  { %6188 = vmatmul.mubr.msk.bf16.gmra.mxu1 %vm207_vm1, %v6749_v15  ;;  %6201 = vmatprep.subr.bf16.mxu0 %v8980_v1 }
  0xf7   :  { %v6050_v19 = vpop.f32.mrf.mxu1 }
  0xf9   :  { %6202 = vmatpush3.bf16.msra.mxu0 %v1142_v18  ;;  %v7306_v21 = vpop.f32.mrf.mxu1 }
  0xfb   :  { %v6053_v22 = vpop.f32.mrf.mxu1 }
  0xfc   :  { %6104 = vmatmul.mubr.msk.bf16.gmra.mxu0 %vm207_vm1, %v6734_v20 }
  0xfd   :  { %6107 = vmatprep.mubr.msk.bf16.mxu0 %vm6924_vm0, %v8980_v1  ;;  %v7311_v23 = vpop.f32.mrf.mxu1 }
  0xff   :  { %v6054_v24 = vpop.f32.mrf.mxu1 }
 0x101   :  { %v7316_v26 = vpop.f32.mrf.mxu1 }
 0x103   :  { %v6057_v27 = vpop.f32.mrf.mxu1 }
 0x104   :  { %6108 = vmatmul.mubr.msk.bf16.gmra.mxu0 %vm207_vm1, %v6736_v25  ;;  %v6756_v27 = vld [vmem:[%s8967_s1 + $0x180] sm:$0xff]  }
 0x105   :  { %6111 = vmatprep.mubr.msk.bf16.mxu0 %vm6924_vm0, %v8980_v1  ;;  %v7321_v28 = vpop.f32.mrf.mxu1 }
 0x107   :  { %v6058_v29 = vpop.f32.mrf.mxu1 }
 0x109   :  { %v7326_v31 = vpop.f32.mrf.mxu1 }
 0x10b   :  { %v6061_v32 = vpop.f32.mrf.mxu1 }
 0x10c   :  { %6112 = vmatmul.mubr.msk.bf16.gmra.mxu0 %vm207_vm1, %v6738_v30 }
 0x10d   :  { %6115 = vmatprep.mubr.msk.bf16.mxu0 %vm6924_vm0, %v8980_v1  ;;  %v7331_v33 = vpop.f32.mrf.mxu1 }
 0x10f   :  { %v6062_v34 = vpop.f32.mrf.mxu1 }
 0x111   :  { %v7336_v36 = vpop.f32.mrf.mxu1 }
 0x113   :  { %v6065_v37 = vpop.f32.mrf.mxu1 }
 0x114   :  { %6116 = vmatmul.mubr.msk.bf16.gmra.mxu0 %vm207_vm1, %v6740_v35 }
 0x115   :  { %6119 = vmatprep.mubr.msk.bf16.mxu0 %vm6924_vm0, %v8980_v1  ;;  %v7341_v38 = vpop.f32.mrf.mxu1 }
 0x117   :  { %v6066_v39 = vpop.f32.mrf.mxu1 }
 0x119   :  { %v7346_v41 = vpop.f32.mrf.mxu1 }
 0x11b   :  { %v6069_v42 = vpop.f32.mrf.mxu1 }
 0x11c   :  { %6120 = vmatmul.mubr.msk.bf16.gmra.mxu0 %vm207_vm1, %v6742_v40  ;;  %v6757_v42 = vld [vmem:[%s8967_s1 + $0x188] sm:$0xff]  }
 0x11d   :  { %6123 = vmatprep.mubr.msk.bf16.mxu0 %vm6924_vm0, %v8980_v1  ;;  %v7351_v43 = vpop.f32.mrf.mxu1 }
 0x11e   :  { %8985 = vst [vmem:[#allocation2_spill] sm:$0xff] %v7351_v43 }
 0x11f   :  { %v6070_v44 = vpop.f32.mrf.mxu1 }
 0x121   :  { %v7356_v46 = vpop.f32.mrf.mxu1 }
 0x122   :  { %8986 = vst [vmem:[#allocation3_spill] sm:$0xff] %v7356_v46 }
 0x123   :  { %v6073_v47 = vpop.f32.mrf.mxu1 }
 0x124   :  { %6124 = vmatmul.mubr.msk.bf16.gmra.mxu0 %vm207_vm1, %v6744_v45 }
 0x125   :  { %6127 = vmatprep.mubr.msk.bf16.mxu0 %vm6924_vm0, %v8980_v1  ;;  %v7361_v48 = vpop.f32.mrf.mxu1 }
 0x126   :  { %8987 = vst [vmem:[#allocation4_spill] sm:$0xff] %v7361_v48 }
 0x127   :  { %v6074_v49 = vpop.f32.mrf.mxu1 }
 0x129   :  { %v7366_v51 = vpop.f32.mrf.mxu1 }
 0x12a   :  { %8988 = vst [vmem:[#allocation5_spill] sm:$0xff] %v7366_v51 }
 0x12b   :  { %v6077_v52 = vpop.f32.mrf.mxu1 }
 0x12c   :  { %6128 = vmatmul.mubr.msk.bf16.gmra.mxu0 %vm207_vm1, %v6746_v50 }
 0x12d   :  { %6131 = vmatprep.mubr.msk.bf16.mxu0 %vm6924_vm0, %v8980_v1  ;;  %v570_v53 = vpop.f32.mrf.mxu1 }
 0x12f   :  { %v6078_v54 = vpop.f32.mrf.mxu1 }
 0x134   :  { %6132 = vmatmul.mubr.msk.bf16.gmra.mxu0 %vm207_vm1, %v6748_v55  ;;  %v6758_v55 = vld [vmem:[%s8967_s1 + $0x190] sm:$0xff]  }
 0x135   :  { %6203 = vmatprep.mubr.msk.bf16.mxu0 %vm6924_vm0, %v8980_v1 }
 0x13c   :  { %6204 = vmatmul.mubr.msk.bf16.vlgmr.msra.gmra.mxu0 %vm207_vm1, %v6750_v57 }
 0x13d   :  { %6207 = vmatprep.mubr.msk.bf16.mxu0 %vm6924_vm0, %v8980_v1 }
 0x144   :  { %6208 = vmatmul.mubr.msk.bf16.gmra.mxu0 %vm207_vm1, %v6751_v59 }
 0x145   :  { %6211 = vmatprep.mubr.msk.bf16.mxu0 %vm6924_vm0, %v8980_v1 }
 0x14c   :  { %v7392_v61 = vpop.f32.mrf.mxu0  ;;  %6212 = vmatmul.mubr.msk.bf16.gmra.mxu0 %vm207_vm1, %v6752_v60 }
 0x14d   :  { %6215 = vmatprep.mubr.msk.bf16.mxu0 %vm6924_vm0, %v8980_v1 }
 0x14e   :  { %v5981_v63 = vpop.f32.mrf.mxu0 }
 0x150   :  { %v7397_v0 = vpop.f32.mrf.mxu0 }
 0x152   :  { %v5982_v4 = vpop.f32.mrf.mxu0 }
 0x154   :  { %v7402_v5 = vpop.f32.mrf.mxu0  ;;  %6216 = vmatmul.mubr.msk.bf16.gmra.mxu0 %vm207_vm1, %v6753_v2 }
 0x155   :  { %6219 = vmatprep.mubr.msk.bf16.mxu0 %vm6924_vm0, %v8980_v1 }
 0x156   :  { %v5985_v7 = vpop.f32.mrf.mxu0 }
 0x158   :  { %v7407_v8 = vpop.f32.mrf.mxu0 }
 0x15a   :  { %v5986_v11 = vpop.f32.mrf.mxu0 }
 0x15b   :  { %v6759_v11 = vld [vmem:[%s8967_s1 + $0x198] sm:$0xff]  }
 0x15c   :  { %v7412_v12 = vpop.f32.mrf.mxu0  ;;  %6220 = vmatmul.mubr.msk.bf16.gmra.mxu0 %vm207_vm1, %v6754_v9 }
 0x15d   :  { %6223 = vmatprep.mubr.msk.bf16.mxu0 %vm6924_vm0, %v8980_v1 }
 0x15e   :  { %v5989_v13 = vpop.f32.mrf.mxu0 }
 0x160   :  { %v7417_v15 = vpop.f32.mrf.mxu0 }
 0x162   :  { %v5990_v18 = vpop.f32.mrf.mxu0 }
 0x164   :  { %v7422_v19 = vpop.f32.mrf.mxu0  ;;  %6224 = vmatmul.mubr.msk.bf16.gmra.mxu0 %vm207_vm1, %v6755_v16 }
 0x165   :  { %6227 = vmatprep.mubr.msk.bf16.mxu0 %vm6924_vm0, %v8980_v1  ;;  %v7427_v20 = vpop.f32.mrf.mxu1 }
 0x166   :  { %v5993_v22 = vpop.f32.mrf.mxu0 }
 0x167   :  { %v6149_v24 = vpop.f32.mrf.mxu1 }
 0x168   :  { %v7429_v25 = vpop.f32.mrf.mxu0 }
 0x169   :  { %v7434_v29 = vpop.f32.mrf.mxu1 }
 0x16a   :  { %v5994_v30 = vpop.f32.mrf.mxu0 }
 0x16b   :  { %v6150_v32 = vpop.f32.mrf.mxu1 }
 0x16c   :  { %v7436_v34 = vpop.f32.mrf.mxu0  ;;  %6228 = vmatmul.mubr.msk.bf16.gmra.mxu0 %vm207_vm1, %v6756_v27 }
 0x16d   :  { %6231 = vmatprep.mubr.msk.bf16.mxu0 %vm6924_vm0, %v8980_v1  ;;  %v7441_v35 = vpop.f32.mrf.mxu1 }
 0x16e   :  { %v5997_v37 = vpop.f32.mrf.mxu0 }
 0x16f   :  { %v6153_v39 = vpop.f32.mrf.mxu1  ;;  %v6760_v37 = vld [vmem:[%s8967_s1 + $0x1a0] ss:$0 sps:$4 sm:$0xff]   ;;  %s6929_s1 = smov 120  }
 0x170   :  { %v7443_v40 = vpop.f32.mrf.mxu0 }
 0x171   :  { %v7448_v44 = vpop.f32.mrf.mxu1 }
 0x172   :  { %v5998_v45 = vpop.f32.mrf.mxu0 }
 0x173   :  { %v6154_v47 = vpop.f32.mrf.mxu1 }
 0x174   :  { %v7450_v49 = vpop.f32.mrf.mxu0  ;;  %6232 = vmatmul.mubr.msk.bf16.gmra.mxu0 %vm207_vm1, %v6757_v42 }
 0x175   :  { %6235 = vmatprep.mubr.msk.bf16.mxu0 %vm6924_vm0, %v8980_v1  ;;  %v7455_v50 = vpop.f32.mrf.mxu1 }
 0x176   :  { %v6001_v52 = vpop.f32.mrf.mxu0 }
 0x177   :  { %v6157_v53 = vpop.f32.mrf.mxu1 }
 0x178   :  { %v7457_v54 = vpop.f32.mrf.mxu0 }
 0x179   :  { %v7462_v57 = vpop.f32.mrf.mxu1 }
 0x17a   :  { %v6002_v59 = vpop.f32.mrf.mxu0 }
 0x17b   :  { %v6158_v60 = vpop.f32.mrf.mxu1 }
 0x17c   :  { %v7464_v63 = vpop.f32.mrf.mxu0  ;;  %6236 = vmatmul.mubr.msk.bf16.gmra.mxu0 %vm207_vm1, %v6758_v55 }
 0x17d   :  { %6239 = vmatprep.mubr.msk.bf16.mxu0 %vm6924_vm0, %v8980_v1  ;;  %v7469_v2 = vpop.f32.mrf.mxu1 }
 0x17e   :  { %v6005_v4 = vpop.f32.mrf.mxu0 }
 0x17f   :  { %v6161_v7 = vpop.f32.mrf.mxu1 }
 0x180   :  { %v7471_v9 = vpop.f32.mrf.mxu0 }
 0x181   :  { %v7476_v13 = vpop.f32.mrf.mxu1 }
 0x182   :  { %v6006_v16 = vpop.f32.mrf.mxu0 }
 0x183   :  { %v6162_v18 = vpop.f32.mrf.mxu1 }
 0x184   :  { %v7478_v22 = vpop.f32.mrf.mxu0  ;;  %6240 = vmatmul.mubr.msk.bf16.gmra.mxu0 %vm207_vm1, %v6759_v11 }
 0x185   :  { %6243 = vmatprep.mubr.msk.bf16.mxu0 %vm6924_vm0, %v8980_v1  ;;  %v7483_v24 = vpop.f32.mrf.mxu1 }
 0x186   :  { %v6009_v27 = vpop.f32.mrf.mxu0 }
 0x187   :  { %v6165_v30 = vpop.f32.mrf.mxu1 }
 0x188   :  { %v7485_v32 = vpop.f32.mrf.mxu0 }
 0x189   :  { %v7490_v39 = vpop.f32.mrf.mxu1 }
 0x18a   :  { %v6010_v42 = vpop.f32.mrf.mxu0 }
 0x18b   :  { %v6166_v45 = vpop.f32.mrf.mxu1 }
 0x18c   :  { %v7492_v47 = vpop.f32.mrf.mxu0  ;;  %6244 = vmatmul.mubr.msk.bf16.gmra.mxu0 %vm207_vm1, %v6760_v37 }
 0x18d   :  { %v7495_v52 = vpop.f32.mrf.mxu1 }
 0x18e   :  { %v6013_v53 = vpop.f32.mrf.mxu0 }
 0x18f   :  { %v6169_v55 = vpop.f32.mrf.mxu1 }
 0x190   :  { %v7497_v59 = vpop.f32.mrf.mxu0 }
 0x191   :  { %v7499_v60 = vpop.f32.mrf.mxu1 }
 0x192   :  { %v6014_v4 = vpop.f32.mrf.mxu0 }
 0x193   :  { %v6170_v7 = vpop.f32.mrf.mxu1 }
 0x194   :  { %v7501_v11 = vpop.f32.mrf.mxu0 }
 0x195   :  { %8989 = vst [vmem:[#allocation6_spill] sm:$0xff] %v7501_v11  ;;  %v7503_v16 = vpop.f32.mrf.mxu1 }
 0x196   :  { %v6017_v18 = vpop.f32.mrf.mxu0 }
 0x197   :  { %v6173_v27 = vpop.f32.mrf.mxu1  ;;  %v488_v18 = vadd.f32 %v7242_v56, %v7392_v61  ;;  %v496_v56 = vadd.f32 %v7255_v62, %v7402_v5  ;;  %v504_v5 = vadd.f32 %v7272_v6, %v7412_v12  ;;  %v512_v12 = vadd.f32 %v7290_v14, %v7422_v19 }
 0x198   :  { %v7505_v30 = vpop.f32.mrf.mxu0 }
 0x199   :  { %8990 = vst [vmem:[#allocation7_spill] sm:$0xff] %v7505_v30  ;;  %v7507_v42 = vpop.f32.mrf.mxu1 }
 0x19a   :  { %v6018_v37 = vpop.f32.mrf.mxu0 }
 0x19b   :  { %v6174_v45 = vpop.f32.mrf.mxu1  ;;  %v491_v37 = vadd.f32 %v7248_v58, %v7397_v0  ;;  %v499_v0 = vadd.f32 %v7263_v3, %v7407_v8  ;;  %v507_v8 = vadd.f32 %v7281_v10, %v7417_v15  ;;  %v515_v10 = vadd.f32 %v7299_v17, %v7429_v25 }
 0x19c   :  { %v7509_v53 = vpop.f32.mrf.mxu0 }
 0x19d   :  { %8991 = vst [vmem:[#allocation8_spill] sm:$0xff] %v7509_v53  ;;  %v7511_v55 = vpop.f32.mrf.mxu1 }
 0x19e   :  { %v6021_v1 = vpop.f32.mrf.mxu0 }
 0x19f   :  { %v6177_v51 = vpop.f32.mrf.mxu1 }
 0x1a0   :  { %v358_v4 = vpop.f32.mrf.mxu0 }
 0x1a1   :  { %v7513_v7 = vpop.f32.mrf.mxu1 }
 0x1a2   :  { %v6022_v48 = vpop.f32.mrf.mxu0 }
 0x1a3   :  { %v6178_v27 = vpop.f32.mrf.mxu1 }
 0x1a4   :  { %v739_v46 = vpop.f32.mrf.mxu0 }
 0x1a5   :  { %v825_v30 = vadd.f32 %v739_v46, %v488_v18 }
 0x1a6   :  { %v6093_v11 = vpop.f32.mrf.mxu0  ;;  %v7517_v43 = vpop.f32.mrf.mxu1 }
 0x1a7   :  { %v7522_v45 = vadd.f32 %v7427_v20, %v825_v30 }
 0x1a8   :  { %v742_v1 = vpop.f32.mrf.mxu0  ;;  %v6181_v51 = vpop.f32.mrf.mxu1 }
 0x1a9   :  { %v826_v4 = vadd.f32 %v742_v1, %v491_v37 }
 0x1aa   :  { %v6094_v53 = vpop.f32.mrf.mxu0  ;;  %v7524_v48 = vpop.f32.mrf.mxu1 }
 0x1ab   :  { %v7529_v46 = vadd.f32 %v7434_v29, %v826_v4 }
 0x1ac   :  { %v747_v61 = vpop.f32.mrf.mxu0  ;;  %v6182_v11 = vpop.f32.mrf.mxu1 }
 0x1ad   :  { %v827_v18 = vadd.f32 %v747_v61, %v496_v56 }
 0x1ae   :  { %v6097_v27 = vpop.f32.mrf.mxu0  ;;  %v7531_v58 = vpop.f32.mrf.mxu1 }
 0x1af   :  { %v7536_v20 = vadd.f32 %v7441_v35, %v827_v18 }
 0x1b0   :  { %v750_v30 = vpop.f32.mrf.mxu0  ;;  %v6185_v53 = vpop.f32.mrf.mxu1 }
 0x1b1   :  { %v828_v37 = vadd.f32 %v750_v30, %v499_v0 }
 0x1b2   :  { %v6098_v1 = vpop.f32.mrf.mxu0  ;;  %v7538_v62 = vpop.f32.mrf.mxu1 }
 0x1b3   :  { %v7543_v29 = vadd.f32 %v7448_v44, %v828_v37 }
 0x1b4   :  { %v755_v51 = vpop.f32.mrf.mxu0  ;;  %v6186_v4 = vpop.f32.mrf.mxu1 }
 0x1b5   :  { %v829_v56 = vadd.f32 %v755_v51, %v504_v5  ;;  %v520_v4 = vadd.f32 %v7306_v21, %v7436_v34 }
 0x1b6   :  { %v6101_v61 = vpop.f32.mrf.mxu0  ;;  %v7545_v3 = vpop.f32.mrf.mxu1 }
 0x1b7   :  { %v7550_v35 = vadd.f32 %v7455_v50, %v829_v56  ;;  %v523_v61 = vadd.f32 %v7311_v23, %v7443_v40 }
 0x1b8   :  { %v758_v11 = vpop.f32.mrf.mxu0  ;;  %v6189_v18 = vpop.f32.mrf.mxu1 }
 0x1b9   :  { %v830_v27 = vadd.f32 %v758_v11, %v507_v8  ;;  %v528_v11 = vadd.f32 %v7316_v26, %v7450_v49 }
 0x1ba   :  { %v6102_v0 = vpop.f32.mrf.mxu0  ;;  %v1095_v6 = vpop.f32.mrf.mxu1 }
 0x1bb   :  { %v7555_v44 = vadd.f32 %v7462_v57, %v830_v27  ;;  %v531_v27 = vadd.f32 %v7321_v28, %v7457_v54  ;;  %v536_v6 = vadd.f32 %v7326_v31, %v7464_v63 }
 0x1bc   :  { %v763_v30 = vpop.f32.mrf.mxu0  ;;  %v6190_v53 = vpop.f32.mrf.mxu1 }
 0x1bd   :  { %v831_v37 = vadd.f32 %v763_v30, %v512_v12  ;;  %v539_v30 = vadd.f32 %v7331_v33, %v7471_v9 }
 0x1be   :  { %v6105_v1 = vpop.f32.mrf.mxu0 }
 0x1bf   :  { %v7560_v15 = vadd.f32 %v7469_v2, %v831_v37  ;;  %v544_v37 = vadd.f32 %v7336_v36, %v7478_v22 }
 0x1c0   :  { %v766_v50 = vpop.f32.mrf.mxu0 }
 0x1c1   :  { %v832_v5 = vadd.f32 %v766_v50, %v515_v10  ;;  %v547_v10 = vadd.f32 %v7341_v38, %v7485_v32 }
 0x1c2   :  { %v6106_v51 = vpop.f32.mrf.mxu0 }
 0x1c3   :  { %v7565_v14 = vadd.f32 %v7476_v13, %v832_v5  ;;  %v552_v5 = vadd.f32 %v7346_v41, %v7492_v47 }
 0x1c4   :  { %v771_v19 = vpop.f32.mrf.mxu0 }
 0x1c5   :  { %v833_v57 = vadd.f32 %v771_v19, %v520_v4  ;;  %v8992_v4 = vld [vmem:[#allocation2_spill] sm:$0xff] }
 0x1c6   :  { %v6109_v56 = vpop.f32.mrf.mxu0  ;;  %v555_v19 = vadd.f32 %v8992_v4, %v7497_v59 }
 0x1c7   :  { %v7570_v17 = vadd.f32 %v7483_v24, %v833_v57  ;;  %v8993_v56 = vld [vmem:[#allocation6_spill] sm:$0xff] }
 0x1c8   :  { %v774_v25 = vpop.f32.mrf.mxu0 }
 0x1c9   :  { %v834_v2 = vadd.f32 %v774_v25, %v523_v61  ;;  %v8994_v61 = vld [vmem:[#allocation3_spill] sm:$0xff] }
 0x1ca   :  { %v6110_v8 = vpop.f32.mrf.mxu0  ;;  %v560_v25 = vadd.f32 %v8994_v61, %v8993_v56 }
 0x1cb   :  { %v7575_v21 = vadd.f32 %v7490_v39, %v834_v2  ;;  %v8995_v8 = vld [vmem:[#allocation7_spill] sm:$0xff] }
 0x1cc   :  { %v779_v34 = vpop.f32.mrf.mxu0 }
 0x1cd   :  { %v835_v13 = vadd.f32 %v779_v34, %v528_v11  ;;  %v8996_v11 = vld [vmem:[#allocation4_spill] sm:$0xff] }
 0x1ce   :  { %v6113_v18 = vpop.f32.mrf.mxu0  ;;  %v563_v34 = vadd.f32 %v8996_v11, %v8995_v8 }
 0x1cf   :  { %v7580_v23 = vadd.f32 %v7495_v52, %v835_v13 }
 0x1d0   :  { %v782_v40 = vpop.f32.mrf.mxu0 }
 0x1d1   :  { %v836_v24 = vadd.f32 %v782_v40, %v531_v27  ;;  %v8997_v27 = vld [vmem:[#allocation8_spill] sm:$0xff]  ;;  %v8998_v40 = vld [vmem:[#allocation5_spill] sm:$0xff] }
 0x1d2   :  { %v6114_v0 = vpop.f32.mrf.mxu0 }
 0x1d3   :  { %v7585_v26 = vadd.f32 %v7499_v60, %v836_v24  ;;  %v568_v24 = vadd.f32 %v8998_v40, %v8997_v27 }
 0x1d4   :  { %v787_v49 = vpop.f32.mrf.mxu0 }
 0x1d5   :  { %v837_v39 = vadd.f32 %v787_v49, %v536_v6 }
 0x1d6   :  { %v6117_v12 = vpop.f32.mrf.mxu0 }
 0x1d7   :  { %v7590_v28 = vadd.f32 %v7503_v16, %v837_v39 }
 0x1d8   :  { %v790_v54 = vpop.f32.mrf.mxu0 }
 0x1d9   :  { %v838_v52 = vadd.f32 %v790_v54, %v539_v30 }
 0x1da   :  { %v6118_v53 = vpop.f32.mrf.mxu0 }
 0x1db   :  { %v7595_v31 = vadd.f32 %v7507_v42, %v838_v52 }
 0x1dc   :  { %v795_v63 = vpop.f32.mrf.mxu0 }
 0x1dd   :  { %v839_v60 = vadd.f32 %v795_v63, %v544_v37 }
 0x1de   :  { %v6121_v1 = vpop.f32.mrf.mxu0 }
 0x1df   :  { %v7600_v33 = vadd.f32 %v7511_v55, %v839_v60 }
 0x1e0   :  { %v798_v9 = vpop.f32.mrf.mxu0 }
 0x1e1   :  { %v840_v16 = vadd.f32 %v798_v9, %v547_v10 }
 0x1e2   :  { %v6122_v50 = vpop.f32.mrf.mxu0 }
 0x1e3   :  { %v7605_v36 = vadd.f32 %v7513_v7, %v840_v16 }
 0x1e4   :  { %v803_v22 = vpop.f32.mrf.mxu0 }
 0x1e5   :  { %v841_v42 = vadd.f32 %v803_v22, %v552_v5 }
 0x1e6   :  { %v6125_v51 = vpop.f32.mrf.mxu0 }
 0x1e7   :  { %v7610_v38 = vadd.f32 %v7517_v43, %v841_v42 }
 0x1e8   :  { %v806_v32 = vpop.f32.mrf.mxu0 }
 0x1e9   :  { %v842_v55 = vadd.f32 %v806_v32, %v555_v19 }
 0x1ea   :  { %v6126_v57 = vpop.f32.mrf.mxu0 }
 0x1eb   :  { %v7615_v41 = vadd.f32 %v7524_v48, %v842_v55 }
 0x1ec   :  { %v811_v47 = vpop.f32.mrf.mxu0 }
 0x1ed   :  { %v843_v7 = vadd.f32 %v811_v47, %v560_v25 }
 0x1ee   :  { %v6129_v2 = vpop.f32.mrf.mxu0 }
 0x1ef   :  { %v7620_v59 = vadd.f32 %v7531_v58, %v843_v7 }
 0x1f0   :  { %v814_v43 = vpop.f32.mrf.mxu0 }
 0x1f1   :  { %v844_v13 = vadd.f32 %v814_v43, %v563_v34 }
 0x1f2   :  { %v6130_v18 = vpop.f32.mrf.mxu0 }
 0x1f3   :  { %v7625_v0 = vadd.f32 %v7538_v62, %v844_v13  ;;  %v8982_v18 = vmov 0  }
 0x1f4   :  { %v819_v48 = vpop.f32.mrf.mxu0  ;;  %1593 = vmatprep.subr.bf16.mxu1 %v8982_v18  ;;  %6648 = vset.pattern.permute.xlu1 %v8982_v18 }
 0x1f5   :  { %v845_v6 = vadd.f32 %v819_v48, %v568_v24  ;;  %6649 = vset.pattern.permute.xlu0 %v8982_v18 }
 0x1f6   :  { %v6133_v49 = vpop.f32.mrf.mxu0 }
 0x1f7   :  { %v7628_v39 = vadd.f32 %v7545_v3, %v845_v6 }
 0x1f8   :  { %v822_v12 = vpop.f32.mrf.mxu0 }
 0x1fa   :  { %v6134_v30 = vpop.f32.mrf.mxu0 }
 0x1fc   :  { %v1285_v54 = vpop.f32.mrf.mxu0 }
 0x1fd   :  { %v7631_v58 = vadd.f32 %v1285_v54, %v7522_v45 }
 0x1fe   :  { %v6205_v52 = vpop.f32.mrf.mxu0 }
 0x200   :  { %v1288_v53 = vpop.f32.mrf.mxu0 }
 0x201   :  { %v7666_v6 = vadd.f32 %v1288_v53, %v7529_v46 }
 0x202   :  { %v6206_v37 = vpop.f32.mrf.mxu0 }
 0x204   :  { %v1293_v63 = vpop.f32.mrf.mxu0 }
 0x205   :  { %v7634_v60 = vadd.f32 %v1293_v63, %v7536_v20 }
 0x206   :  { %v6209_v62 = vpop.f32.mrf.mxu0 }
 0x208   :  { %v1296_v1 = vpop.f32.mrf.mxu0 }
 0x20a   :  { %v6210_v10 = vpop.f32.mrf.mxu0 }
 0x20c   :  { %v1301_v9 = vpop.f32.mrf.mxu0 }
 0x20e   :  { %v6213_v16 = vpop.f32.mrf.mxu0 }
 0x210   :  { %v1304_v3 = vpop.f32.mrf.mxu0 }
 0x212   :  { %v6214_v50 = vpop.f32.mrf.mxu0 }
 0x214   :  { %v1309_v5 = vpop.f32.mrf.mxu0 }
 0x215   :  { %v7680_v53 = vadd.f32 %v1309_v5, %v7560_v15 }
 0x216   :  { %v6217_v22 = vpop.f32.mrf.mxu0 }
 0x218   :  { %v1312_v42 = vpop.f32.mrf.mxu0 }
 0x219   :  { %v7677_v46 = vadd.f32 %v1312_v42, %v7565_v14 }
 0x21a   :  { %v6218_v51 = vpop.f32.mrf.mxu0 }
 0x21b   :  { %v6618_v37 = vpack.i.bf16 %v7677_v46, %v7680_v53 }
 0x21c   :  { %v1317_v45 = vpop.f32.mrf.mxu0 }
 0x21d   :  { %v7648_v13 = vadd.f32 %v1317_v45, %v7570_v17  ;;  %v7660_v17 = vadd.f32 %v1301_v9, %v7550_v35 }
 0x21e   :  { %v6221_v4 = vpop.f32.mrf.mxu0 }
 0x220   :  { %v1320_v19 = vpop.f32.mrf.mxu0 }
 0x221   :  { %v7643_v11 = vadd.f32 %v1320_v19, %v7575_v21  ;;  %v7655_v21 = vadd.f32 %v1304_v3, %v7555_v44 }
 0x222   :  { %v6222_v32 = vpop.f32.mrf.mxu0 }
 0x223   :  { %v6623_v44 = vpack.i.bf16 %v7655_v21, %v7660_v17 }
 0x224   :  { %v1325_v55 = vpop.f32.mrf.mxu0 }
 0x225   :  { %v1381_v35 = vadd.f32 %v1325_v55, %v7580_v23 }
 0x226   :  { %v6225_v57 = vpop.f32.mrf.mxu0 }
 0x228   :  { %v1328_v56 = vpop.f32.mrf.mxu0 }
 0x229   :  { %v1382_v49 = vadd.f32 %v1328_v56, %v7585_v26  ;;  %v7685_v26 = vadd.f32 %v1296_v1, %v7543_v29 }
 0x22a   :  { %v6226_v20 = vpop.f32.mrf.mxu0 }
 0x22b   :  { %v6608_v54 = vpack.i.bf16 %v1382_v49, %v1381_v35  ;;  %v6628_v62 = vpack.i.bf16 %v7685_v26, %v7634_v60 }
 0x22c   :  { %v1333_v61 = vpop.f32.mrf.mxu0 }
 0x22d   :  { %v7637_v7 = vadd.f32 %v1333_v61, %v7590_v28 }
 0x22e   :  { %v6229_v25 = vpop.f32.mrf.mxu0 }
 0x230   :  { %v1336_v47 = vpop.f32.mrf.mxu0 }
 0x231   :  { %v7640_v2 = vadd.f32 %v1336_v47, %v7595_v31  ;;  %v6613_v31 = vpack.i.bf16 %v7643_v11, %v7648_v13 }
 0x232   :  { %v6230_v8 = vpop.f32.mrf.mxu0 }
 0x233   :  { %v6603_v34 = vpack.i.bf16 %v7640_v2, %v7637_v7 }
 0x234   :  { %v1341_v43 = vpop.f32.mrf.mxu0 }
 0x235   :  { %6604 = vrot.lane.b32.xlu1 %v6603_v34, %s6923_s29  ;;  %v1385_v40 = vadd.f32 %v1341_v43, %v7600_v33 }
 0x236   :  { %v6233_v28 = vpop.f32.mrf.mxu0 }
 0x238   :  { %v1344_v27 = vpop.f32.mrf.mxu0 }
 0x239   :  { %v1386_v24 = vadd.f32 %v1344_v27, %v7605_v36  ;;  %6614 = vrot.lane.b32.xlu1 %v6613_v31, %s6923_s29  ;;  %v6633_v36 = vpack.i.bf16 %v7666_v6, %v7631_v58 }
 0x23a   :  { %v6234_v48 = vpop.f32.mrf.mxu0 }
 0x23b   :  { %v6598_v12 = vpack.i.bf16 %v1386_v24, %v1385_v40 }
 0x23c   :  { %v1349_v30 = vpop.f32.mrf.mxu0 }
 0x23d   :  { %6624 = vrot.lane.b32.xlu1 %v6623_v44, %s6923_s29  ;;  %6599 = vrot.lane.b32.xlu0 %v6598_v12, %s6923_s29  ;;  %v7709_v5 = vadd.f32 %v1349_v30, %v7610_v38 }
 0x23e   :  { %v6237_v33 = vpop.f32.mrf.mxu0 }
 0x240   :  { %v1352_v52 = vpop.f32.mrf.mxu0 }
 0x241   :  { %6634 = vrot.lane.b32.xlu1 %v6633_v36, %s6923_s29  ;;  %6609 = vrot.lane.b32.xlu0 %v6608_v54, %s6923_s29  ;;  %v7702_v3 = vadd.f32 %v1352_v52, %v7615_v41  ;;  %v6763_v41 = vld [vmem:[%s8968_s2 + $0x4] ss:$8 sps:$4 sm:$0xff]  }
 0x242   :  { %v6238_v23 = vpop.f32.mrf.mxu0  ;;  %5307 = vmatprep.mubr.msk.bf16.mxu1 %vm1570_vm2, %v6763_v41  ;;  %v1846_v41 = vld [vmem:[%s8969_s3 + $0x8] sm:$0xff] }
 0x243   :  { %v6643_v22 = vpack.i.bf16 %v7702_v3, %v7709_v5  ;;  %v1851_v23 = vld [vmem:[%s8969_s3 + $0x30] sm:$0xff] }
 0x244   :  { %v1357_v63 = vpop.f32.mrf.mxu0 }
 0x245   :  { %6619 = vrot.lane.b32.xlu0 %v6618_v37, %s6923_s29  ;;  %v7693_v10 = vadd.f32 %v1357_v63, %v7620_v59  ;;  %v1850_v63 = vld [vmem:[%s8969_s3 + $0x28] sm:$0xff] }
 0x246   :  { %v6241_v14 = vpop.f32.mrf.mxu0 }
 0x248   :  { %v1360_v15 = vpop.f32.mrf.mxu0 }
 0x249   :  { %v7696_v9 = vadd.f32 %v1360_v15, %v7625_v0  ;;  %6629 = vrot.lane.b32.xlu0 %v6628_v62, %s6923_s29 }
 0x24a   :  { %v6242_v29 = vpop.f32.mrf.mxu0 }
 0x24b   :  { %v6638_v1 = vpack.i.bf16 %v7696_v9, %v7693_v10 }
 0x24c   :  { %v1365_v16 = vpop.f32.mrf.mxu0 }
 0x24d   :  { %v7705_v50 = vadd.f32 %v1365_v16, %v7628_v39  ;;  %6639 = vrot.lane.b32.xlu1 %v6638_v1, %s6923_s29  ;;  %v1849_v1 = vld [vmem:[%s8969_s3 + $0x20] sm:$0xff]  ;;  %v1848_v16 = vld [vmem:[%s8969_s3 + $0x18] sm:$0xff] }
 0x24e   :  { %v6245_v59 = vpop.f32.mrf.mxu0 }
 0x24f   :  { %1453 = vrot.lane.b32.xlu0 %v7705_v50, %s6923_s29 }
 0x250   :  { %v1368_v0 = vpop.f32.mrf.mxu0 }
 0x252   :  { %v6246_v42 = vpop.f32.mrf.mxu0 }
 0x253   :  { %6644 = vrot.lane.b32.xlu0 %v6643_v22, %s6923_s29  ;;  %v1847_v42 = vld [vmem:[%s8969_s3 + $0x10] sm:$0xff] }
 0x2a7   :  { %v6605_v39 = vpop.permute.xlu1 %6604 }
 0x2a8   :  { %v6607_v51 = vunpack.i.h.bf16 %v6605_v39  ;;  %v6606_v19 = vunpack.i.l.bf16 %v6605_v39 }
 0x2aa   :  { %v1489_v56 = vmax.f32 %v7640_v2, %v6607_v51  ;;  %v1488_v20 = vmax.f32 %v7637_v7, %v6606_v19  ;;  %v1855_v7 = vld [vmem:[%s8969_s3 + $0x50] sm:$0xff]  ;;  %v1845_v51 = vld [vmem:[%s8969_s3] sm:$0xff] }
 0x2ab   :  { %v6615_v61 = vpop.permute.xlu1 %6614  ;;  %1908 = vperm.xlu1 %6648, %v1855_v7   ;;  %v6775_v7 = vld [vmem:[%s8968_s2 + $0x40] ss:$8 sps:$4 sm:$0xff]  }
 0x2ac   :  { %v6617_v34 = vunpack.i.h.bf16 %v6615_v61  ;;  %v6616_v43 = vunpack.i.l.bf16 %v6615_v61  ;;  %v7726_v27 = vpack.c.bf16 %v1489_v56, %v1488_v20 }
 0x2ae   :  { %v1485_v2 = vmax.f32 %v7643_v11, %v6617_v34  ;;  %v1484_v48 = vmax.f32 %v7648_v13, %v6616_v43  ;;  %v1852_v11 = vld [vmem:[%s8969_s3 + $0x38] sm:$0xff] }
 0x2af   :  { %v6600_v38 = vpop.permute.xlu0 %6599  ;;  %v6625_v44 = vpop.permute.xlu1 %6624 }
 0x2b0   :  { %v6602_v45 = vunpack.i.h.bf16 %v6600_v38  ;;  %v6601_v4 = vunpack.i.l.bf16 %v6600_v38  ;;  %v6627_v33 = vunpack.i.h.bf16 %v6625_v44  ;;  %v6626_v13 = vunpack.i.l.bf16 %v6625_v44  ;;  %v6778_v44 = vld [vmem:[%s8968_s2 + $0x58] ss:$8 sps:$4 sm:$0xff]  }
 0x2b1   :  { %v7750_v52 = vpack.c.bf16 %v1485_v2, %v1484_v48  ;;  %v6780_v48 = vld [vmem:[%s8968_s2 + $0x5c] ss:$8 sps:$4 sm:$0xff]  }
 0x2b2   :  { %v1491_v32 = vmax.f32 %v1386_v24, %v6602_v45  ;;  %v1490_v55 = vmax.f32 %v1385_v40, %v6601_v4  ;;  %v1853_v24 = vld [vmem:[%s8969_s3 + $0x40] sm:$0xff]  ;;  %v1481_v14 = vmax.f32 %v7655_v21, %v6627_v33  ;;  %v6789_v33 = vld [vmem:[%s8968_s2 + $0x88] ss:$8 sps:$4 sm:$0xff]  }
 0x2b3   :  { %v6610_v57 = vpop.permute.xlu0 %6609  ;;  %1898 = vperm.xlu0 %6649, %v1853_v24  }
 0x2b4   :  { %v6612_v25 = vunpack.i.h.bf16 %v6610_v57  ;;  %v6611_v47 = vunpack.i.l.bf16 %v6610_v57  ;;  %v7722_v8 = vpack.c.bf16 %v1491_v32, %v1490_v55 }
 0x2b6   :  { %1594 = vmatpush1.bf16.msra.mxu1 %v7722_v8  ;;  %v1487_v28 = vmax.f32 %v1382_v49, %v6612_v25  ;;  %v1486_v31 = vmax.f32 %v1381_v35, %v6611_v47  ;;  %v1854_v35 = vld [vmem:[%s8969_s3 + $0x48] sm:$0xff] }
 0x2b7   :  { %1595 = vmatprep.subr.bf16.mxu1 %v8982_v18  ;;  %v6620_v40 = vpop.permute.xlu0 %6619  ;;  %1903 = vperm.xlu1 %6648, %v1854_v35   ;;  %v6786_v35 = vld [vmem:[%s8968_s2 + $0x78] ss:$8 sps:$4 sm:$0xff]  }
 0x2b8   :  { %v6622_v49 = vunpack.i.h.bf16 %v6620_v40  ;;  %v6621_v12 = vunpack.i.l.bf16 %v6620_v40  ;;  %v7738_v30 = vpack.c.bf16 %v1487_v28, %v1486_v31  ;;  %1893 = vperm.xlu0 %6649, %v1852_v11   ;;  %v6770_v28 = vld [vmem:[%s8968_s2 + $0x34] ss:$8 sps:$4 sm:$0xff]   ;;  %v6772_v31 = vld [vmem:[%s8968_s2 + $0x30] ss:$8 sps:$4 sm:$0xff]  }
 0x2b9   :  { %v1518_v40 = vld [vmem:[%s8968_s2 + $0x50] sm:$0xff] }
 0x2ba   :  { %1596 = vmatpush1.bf16.msra.mxu1 %v7726_v27  ;;  %v1483_v36 = vmax.f32 %v7677_v46, %v6622_v49  ;;  %v1482_v54 = vmax.f32 %v7680_v53, %v6621_v12  ;;  %v1480_v46 = vmax.f32 %v7660_v17, %v6626_v13  ;;  %v6635_v53 = vpop.permute.xlu1 %6634  ;;  %v5306_v2 = vcombine.high %v1518_v40, %v1518_v40  ;;  %v6781_v49 = vld [vmem:[%s8968_s2 + $0x6c] ss:$8 sps:$4 sm:$0xff]   ;;  %v6783_v12 = vld [vmem:[%s8968_s2 + $0x68] ss:$8 sps:$4 sm:$0xff]   ;;  %v6790_v13 = vld [vmem:[%s8968_s2 + $0x9c] ss:$8 sps:$4 sm:$0xff]  }
 0x2bb   :  { %1597 = vmatprep.subr.bf16.mxu1 %v8982_v18  ;;  %v6630_v37 = vpop.permute.xlu0 %6629  ;;  %1888 = vperm.xlu1 %6648, %v1851_v23   ;;  %v6637_v21 = vunpack.i.h.bf16 %v6635_v53  ;;  %v6636_v17 = vunpack.i.l.bf16 %v6635_v53  ;;  %v5305_v24 = vcombine.low %v1518_v40, %v1518_v40  ;;  %v6787_v11 = vld [vmem:[%s8968_s2 + $0x8c] ss:$8 sps:$4 sm:$0xff]  }
 0x2bc   :  { %v6632_v62 = vunpack.i.h.bf16 %v6630_v37  ;;  %v6631_v15 = vunpack.i.l.bf16 %v6630_v37  ;;  %v7762_v29 = vpack.c.bf16 %v1483_v36, %v1482_v54  ;;  %1883 = vperm.xlu0 %6649, %v1850_v63   ;;  %v7774_v22 = vpack.c.bf16 %v1481_v14, %v1480_v46  ;;  %v5323_v36 = vld [vmem:[%s8968_s2 + $0xa8] sm:$0xff]  ;;  %v6792_v54 = vld [vmem:[%s8968_s2 + $0x98] ss:$8 sps:$4 sm:$0xff]  }
 0x2bd   :  { %v5334_v23 = vcombine.low %v5323_v36, %v5323_v36 }
 0x2be   :  { %1598 = vmatpush1.bf16.msra.mxu1 %v7738_v30  ;;  %v1479_v59 = vmax.f32 %v7685_v26, %v6632_v62  ;;  %v1478_v0 = vmax.f32 %v7634_v60, %v6631_v15  ;;  %v1477_v26 = vmax.f32 %v7666_v6, %v6637_v21  ;;  %v1476_v60 = vmax.f32 %v7631_v58, %v6636_v17 }
 0x2bf   :  { %1599 = vmatprep.subr.bf16.mxu1 %v8982_v18  ;;  %1878 = vperm.xlu1 %6648, %v1849_v1   ;;  %v6640_v45 = vpop.permute.xlu1 %6639 }
 0x2c0   :  { %1873 = vperm.xlu0 %6649, %v1848_v16   ;;  %v1498_v38 = vpack.c.bf16 %v1479_v59, %v1478_v0  ;;  %v6642_v19 = vunpack.i.h.bf16 %v6640_v45  ;;  %v6641_v32 = vunpack.i.l.bf16 %v6640_v45  ;;  %v1497_v55 = vpack.c.bf16 %v1477_v26, %v1476_v60 }
 0x2c1   :  { %v1454_v39 = vpop.permute.xlu0 %1453 }
 0x2c2   :  { %1600 = vmatpush1.bf16.msra.mxu1 %v7750_v52  ;;  %v1496_v4 = vmax.f32 %v7705_v50, %v1454_v39  ;;  %v1495_v58 = vmax.f32 %v7696_v9, %v6642_v19  ;;  %v1494_v56 = vmax.f32 %v7693_v10, %v6641_v32  ;;  %v6761_v10 = vld [vmem:[%s8968_s2] ss:$8 sps:$4 sm:$0xff]   ;;  %v6764_v9 = vld [vmem:[%s8968_s2 + $0x14] ss:$8 sps:$4 sm:$0xff]  }
 0x2c3   :  { %1601 = vmatprep.subr.bf16.mxu1 %v8982_v18  ;;  %1868 = vperm.xlu1 %6648, %v1847_v42  }
 0x2c4   :  { %1863 = vperm.xlu0 %6649, %v1846_v41   ;;  %v1507_v57 = vpack.c.bf16 %v1496_v4, %v1496_v4  ;;  %v1506_v34 = vpack.c.bf16 %v1495_v58, %v1494_v56 }
 0x2c5   :  { %v6645_v6 = vpop.permute.xlu0 %6644 }
 0x2c6   :  { %1602 = vmatpush1.bf16.msra.mxu1 %v7762_v29  ;;  %v6647_v20 = vunpack.i.h.bf16 %v6645_v6  ;;  %v6646_v61 = vunpack.i.l.bf16 %v6645_v6  ;;  %v1591_v50 = vsel %vm1589_vm3, %v1507_v57, 0 }
 0x2c7   :  { %1603 = vmatprep.subr.bf16.mxu1 %v8982_v18  ;;  %1858 = vperm.xlu1 %6648, %v1845_v51  }
 0x2c8   :  { %v1493_v25 = vmax.f32 %v7702_v3, %v6647_v20  ;;  %v1492_v47 = vmax.f32 %v7709_v5, %v6646_v61  ;;  %v6766_v3 = vld [vmem:[%s8968_s2 + $0x10] ss:$8 sps:$4 sm:$0xff]   ;;  %v6767_v5 = vld [vmem:[%s8968_s2 + $0x24] ss:$8 sps:$4 sm:$0xff]  }
 0x2ca   :  { %1604 = vmatpush1.bf16.msra.mxu1 %v7774_v22  ;;  %v1505_v43 = vpack.c.bf16 %v1493_v25, %v1492_v47 }
 0x2cb   :  { %1605 = vmatprep.subr.bf16.mxu1 %v8982_v18 }
 0x2ce   :  { %1606 = vmatpush1.bf16.msra.mxu1 %v1498_v38 }
 0x2cf   :  { %1607 = vmatprep.subr.bf16.mxu1 %v8982_v18 }
 0x2d2   :  { %1608 = vmatpush1.bf16.msra.mxu1 %v1497_v55 }
 0x2d3   :  { %1619 = vmatprep.subr.bf16.mxu1 %v8982_v18 }
 0x2d6   :  { %1620 = vmatpush2.bf16.msra.mxu1 %v1591_v50 }
 0x2d7   :  { %1621 = vmatprep.subr.bf16.mxu1 %v8982_v18 }
 0x2da   :  { %1622 = vmatpush2.bf16.msra.mxu1 %v1506_v34 }
 0x2db   :  { %1623 = vmatprep.subr.bf16.mxu1 %v8982_v18 }
 0x2de   :  { %1624 = vmatpush2.bf16.msra.mxu1 %v1505_v43 }
 0x2df   :  { %1754 = vmatprep.subr.bf16.mxu1 %v8982_v18 }
 0x2e1   :  { %1626 = vmatmul.mubr.bf16.vlgmr.msra.gmra.mxu1 %v6761_v10 }
 0x2e2   :  { %1755 = vmatpush1.bf16.msra.mxu1 %v7722_v8  ;;  %5308 = vmatprep.mubr.msk.bf16.mxu1 %vm1570_vm2, %v6764_v9  ;;  %v6769_v8 = vld [vmem:[%s8968_s2 + $0x20] ss:$8 sps:$4 sm:$0xff]  }
 0x2e3   :  { %1756 = vmatprep.subr.bf16.mxu1 %v8982_v18 }
 0x2e6   :  { %1757 = vmatpush1.bf16.msra.mxu1 %v7726_v27  ;;  %v6773_v27 = vld [vmem:[%s8968_s2 + $0x44] ss:$8 sps:$4 sm:$0xff]  }
 0x2e7   :  { %1758 = vmatprep.subr.bf16.mxu1 %v8982_v18 }
 0x2e9   :  { %1634 = vmatmul.mubr.bf16.gmra.mxu1 %v6766_v3 }
 0x2ea   :  { %1759 = vmatpush1.bf16.msra.mxu1 %v7738_v30  ;;  %5309 = vmatprep.mubr.msk.bf16.mxu1 %vm1570_vm2, %v6767_v5  ;;  %v6784_v30 = vld [vmem:[%s8968_s2 + $0x7c] ss:$8 sps:$4 sm:$0xff]  }
 0x2eb   :  { %1760 = vmatprep.subr.bf16.mxu1 %v8982_v18 }
 0x2ee   :  { %1761 = vmatpush1.bf16.msra.mxu1 %v7750_v52  ;;  %v5335_v52 = vcombine.high %v5323_v36, %v5323_v36 }
 0x2ef   :  { %1762 = vmatprep.subr.bf16.mxu1 %v8982_v18 }
 0x2f1   :  { %1642 = vmatmul.mubr.bf16.gmra.mxu1 %v6769_v8 }
 0x2f2   :  { %1763 = vmatpush1.bf16.msra.mxu1 %v7762_v29  ;;  %5310 = vmatprep.mubr.msk.bf16.mxu1 %vm1570_vm2, %v6770_v28 }
 0x2f3   :  { %1764 = vmatprep.subr.bf16.mxu1 %v8982_v18 }
 0x2f6   :  { %1765 = vmatpush1.bf16.msra.mxu1 %v7774_v22 }
 0x2f7   :  { %1766 = vmatprep.subr.bf16.mxu1 %v8982_v18 }
 0x2f9   :  { %1650 = vmatmul.mubr.bf16.gmra.mxu1 %v6772_v31 }
 0x2fa   :  { %1767 = vmatpush1.bf16.msra.mxu1 %v1498_v38  ;;  %5311 = vmatprep.mubr.msk.bf16.mxu1 %vm1570_vm2, %v6773_v27 }
 0x2fb   :  { %1768 = vmatprep.subr.bf16.mxu1 %v8982_v18 }
 0x2fe   :  { %1769 = vmatpush1.bf16.msra.mxu1 %v1497_v55 }
 0x2ff   :  { %1780 = vmatprep.subr.bf16.mxu1 %v8982_v18 }
 0x301   :  { %1658 = vmatmul.mubr.bf16.gmra.mxu1 %v6775_v7 }
 0x302   :  { %1781 = vmatpush2.bf16.msra.mxu1 %v1591_v50  ;;  %5312 = vmatprep.mubr.msk.bf16.mxu1 %vm1570_vm2, %v5306_v2 }
 0x303   :  { %1782 = vmatprep.subr.bf16.mxu1 %v8982_v18 }
 0x306   :  { %1783 = vmatpush2.bf16.msra.mxu1 %v1506_v34 }
 0x307   :  { %1784 = vmatprep.subr.bf16.mxu1 %v8982_v18 }
 0x309   :  { %1666 = vmatmul.mubr.bf16.gmra.mxu1 %v5305_v24 }
 0x30a   :  { %1785 = vmatpush2.bf16.msra.mxu1 %v1505_v43  ;;  %5336 = vmatprep.mubr.msk.bf16.mxu1 %vm1570_vm2, %v6780_v48 }
 0x311   :  { %1787 = vmatmul.mubr.bf16.vlgmr.msra.gmra.mxu1 %v6778_v44 }
 0x312   :  { %5337 = vmatprep.mubr.msk.bf16.mxu1 %vm1570_vm2, %v6781_v49 }
 0x319   :  { %1795 = vmatmul.mubr.bf16.gmra.mxu1 %v6783_v12 }
 0x31a   :  { %5338 = vmatprep.mubr.msk.bf16.mxu1 %vm1570_vm2, %v6784_v30 }
 0x321   :  { %1803 = vmatmul.mubr.bf16.gmra.mxu1 %v6786_v35 }
 0x322   :  { %5339 = vmatprep.mubr.msk.bf16.mxu1 %vm1570_vm2, %v6787_v11 }
 0x326   :  { %v7890_v17 = vpop.permute.xlu1 %1908 }
 0x329   :  { %1811 = vmatmul.mubr.bf16.gmra.mxu1 %v6789_v33 }
 0x32a   :  { %5340 = vmatprep.mubr.msk.bf16.mxu1 %vm1570_vm2, %v6790_v13 }
 0x32e   :  { %v7894_v39 = vpop.permute.xlu0 %1898 }
 0x331   :  { %1819 = vmatmul.mubr.bf16.gmra.mxu1 %v6792_v54 }
 0x332   :  { %5341 = vmatprep.mubr.msk.bf16.mxu1 %vm1570_vm2, %v5335_v52  ;;  %v7892_v42 = vpop.permute.xlu1 %1903 }
 0x333   :  { %v1894_v45 = vpop.permute.xlu0 %1893 }
 0x336   :  { %v1889_v38 = vpop.permute.xlu1 %1888 }
 0x337   :  { %v1884_v57 = vpop.permute.xlu0 %1883 }
 0x339   :  { %1827 = vmatmul.mubr.bf16.gmra.mxu1 %v5334_v23 }
 0x33a   :  { %v1879_v32 = vpop.permute.xlu1 %1878 }
 0x33b   :  { %v1874_v61 = vpop.permute.xlu0 %1873 }
 0x33e   :  { %v1869_v56 = vpop.permute.xlu1 %1868 }
 0x33f   :  { %v1864_v10 = vpop.permute.xlu0 %1863 }
 0x342   :  { %v1859_v47 = vpop.permute.xlu1 %1858 }
 0x3a1   :  { %v1627_v37 = vpop.f32.mrf.mxu1 }
 0x3a3   :  { %v1629_v63 = vpop.f32.mrf.mxu1 }
 0x3a5   :  { %v1630_v14 = vpop.f32.mrf.mxu1 }
 0x3a7   :  { %v1632_v46 = vpop.f32.mrf.mxu1 }
 0x3a9   :  { %v1635_v53 = vpop.f32.mrf.mxu1 }
 0x3ab   :  { %v1637_v62 = vpop.f32.mrf.mxu1 }
 0x3ad   :  { %v1638_v15 = vpop.f32.mrf.mxu1 }
 0x3af   :  { %v1640_v29 = vpop.f32.mrf.mxu1 }
 0x3b1   :  { %v1643_v1 = vpop.f32.mrf.mxu1 }
 0x3b3   :  { %v1645_v16 = vpop.f32.mrf.mxu1 }
 0x3b5   :  { %v1646_v21 = vpop.f32.mrf.mxu1 }
 0x3b7   :  { %v1648_v59 = vpop.f32.mrf.mxu1 }
 0x3b9   :  { %v1651_v0 = vpop.f32.mrf.mxu1 }
 0x3bb   :  { %v1653_v22 = vpop.f32.mrf.mxu1 }
 0x3bd   :  { %v1654_v41 = vpop.f32.mrf.mxu1 }
 0x3bf   :  { %v1656_v26 = vpop.f32.mrf.mxu1 }
 0x3c1   :  { %v7896_v60 = vpop.f32.mrf.mxu1 }
 0x3c3   :  { %v1661_v51 = vpop.f32.mrf.mxu1 }
 0x3c5   :  { %v7898_v4 = vpop.f32.mrf.mxu1 }
 0x3c7   :  { %v1664_v19 = vpop.f32.mrf.mxu1 }
 0x3c9   :  { %v7900_v55 = vpop.f32.mrf.mxu1 }
 0x3cb   :  { %v1669_v6 = vpop.f32.mrf.mxu1 }
 0x3cd   :  { %v1670_v58 = vpop.f32.mrf.mxu1 }
 0x3cf   :  { %v1671_v20 = vpop.f32.mrf.mxu1 }
 0x3d1   :  { %v1788_v50 = vpop.f32.mrf.mxu1 }
 0x3d2   :  { %v1834_v25 = vmax.f32 %v1627_v37, %v1788_v50 }
 0x3d3   :  { %v1790_v34 = vpop.f32.mrf.mxu1 }
 0x3d4   :  { %v1911_v9 = vadd.f32 %v1859_v47, %v1834_v25 }
 0x3d5   :  { %v1791_v43 = vpop.f32.mrf.mxu1 }
 0x3d6   :  { %v1835_v3 = vmax.f32 %v1630_v14, %v1791_v43  ;;  %v1922_v31 = vmax.f32 %v1911_v9, 0.0  ;;  %v6801_v9 = vld [vmem:[%s8970_s4 + $0x10] sm:$0xff]  }
 0x3d7   :  { %v1793_v5 = vpop.f32.mrf.mxu1 }
 0x3d8   :  { %v1912_v8 = vadd.f32 %v1864_v10, %v1835_v3  ;;  %v6802_v3 = vld [vmem:[%s8970_s4 + $0x18] sm:$0xff]   ;;  %v6805_v5 = vld [vmem:[%s8970_s4 + $0x20] sm:$0xff]  }
 0x3d9   :  { %v1796_v28 = vpop.f32.mrf.mxu1 }
 0x3da   :  { %v1923_v27 = vmax.f32 %v1912_v8, 0.0  ;;  %v1836_v40 = vmax.f32 %v1635_v53, %v1796_v28  ;;  %v6806_v8 = vld [vmem:[%s8970_s4 + $0x28] sm:$0xff]   ;;  %v6809_v28 = vld [vmem:[%s8970_s4 + $0x30] sm:$0xff]  }
 0x3db   :  { %v1798_v7 = vpop.f32.mrf.mxu1 }
 0x3dc   :  { %v7902_v2 = vpack.c.bf16 %v1923_v27, %v1922_v31  ;;  %v1913_v48 = vadd.f32 %v1869_v56, %v1836_v40  ;;  %v6810_v31 = vld [vmem:[%s8970_s4 + $0x38] sm:$0xff]   ;;  %v6813_v27 = vld [vmem:[%s8970_s4 + $0x40] sm:$0xff]   ;;  %v6814_v40 = vld [vmem:[%s8970_s4 + $0x48] sm:$0xff]  }
 0x3dd   :  { %v1799_v24 = vpop.f32.mrf.mxu1  ;;  %v6817_v7 = vld [vmem:[%s8970_s4 + $0xf0] sm:$0xff]  }
 0x3de   :  { %v1837_v44 = vmax.f32 %v1638_v15, %v1799_v24  ;;  %v1924_v35 = vmax.f32 %v1913_v48, 0.0 }
 0x3df   :  { %v1801_v49 = vpop.f32.mrf.mxu1 }
 0x3e0   :  { %v1914_v12 = vadd.f32 %v1874_v61, %v1837_v44 }
 0x3e1   :  { %v1804_v30 = vpop.f32.mrf.mxu1 }
 0x3e2   :  { %v1925_v11 = vmax.f32 %v1914_v12, 0.0  ;;  %v1838_v33 = vmax.f32 %v1643_v1, %v1804_v30 }
 0x3e3   :  { %v1806_v13 = vpop.f32.mrf.mxu1 }
 0x3e4   :  { %v7904_v36 = vpack.c.bf16 %v1925_v11, %v1924_v35  ;;  %v1915_v52 = vadd.f32 %v1879_v32, %v1838_v33  ;;  %v6796_v13 = vld [vmem:[%s8970_s4 + $0x58] sm:$0xff]  }
 0x3e5   :  { %v1807_v54 = vpop.f32.mrf.mxu1 }
 0x3e6   :  { %v1839_v23 = vmax.f32 %v1646_v21, %v1807_v54  ;;  %v1926_v46 = vmax.f32 %v1915_v52, 0.0 }
 0x3e7   :  { %v1809_v37 = vpop.f32.mrf.mxu1 }
 0x3e8   :  { %v1916_v63 = vadd.f32 %v1884_v57, %v1839_v23 }
 0x3e9   :  { %v1812_v14 = vpop.f32.mrf.mxu1 }
 0x3ea   :  { %v1927_v53 = vmax.f32 %v1916_v63, 0.0  ;;  %v1840_v62 = vmax.f32 %v1651_v0, %v1812_v14  ;;  %v6800_v14 = vld [vmem:[%s8970_s4 + $0x68] sm:$0xff]  }
 0x3eb   :  { %v1814_v29 = vpop.f32.mrf.mxu1 }
 0x3ec   :  { %v7906_v15 = vpack.c.bf16 %v1927_v53, %v1926_v46  ;;  %v1917_v59 = vadd.f32 %v1889_v38, %v1840_v62  ;;  %v6803_v46 = vld [vmem:[%s8970_s4 + $0x70] sm:$0xff]  }
 0x3ed   :  { %v1815_v16 = vpop.f32.mrf.mxu1 }
 0x3ee   :  { %v1841_v22 = vmax.f32 %v1654_v41, %v1815_v16  ;;  %v1928_v19 = vmax.f32 %v1917_v59, 0.0  ;;  %v6807_v16 = vld [vmem:[%s8970_s4 + $0x80] sm:$0xff]  }
 0x3ef   :  { %v1817_v26 = vpop.f32.mrf.mxu1 }
 0x3f0   :  { %v1918_v1 = vadd.f32 %v1894_v45, %v1841_v22 }
 0x3f1   :  { %v1820_v51 = vpop.f32.mrf.mxu1 }
 0x3f2   :  { %v1929_v6 = vmax.f32 %v1918_v1, 0.0  ;;  %v1842_v32 = vmax.f32 %v7896_v60, %v1820_v51  ;;  %v6808_v1 = vld [vmem:[%s8970_s4 + $0x88] sm:$0xff]   ;;  %v6818_v51 = vld [vmem:[%s8970_s4 + $0xf8] sm:$0xff]  }
 0x3f3   :  { %v1822_v21 = vpop.f32.mrf.mxu1 }
 0x3f4   :  { %v1936_v58 = vpack.c.bf16 %v1929_v6, %v1928_v19  ;;  %v1919_v56 = vadd.f32 %v7894_v39, %v1842_v32  ;;  %v6811_v6 = vld [vmem:[%s8970_s4 + $0x90] sm:$0xff]   ;;  %v6821_v32 = vld [vmem:[%s8970_s4 + $0x100] sm:$0xff]   ;;  %v6812_v21 = vld [vmem:[%s8970_s4 + $0x98] sm:$0xff]  }
 0x3f5   :  { %v1823_v57 = vpop.f32.mrf.mxu1 }
 0x3f6   :  { %v1843_v0 = vmax.f32 %v7898_v4, %v1823_v57  ;;  %v1930_v38 = vmax.f32 %v1919_v56, 0.0  ;;  %v6797_v4 = vld [vmem:[%s8970_s4] sm:$0xff]   ;;  %v6825_v56 = vld [vmem:[%s8970_s4 + $0x110] sm:$0xff]  }
 0x3f7   :  { %v1825_v20 = vpop.f32.mrf.mxu1  ;;  %6291 = vmatprep.mubr.msk.bf16.mxu1 %vm2059_vm4, %v6797_v4  ;;  %v6815_v57 = vld [vmem:[%s8970_s4 + $0xa0] sm:$0xff]  }
 0x3f8   :  { %v1920_v61 = vadd.f32 %v7892_v42, %v1843_v0  ;;  %v6816_v20 = vld [vmem:[%s8970_s4 + $0xa8] sm:$0xff]  }
 0x3f9   :  { %v1828_v50 = vpop.f32.mrf.mxu1 }
 0x3fa   :  { %v1931_v41 = vmax.f32 %v1920_v61, 0.0  ;;  %v1844_v45 = vmax.f32 %v7900_v55, %v1828_v50  ;;  %v6798_v55 = vld [vmem:[%s8970_s4 + $0x8] sm:$0xff]   ;;  %v6826_v61 = vld [vmem:[%s8970_s4 + $0x118] sm:$0xff]   ;;  %v6819_v50 = vld [vmem:[%s8970_s4 + $0xb0] sm:$0xff]  }
 0x3fb   :  { %v1830_v25 = vpop.f32.mrf.mxu1 }
 0x3fc   :  { %v1937_v47 = vpack.c.bf16 %v1931_v41, %v1930_v38  ;;  %v1921_v34 = vadd.f32 %v7890_v17, %v1844_v45  ;;  %v6795_v17 = vld [vmem:[%s8970_s4 + $0x50] sm:$0xff]   ;;  %v6829_v38 = vld [vmem:[%s8970_s4 + $0x120] sm:$0xff]   ;;  %v6820_v25 = vld [vmem:[%s8970_s4 + $0xb8] sm:$0xff]  }
 0x3fd   :  { %v1831_v60 = vpop.f32.mrf.mxu1  ;;  %6259 = vmatprep.mubr.msk.bf16.mxu0 %vm2059_vm4, %v6795_v17  ;;  %v6827_v17 = vld [vmem:[%s8970_s4 + $0xd0] sm:$0xff]  }
 0x3fe   :  { %v1932_v43 = vmax.f32 %v1921_v34, 0.0  ;;  %1994 = vrot.lane.b32.xlu0 %v1937_v47, %s6925_s21  ;;  %v6823_v60 = vld [vmem:[%s8970_s4 + $0xc0] sm:$0xff]  }
 0x3ff   :  { %v1832_v10 = vpop.f32.mrf.mxu1 }
 0x400   :  { %v1938_v39 = vpack.c.bf16 %v1932_v43, %v1932_v43  ;;  %v6833_v43 = vld [vmem:[%s8970_s4 + $0x130] sm:$0xff]  }
 0x402   :  { %1990 = vrot.lane.b32.xlu0 %v7906_v15, %s6925_s21  ;;  %1996 = vrot.lane.b32.xlu1 %v1938_v39, %s6925_s21  ;;  %v2286_v42 = vsel %vm1589_vm3, %v1938_v39, 0 }
 0x403   :  { %6582 = vmatprep.subr.msk.bf16.mxu1 %vm1589_vm3, %v1938_v39 }
 0x404   :  { %6280 = vmatpush3.bf16.msra.mxu1 %v2286_v42  ;;  %v6834_v42 = vld [vmem:[%s8970_s4 + $0x138] sm:$0xff]  }
 0x405   :  { %6281 = vmatprep.subr.bf16.mxu1 %v1937_v47 }
 0x406   :  { %1986 = vrot.lane.b32.xlu0 %v7902_v2, %s6925_s21  ;;  %1992 = vrot.lane.b32.xlu1 %v1936_v58, %s6925_s21 }
 0x408   :  { %6282 = vmatpush3.bf16.msra.mxu1 %v1937_v47 }
 0x409   :  { %6283 = vmatprep.subr.bf16.mxu1 %v1936_v58 }
 0x40a   :  { %2430 = vrot.lane.b32.xlu0 %v1937_v47, %s6927_s14  ;;  %1988 = vrot.lane.b32.xlu1 %v7904_v36, %s6925_s21 }
 0x40c   :  { %6284 = vmatpush3.bf16.msra.mxu1 %v1936_v58 }
 0x40d   :  { %6285 = vmatprep.subr.bf16.mxu1 %v7906_v15 }
 0x40e   :  { %2426 = vrot.lane.b32.xlu0 %v7906_v15, %s6927_s14  ;;  %2432 = vrot.lane.b32.xlu1 %v1938_v39, %s6927_s14 }
 0x410   :  { %6286 = vmatpush3.bf16.msra.mxu1 %v7906_v15 }
 0x411   :  { %6287 = vmatprep.subr.bf16.mxu1 %v7904_v36 }
 0x412   :  { %2422 = vrot.lane.b32.xlu0 %v7902_v2, %s6927_s14  ;;  %2428 = vrot.lane.b32.xlu1 %v1936_v58, %s6927_s14 }
 0x414   :  { %6288 = vmatpush3.bf16.msra.mxu1 %v7904_v36 }
 0x415   :  { %6289 = vmatprep.subr.bf16.mxu1 %v7902_v2 }
 0x416   :  { %2950 = vrot.lane.b32.xlu0 %v1938_v39, %s6929_s1  ;;  %2424 = vrot.lane.b32.xlu1 %v7904_v36, %s6927_s14 }
 0x418   :  { %6290 = vmatpush3.bf16.msra.mxu1 %v7902_v2 }
 0x41a   :  { %2948 = vrot.lane.b32.xlu0 %v1937_v47, %s6929_s1  ;;  %2691 = vrot.lane.b32.xlu1 %v1938_v39, %s6930_s28  ;;  %v6824_v39 = vld [vmem:[%s8970_s4 + $0xc8] sm:$0xff]  }
 0x41b   :  { %6292 = vmatmul.mubr.msk.bf16.vlgmr.msra.gmra.mxu1 %vm2059_vm4, %v6798_v55  ;;  %v6828_v55 = vld [vmem:[%s8970_s4 + $0xd8] sm:$0xff]  }
 0x41c   :  { %6295 = vmatprep.mubr.msk.bf16.mxu1 %vm2059_vm4, %v6801_v9  ;;  %v6831_v9 = vld [vmem:[%s8970_s4 + $0xe0] sm:$0xff]  }
 0x41e   :  { %2946 = vrot.lane.b32.xlu0 %v1936_v58, %s6929_s1  ;;  %2689 = vrot.lane.b32.xlu1 %v1937_v47, %s6930_s28  ;;  %v6830_v47 = vld [vmem:[%s8970_s4 + $0x128] sm:$0xff]  }
 0x422   :  { %2944 = vrot.lane.b32.xlu0 %v7906_v15, %s6929_s1  ;;  %2687 = vrot.lane.b32.xlu1 %v1936_v58, %s6930_s28  ;;  %v6822_v58 = vld [vmem:[%s8970_s4 + $0x108] sm:$0xff]  }
 0x423   :  { %6296 = vmatmul.mubr.msk.bf16.gmra.mxu1 %vm2059_vm4, %v6802_v3  ;;  %v6832_v3 = vld [vmem:[%s8970_s4 + $0xe8] sm:$0xff]  }
 0x424   :  { %6299 = vmatprep.mubr.msk.bf16.mxu1 %vm2059_vm4, %v6805_v5  ;;  %v6835_v5 = vld [vmem:[%s8970_s4 + $0x140] sm:$0xff]  }
 0x426   :  { %2942 = vrot.lane.b32.xlu0 %v7904_v36, %s6929_s1  ;;  %2685 = vrot.lane.b32.xlu1 %v7906_v15, %s6930_s28  ;;  %v6804_v15 = vld [vmem:[%s8970_s4 + $0x78] sm:$0xff]  }
 0x42a   :  { %2940 = vrot.lane.b32.xlu0 %v7902_v2, %s6929_s1  ;;  %2683 = vrot.lane.b32.xlu1 %v7904_v36, %s6930_s28  ;;  %v6799_v36 = vld [vmem:[%s8970_s4 + $0x60] sm:$0xff]  }
 0x42b   :  { %6300 = vmatmul.mubr.msk.bf16.gmra.mxu1 %vm2059_vm4, %v6806_v8  ;;  %v6836_v8 = vld [vmem:[%s8970_s4 + $0x148] sm:$0xff]  }
 0x42c   :  { %6303 = vmatprep.mubr.msk.bf16.mxu1 %vm2059_vm4, %v6809_v28  ;;  %v6837_v28 = vld [vmem:[%s8970_s4 + $0x150] sm:$0xff]  }
 0x42e   :  { %2681 = vrot.lane.b32.xlu1 %v7902_v2, %s6930_s28 }
 0x433   :  { %6304 = vmatmul.mubr.msk.bf16.gmra.mxu1 %vm2059_vm4, %v6810_v31  ;;  %v6838_v31 = vld [vmem:[%s8970_s4 + $0x158] sm:$0xff]  }
 0x434   :  { %6307 = vmatprep.mubr.msk.bf16.mxu1 %vm2059_vm4, %v6813_v27  ;;  %v6839_v27 = vld [vmem:[%s8970_s4 + $0x160] sm:$0xff]  }
 0x43b   :  { %6308 = vmatmul.mubr.msk.bf16.gmra.mxu1 %vm2059_vm4, %v6814_v40  ;;  %v6840_v40 = vld [vmem:[%s8970_s4 + $0x168] sm:$0xff]  }
 0x43c   :  { %6355 = vmatprep.mubr.msk.bf16.mxu1 %vm2059_vm4, %v6817_v7  ;;  %v6841_v7 = vld [vmem:[%s8970_s4 + $0x170] sm:$0xff]  }
 0x470   :  { %v1995_v48 = vpop.permute.xlu0 %1994 }
 0x474   :  { %v1997_v2 = vpop.permute.xlu1 %1996  ;;  %v1991_v12 = vpop.permute.xlu0 %1990 }
 0x475   :  { %v2090_v24 = vsel %vm1589_vm3, %v1997_v2, 0  ;;  %6581 = vmatprep.subr.msk.bf16.mxu0 %vm1589_vm3, %v1997_v2  ;;  %v6842_v2 = vld [vmem:[%s8970_s4 + $0x178] sm:$0xff]  }
 0x476   :  { %6248 = vmatpush3.bf16.msra.mxu0 %v2090_v24  ;;  %v6843_v24 = vld [vmem:[%s8970_s4 + $0x180] sm:$0xff]  }
 0x477   :  { %6249 = vmatprep.subr.bf16.mxu0 %v1995_v48 }
 0x478   :  { %v1993_v44 = vpop.permute.xlu1 %1992  ;;  %v1987_v11 = vpop.permute.xlu0 %1986 }
 0x47a   :  { %6250 = vmatpush3.bf16.msra.mxu0 %v1995_v48  ;;  %v6844_v48 = vld [vmem:[%s8970_s4 + $0x188] sm:$0xff]  }
 0x47b   :  { %6251 = vmatprep.subr.bf16.mxu0 %v1993_v44 }
 0x47c   :  { %v1989_v49 = vpop.permute.xlu1 %1988  ;;  %v2431_v37 = vpop.permute.xlu0 %2430 }
 0x47e   :  { %6252 = vmatpush3.bf16.msra.mxu0 %v1993_v44 }
 0x47f   :  { %6253 = vmatprep.subr.bf16.mxu0 %v1991_v12 }
 0x480   :  { %v2433_v30 = vpop.permute.xlu1 %2432  ;;  %v2427_v62 = vpop.permute.xlu0 %2426 }
 0x481   :  { %v2525_v52 = vsel %vm1589_vm3, %v2433_v30, 0 }
 0x482   :  { %6254 = vmatpush3.bf16.msra.mxu0 %v1991_v12 }
 0x483   :  { %6255 = vmatprep.subr.bf16.mxu0 %v1989_v49 }
 0x484   :  { %v2429_v35 = vpop.permute.xlu1 %2428  ;;  %v2423_v59 = vpop.permute.xlu0 %2422 }
 0x486   :  { %6256 = vmatpush3.bf16.msra.mxu0 %v1989_v49 }
 0x487   :  { %6257 = vmatprep.subr.bf16.mxu0 %v1987_v11 }
 0x488   :  { %v2425_v33 = vpop.permute.xlu1 %2424  ;;  %v2951_v19 = vpop.permute.xlu0 %2950 }
 0x489   :  { %v3044_v45 = vsel %vm1589_vm3, %v2951_v19, 0 }
 0x48a   :  { %6258 = vmatpush3.bf16.msra.mxu0 %v1987_v11 }
 0x48b   :  { %6583 = vmatprep.subr.msk.bf16.mxu0 %vm1589_vm3, %v2433_v30 }
 0x48c   :  { %v2692_v54 = vpop.permute.xlu1 %2691  ;;  %v2949_v0 = vpop.permute.xlu0 %2948 }
 0x48d   :  { %v2784_v23 = vsel %vm1589_vm3, %v2692_v54, 0  ;;  %6260 = vmatmul.mubr.msk.bf16.vlgmr.msra.gmra.mxu0 %vm2059_vm4, %v6796_v13  ;;  %6584 = vmatprep.subr.msk.bf16.mxu1 %vm1589_vm3, %v2692_v54 }
 0x48e   :  { %6312 = vmatpush3.bf16.msra.mxu0 %v2525_v52  ;;  %6344 = vmatpush3.bf16.msra.mxu1 %v2784_v23 }
 0x48f   :  { %6313 = vmatprep.subr.bf16.mxu0 %v2431_v37  ;;  %6263 = vmatprep.mubr.msk.bf16.mxu0 %vm2059_vm4, %v6799_v36 }
 0x490   :  { %v2690_v63 = vpop.permute.xlu1 %2689  ;;  %v2947_v41 = vpop.permute.xlu0 %2946 }
 0x491   :  { %6345 = vmatprep.subr.bf16.mxu1 %v2690_v63 }
 0x492   :  { %6314 = vmatpush3.bf16.msra.mxu0 %v2431_v37  ;;  %6346 = vmatpush3.bf16.msra.mxu1 %v2690_v63 }
 0x493   :  { %6315 = vmatprep.subr.bf16.mxu0 %v2429_v35 }
 0x494   :  { %v2688_v53 = vpop.permute.xlu1 %2687  ;;  %v2945_v34 = vpop.permute.xlu0 %2944 }
 0x495   :  { %6264 = vmatmul.mubr.msk.bf16.gmra.mxu0 %vm2059_vm4, %v6800_v14  ;;  %6347 = vmatprep.subr.bf16.mxu1 %v2688_v53 }
 0x496   :  { %6316 = vmatpush3.bf16.msra.mxu0 %v2429_v35  ;;  %6348 = vmatpush3.bf16.msra.mxu1 %v2688_v53 }
 0x497   :  { %6317 = vmatprep.subr.bf16.mxu0 %v2427_v62  ;;  %6267 = vmatprep.mubr.msk.bf16.mxu0 %vm2059_vm4, %v6803_v46 }
 0x498   :  { %v2686_v29 = vpop.permute.xlu1 %2685  ;;  %v2943_v10 = vpop.permute.xlu0 %2942 }
 0x499   :  { %6349 = vmatprep.subr.bf16.mxu1 %v2686_v29 }
 0x49a   :  { %6318 = vmatpush3.bf16.msra.mxu0 %v2427_v62  ;;  %6350 = vmatpush3.bf16.msra.mxu1 %v2686_v29 }
 0x49b   :  { %6319 = vmatprep.subr.bf16.mxu0 %v2425_v33 }
 0x49c   :  { %v2684_v22 = vpop.permute.xlu1 %2683  ;;  %v2941_v4 = vpop.permute.xlu0 %2940 }
 0x49d   :  { %6268 = vmatmul.mubr.msk.bf16.gmra.mxu0 %vm2059_vm4, %v6804_v15  ;;  %6351 = vmatprep.subr.bf16.mxu1 %v2684_v22 }
 0x49e   :  { %6320 = vmatpush3.bf16.msra.mxu0 %v2425_v33  ;;  %6352 = vmatpush3.bf16.msra.mxu1 %v2684_v22 }
 0x49f   :  { %6321 = vmatprep.subr.bf16.mxu0 %v2423_v59  ;;  %6271 = vmatprep.mubr.msk.bf16.mxu0 %vm2059_vm4, %v6807_v16 }
 0x4a0   :  { %v2682_v26 = vpop.permute.xlu1 %2681 }
 0x4a1   :  { %6353 = vmatprep.subr.bf16.mxu1 %v2682_v26 }
 0x4a2   :  { %6322 = vmatpush3.bf16.msra.mxu0 %v2423_v59  ;;  %6354 = vmatpush3.bf16.msra.mxu1 %v2682_v26 }
 0x4a3   :  { %6585 = vmatprep.subr.msk.bf16.mxu0 %vm1589_vm3, %v2951_v19  ;;  %3360 = vmatprep.subr.bf16.mxu1 %v8982_v18 }
 0x4a5   :  { %6272 = vmatmul.mubr.msk.bf16.gmra.mxu0 %vm2059_vm4, %v6808_v1  ;;  %6356 = vmatmul.mubr.msk.bf16.vlgmr.msra.gmra.mxu1 %vm2059_vm4, %v6818_v51 }
 0x4a6   :  { %6275 = vmatprep.mubr.msk.bf16.mxu0 %vm2059_vm4, %v6811_v6  ;;  %6359 = vmatprep.mubr.msk.bf16.mxu1 %vm2059_vm4, %v6821_v32 }
 0x4ad   :  { %6276 = vmatmul.mubr.msk.bf16.gmra.mxu0 %vm2059_vm4, %v6812_v21  ;;  %6360 = vmatmul.mubr.msk.bf16.gmra.mxu1 %vm2059_vm4, %v6822_v58 }
 0x4ae   :  { %6323 = vmatprep.mubr.msk.bf16.mxu0 %vm2059_vm4, %v6815_v57  ;;  %6363 = vmatprep.mubr.msk.bf16.mxu1 %vm2059_vm4, %v6825_v56 }
 0x4b5   :  { %6324 = vmatmul.mubr.msk.bf16.vlgmr.msra.gmra.mxu0 %vm2059_vm4, %v6816_v20  ;;  %6364 = vmatmul.mubr.msk.bf16.gmra.mxu1 %vm2059_vm4, %v6826_v61 }
 0x4b6   :  { %6376 = vmatpush3.bf16.msra.mxu0 %v3044_v45  ;;  %6327 = vmatprep.mubr.msk.bf16.mxu0 %vm2059_vm4, %v6819_v50 }
 0x4b7   :  { %6377 = vmatprep.subr.bf16.mxu0 %v2949_v0  ;;  %6367 = vmatprep.mubr.msk.bf16.mxu1 %vm2059_vm4, %v6829_v38 }
 0x4ba   :  { %6378 = vmatpush3.bf16.msra.mxu0 %v2949_v0 }
 0x4bb   :  { %6379 = vmatprep.subr.bf16.mxu0 %v2947_v41 }
 0x4bd   :  { %6328 = vmatmul.mubr.msk.bf16.gmra.mxu0 %vm2059_vm4, %v6820_v25  ;;  %6368 = vmatmul.mubr.msk.bf16.gmra.mxu1 %vm2059_vm4, %v6830_v47 }
 0x4be   :  { %6380 = vmatpush3.bf16.msra.mxu0 %v2947_v41  ;;  %6331 = vmatprep.mubr.msk.bf16.mxu0 %vm2059_vm4, %v6823_v60 }
 0x4bf   :  { %6381 = vmatprep.subr.bf16.mxu0 %v2945_v34  ;;  %6371 = vmatprep.mubr.msk.bf16.mxu1 %vm2059_vm4, %v6833_v43 }
 0x4c2   :  { %6382 = vmatpush3.bf16.msra.mxu0 %v2945_v34 }
 0x4c3   :  { %6383 = vmatprep.subr.bf16.mxu0 %v2943_v10 }
 0x4c5   :  { %6332 = vmatmul.mubr.msk.bf16.gmra.mxu0 %vm2059_vm4, %v6824_v39  ;;  %6372 = vmatmul.mubr.msk.bf16.gmra.mxu1 %vm2059_vm4, %v6834_v42 }
 0x4c6   :  { %6384 = vmatpush3.bf16.msra.mxu0 %v2943_v10  ;;  %6335 = vmatprep.mubr.msk.bf16.mxu0 %vm2059_vm4, %v6827_v17 }
 0x4c7   :  { %6385 = vmatprep.subr.bf16.mxu0 %v2941_v4 }
 0x4ca   :  { %6386 = vmatpush3.bf16.msra.mxu0 %v2941_v4 }
 0x4cb   :  { %3504 = vmatprep.subr.bf16.mxu0 %v8982_v18 }
 0x4cd   :  { %6336 = vmatmul.mubr.msk.bf16.gmra.mxu0 %vm2059_vm4, %v6828_v55 }
 0x4ce   :  { %6339 = vmatprep.mubr.msk.bf16.mxu0 %vm2059_vm4, %v6831_v9 }
 0x4d5   :  { %6340 = vmatmul.mubr.msk.bf16.gmra.mxu0 %vm2059_vm4, %v6832_v3 }
 0x4d6   :  { %6387 = vmatprep.mubr.msk.bf16.mxu0 %vm2059_vm4, %v6835_v5 }
 0x4db   :  { %v6293_v44 = vpop.f32.mrf.mxu1 }
 0x4dd   :  { %6388 = vmatmul.mubr.msk.bf16.vlgmr.msra.gmra.mxu0 %vm2059_vm4, %v6836_v8  ;;  %v2322_v49 = vpop.f32.mrf.mxu1 }
 0x4de   :  { %6391 = vmatprep.mubr.msk.bf16.mxu0 %vm2059_vm4, %v6837_v28 }
 0x4df   :  { %v6294_v12 = vpop.f32.mrf.mxu1 }
 0x4e1   :  { %v8162_v30 = vpop.f32.mrf.mxu1 }
 0x4e3   :  { %v6297_v35 = vpop.f32.mrf.mxu1 }
 0x4e5   :  { %6392 = vmatmul.mubr.msk.bf16.gmra.mxu0 %vm2059_vm4, %v6838_v31  ;;  %v2338_v11 = vpop.f32.mrf.mxu1 }
 0x4e6   :  { %6395 = vmatprep.mubr.msk.bf16.mxu0 %vm2059_vm4, %v6839_v27 }
 0x4e7   :  { %v8164_v33 = vpop.f32.mrf.mxu1 }
 0x4e9   :  { %v8166_v13 = vpop.f32.mrf.mxu1 }
 0x4eb   :  { %v8168_v36 = vpop.f32.mrf.mxu1 }
 0x4ed   :  { %6396 = vmatmul.mubr.msk.bf16.gmra.mxu0 %vm2059_vm4, %v6840_v40  ;;  %v8170_v23 = vpop.f32.mrf.mxu1 }
 0x4ee   :  { %6399 = vmatprep.mubr.msk.bf16.mxu0 %vm2059_vm4, %v6841_v7 }
 0x4ef   :  { %v8174_v14 = vpop.f32.mrf.mxu1 }
 0x4f1   :  { %v8176_v29 = vpop.f32.mrf.mxu1 }
 0x4f3   :  { %v8182_v22 = vpop.f32.mrf.mxu1 }
 0x4f5   :  { %6400 = vmatmul.mubr.msk.bf16.gmra.mxu0 %vm2059_vm4, %v6842_v2  ;;  %v8188_v51 = vpop.f32.mrf.mxu1 }
 0x4f6   :  { %6403 = vmatprep.mubr.msk.bf16.mxu0 %vm2059_vm4, %v6843_v24 }
 0x4f7   :  { %v8194_v32 = vpop.f32.mrf.mxu1 }
 0x4f9   :  { %v8200_v57 = vpop.f32.mrf.mxu1 }
 0x4fb   :  { %v8206_v20 = vpop.f32.mrf.mxu1 }
 0x4fd   :  { %6404 = vmatmul.mubr.msk.bf16.gmra.mxu0 %vm2059_vm4, %v6844_v48  ;;  %v8212_v38 = vpop.f32.mrf.mxu1 }
 0x4fe   :  { %9000 = vst [vmem:[#allocation6_spill] sm:$0xff] %v8212_v38 }
 0x4ff   :  { %v8218_v25 = vpop.f32.mrf.mxu1 }
 0x501   :  { %v8222_v10 = vpop.f32.mrf.mxu1 }
 0x54d   :  { %v6261_v54 = vpop.f32.mrf.mxu0 }
 0x54e   :  { %v2331_v47 = vadd.f32 %v6293_v44, %v6261_v54 }
 0x54f   :  { %v2126_v52 = vpop.f32.mrf.mxu0 }
 0x550   :  { %v2323_v60 = vadd.f32 %v2322_v49, %v2126_v52 }
 0x551   :  { %v6262_v37 = vpop.f32.mrf.mxu0 }
 0x552   :  { %v2334_v42 = vadd.f32 %v6294_v12, %v6262_v37 }
 0x553   :  { %v8172_v63 = vpop.f32.mrf.mxu0 }
 0x555   :  { %v6265_v46 = vpop.f32.mrf.mxu0 }
 0x556   :  { %v2347_v53 = vadd.f32 %v6297_v35, %v6265_v46 }
 0x557   :  { %v2142_v62 = vpop.f32.mrf.mxu0 }
 0x558   :  { %v2339_v15 = vadd.f32 %v2338_v11, %v2142_v62 }
 0x559   :  { %v8178_v16 = vpop.f32.mrf.mxu0 }
 0x55b   :  { %v8180_v59 = vpop.f32.mrf.mxu0 }
 0x55d   :  { %v8184_v26 = vpop.f32.mrf.mxu0 }
 0x55f   :  { %v8186_v1 = vpop.f32.mrf.mxu0 }
 0x561   :  { %v8190_v19 = vpop.f32.mrf.mxu0 }
 0x563   :  { %v8192_v6 = vpop.f32.mrf.mxu0 }
 0x565   :  { %v8196_v21 = vpop.f32.mrf.mxu0  ;;  %v8226_v4 = vpop.f32.mrf.mxu1 }
 0x566   :  { %9003 = vst [vmem:[#allocation4_spill] sm:$0xff] %v8226_v4 }
 0x567   :  { %v8198_v58 = vpop.f32.mrf.mxu0  ;;  %v8232_v5 = vpop.f32.mrf.mxu1 }
 0x568   :  { %9005 = vst [vmem:[#allocation5_spill] sm:$0xff] %v8232_v5 }
 0x569   :  { %v8202_v56 = vpop.f32.mrf.mxu0  ;;  %v8238_v40 = vpop.f32.mrf.mxu1 }
 0x56a   :  { %9007 = vst [vmem:[#allocation10_spill] sm:$0xff] %v8238_v40  ;;  %v2363_v40 = vadd.f32 %v8168_v36, %v8184_v26  ;;  %v2342_v36 = vadd.f32 %v8166_v13, %v8180_v59 }
 0x56b   :  { %v8204_v0 = vpop.f32.mrf.mxu0  ;;  %v8242_v24 = vpop.f32.mrf.mxu1 }
 0x56c   :  { %9008 = vst [vmem:[#allocation11_spill] sm:$0xff] %v8242_v24 }
 0x56d   :  { %v8208_v61 = vpop.f32.mrf.mxu0  ;;  %v8244_v49 = vpop.f32.mrf.mxu1 }
 0x56f   :  { %v8210_v50 = vpop.f32.mrf.mxu0  ;;  %v8246_v11 = vpop.f32.mrf.mxu1 }
 0x570   :  { %8999 = vst [vmem:[#allocation2_spill] sm:$0xff] %v8210_v50  ;;  %9009 = vst [vmem:[#allocation12_spill] sm:$0xff] %v8246_v11 }
 0x571   :  { %v8214_v41 = vpop.f32.mrf.mxu0  ;;  %v8248_v37 = vpop.f32.mrf.mxu1 }
 0x573   :  { %v8216_v45 = vpop.f32.mrf.mxu0  ;;  %v8250_v62 = vpop.f32.mrf.mxu1 }
 0x575   :  { %v6325_v34 = vpop.f32.mrf.mxu0 }
 0x576   :  { %v8220_v43 = vadd.f32 %v6325_v34, %v2331_v47  ;;  %v6365_v34 = vpop.f32.mrf.mxu1 }
 0x577   :  { %v2561_v39 = vpop.f32.mrf.mxu0 }
 0x578   :  { %9001 = vst [vmem:[#allocation3_spill] sm:$0xff] %v8220_v43  ;;  %v8224_v17 = vadd.f32 %v2561_v39, %v2323_v60 }
 0x579   :  { %v6326_v55 = vpop.f32.mrf.mxu0 }
 0x57a   :  { %9002 = vst [vmem:[#allocation7_spill] sm:$0xff] %v8224_v17  ;;  %v8228_v9 = vadd.f32 %v6326_v55, %v2334_v42  ;;  %v2852_v42 = vpop.f32.mrf.mxu1 }
 0x57b   :  { %v8230_v3 = vpop.f32.mrf.mxu0 }
 0x57c   :  { %9004 = vst [vmem:[#allocation8_spill] sm:$0xff] %v8228_v9 }
 0x57d   :  { %v6329_v8 = vpop.f32.mrf.mxu0 }
 0x57e   :  { %v8234_v28 = vadd.f32 %v6329_v8, %v2347_v53 }
 0x57f   :  { %v2577_v31 = vpop.f32.mrf.mxu0 }
 0x580   :  { %v8236_v27 = vadd.f32 %v2577_v31, %v2339_v15  ;;  %v6366_v31 = vpop.f32.mrf.mxu1 }
 0x581   :  { %v6330_v7 = vpop.f32.mrf.mxu0 }
 0x582   :  { %9006 = vst [vmem:[#allocation9_spill] sm:$0xff] %v8236_v27  ;;  %v2855_v17 = vpop.f32.mrf.mxu1 }
 0x583   :  { %v8240_v2 = vpop.f32.mrf.mxu0 }
 0x585   :  { %v6333_v48 = vpop.f32.mrf.mxu0 }
 0x587   :  { %v2593_v44 = vpop.f32.mrf.mxu0 }
 0x589   :  { %v6334_v12 = vpop.f32.mrf.mxu0 }
 0x58b   :  { %v2596_v35 = vpop.f32.mrf.mxu0 }
 0x58d   :  { %v6337_v54 = vpop.f32.mrf.mxu0 }
 0x58f   :  { %v2609_v52 = vpop.f32.mrf.mxu0 }
 0x591   :  { %v6338_v46 = vpop.f32.mrf.mxu0 }
 0x593   :  { %v2612_v53 = vpop.f32.mrf.mxu0 }
 0x595   :  { %v8252_v15 = vpop.f32.mrf.mxu0 }
 0x596   :  { %9010 = vst [vmem:[#allocation13_spill] sm:$0xff] %v8252_v15 }
 0x597   :  { %v8254_v47 = vpop.f32.mrf.mxu0 }
 0x598   :  { %9011 = vst [vmem:[#allocation14_spill] sm:$0xff] %v8254_v47  ;;  %v6369_v47 = vpop.f32.mrf.mxu1 }
 0x599   :  { %v8256_v60 = vpop.f32.mrf.mxu0 }
 0x59a   :  { %9012 = vst [vmem:[#allocation15_spill] sm:$0xff] %v8256_v60 }
 0x59b   :  { %v8258_v39 = vpop.f32.mrf.mxu0 }
 0x59c   :  { %9013 = vst [vmem:[#allocation16_spill] sm:$0xff] %v8258_v39  ;;  %v2868_v39 = vpop.f32.mrf.mxu1 }
 0x59d   :  { %v8260_v55 = vpop.f32.mrf.mxu0 }
 0x59e   :  { %9014 = vst [vmem:[#allocation17_spill] sm:$0xff] %v8260_v55  ;;  %v6370_v55 = vpop.f32.mrf.mxu1 }
 0x59f   :  { %v8262_v8 = vpop.f32.mrf.mxu0 }
 0x5a0   :  { %9015 = vst [vmem:[#allocation18_spill] sm:$0xff] %v8262_v8  ;;  %v2379_v8 = vadd.f32 %v8182_v22, %v8196_v21  ;;  %v2358_v22 = vadd.f32 %v8176_v29, %v8192_v6 }
 0x5a1   :  { %v8264_v18 = vpop.f32.mrf.mxu0 }
 0x5a2   :  { %9016 = vst [vmem:[#allocation19_spill] sm:$0xff] %v8264_v18  ;;  %v2366_v18 = vadd.f32 %v8174_v14, %v8190_v19  ;;  %v2654_v11 = vadd.f32 %v6337_v54, %v2379_v8  ;;  %v2350_v19 = vadd.f32 %v8164_v33, %v8178_v16 }
 0x5a3   :  { %v8266_v5 = vpop.f32.mrf.mxu0 }
 0x5a4   :  { %9017 = vst [vmem:[#allocation20_spill] sm:$0xff] %v8266_v5  ;;  %v2382_v5 = vadd.f32 %v8194_v32, %v8202_v56  ;;  %v2651_v21 = vadd.f32 %v6334_v12, %v2366_v18  ;;  %v2871_v32 = vpop.f32.mrf.mxu1  ;;  %v2647_v29 = vadd.f32 %v6330_v7, %v2350_v19 }
 0x5a5   :  { %v8268_v24 = vpop.f32.mrf.mxu0 }
 0x5a6   :  { %9018 = vst [vmem:[#allocation21_spill] sm:$0xff] %v8268_v24  ;;  %v2655_v27 = vadd.f32 %v6338_v46, %v2382_v5  ;;  %v2913_v5 = vadd.f32 %v6369_v47, %v2654_v11  ;;  %v2910_v26 = vadd.f32 %v6366_v31, %v2651_v21  ;;  %v6373_v6 = vpop.f32.mrf.mxu1  ;;  %v2906_v7 = vadd.f32 %v8248_v37, %v2647_v29  ;;  %v9030_v21 = vld [vmem:[#allocation3_spill] sm:$0xff] }
 0x5a7   :  { %v8270_v15 = vpop.f32.mrf.mxu0 }
 0x5a8   :  { %9019 = vst [vmem:[#allocation22_spill] sm:$0xff] %v8270_v15  ;;  %v2371_v15 = vadd.f32 %v8188_v51, %v8198_v58  ;;  %v2355_v51 = vadd.f32 %v8170_v23, %v8186_v1  ;;  %v2650_v58 = vadd.f32 %v6333_v48, %v2363_v40  ;;  %v2914_v54 = vadd.f32 %v6370_v55, %v2655_v27 }
 0x5a9   :  { %v6394_v4 = vpop.f32.mrf.mxu0  ;;  %v2645_v23 = vadd.f32 %v8240_v2, %v2342_v36 }
 0x5aa   :  { %v2652_v9 = vadd.f32 %v2609_v52, %v2371_v15  ;;  %v2648_v18 = vadd.f32 %v2593_v44, %v2355_v51  ;;  %v2909_v16 = vadd.f32 %v6365_v34, %v2650_v58  ;;  %v2884_v44 = vpop.f32.mrf.mxu1  ;;  %v2398_v15 = vadd.f32 %v8218_v25, %v8214_v41  ;;  %v9033_v51 = vld [vmem:[#allocation13_spill] sm:$0xff] }
 0x5ab   :  { %v8272_v43 = vpop.f32.mrf.mxu0  ;;  %v2904_v37 = vadd.f32 %v8250_v62, %v2645_v23  ;;  %v2395_v41 = vadd.f32 %v8206_v20, %v8208_v61  ;;  %v2390_v25 = vadd.f32 %v8222_v10, %v8216_v45  ;;  %v9024_v62 = vld [vmem:[#allocation12_spill] sm:$0xff]  ;;  %v9028_v61 = vld [vmem:[#allocation2_spill] sm:$0xff] }
 0x5ac   :  { %9020 = vst [vmem:[#allocation23_spill] sm:$0xff] %v8272_v43  ;;  %v2374_v43 = vadd.f32 %v8200_v57, %v8204_v0  ;;  %v2649_v57 = vadd.f32 %v2596_v35, %v2358_v22  ;;  %v2907_v2 = vadd.f32 %v2852_v42, %v2648_v18  ;;  %v9029_v45 = vld [vmem:[#allocation6_spill] sm:$0xff] }
 0x5ad   :  { %v6397_v38 = vpop.f32.mrf.mxu0  ;;  %v9026_v55 = vld [vmem:[#allocation21_spill] sm:$0xff]  ;;  %v2387_v10 = vadd.f32 %v9029_v45, %v9028_v61  ;;  %v2658_v58 = vadd.f32 %v9033_v51, %v2395_v41  ;;  %v9039_v23 = vld [vmem:[#allocation14_spill] sm:$0xff] }
 0x5ae   :  { %v2653_v14 = vadd.f32 %v2612_v53, %v2374_v43  ;;  %v2911_v43 = vadd.f32 %v2868_v39, %v2652_v9  ;;  %v2908_v1 = vadd.f32 %v2855_v17, %v2649_v57  ;;  %v2326_v9 = vadd.f32 %v8162_v30, %v8172_v63  ;;  %v6374_v39 = vpop.f32.mrf.mxu1  ;;  %v6850_v61 = vld [vmem:[%s8972_s5 + $0x54] ss:$8 sps:$4 sm:$0xff]   ;;  %v3587_v45 = vld [vmem:[%s8971_s6] sm:$0xff] }
 0x5af   :  { %v3112_v50 = vpop.f32.mrf.mxu0  ;;  %v8310_v11 = vadd.f32 %v6397_v38, %v2909_v16  ;;  %v2905_v30 = vadd.f32 %v8244_v49, %v8234_v28  ;;  %v8323_v38 = vadd.f32 %v6394_v4, %v2906_v7  ;;  %v9022_v28 = vld [vmem:[#allocation10_spill] sm:$0xff]  ;;  %v2656_v16 = vadd.f32 %v9039_v23, %v2387_v10  ;;  %v9041_v7 = vld [vmem:[#allocation20_spill] sm:$0xff]  ;;  %v3588_v10 = vld [vmem:[%s8971_s6 + $0x8] sm:$0xff]  ;;  %5557 = vmatprep.mubr.msk.bf16.mxu0 %vm3344_vm5, %v6850_v61 }
 0x5b0   :  { %v2912_v52 = vadd.f32 %v2871_v32, %v2653_v14  ;;  %v2641_v47 = vadd.f32 %v8230_v3, %v2326_v9  ;;  %v9021_v3 = vld [vmem:[#allocation8_spill] sm:$0xff]  ;;  %v9032_v14 = vld [vmem:[#allocation11_spill] sm:$0xff]  ;;  %v9036_v29 = vld [vmem:[#allocation22_spill] sm:$0xff]  ;;  %v9043_v23 = vmov 0  }
 0x5b1   :  { %v6398_v60 = vpop.f32.mrf.mxu0  ;;  %v2902_v49 = vadd.f32 %v9022_v28, %v9021_v3  ;;  %v8340_v8 = vadd.f32 %v9026_v55, %v2905_v30  ;;  %v9031_v32 = vld [vmem:[#allocation4_spill] sm:$0xff]  ;;  %v2915_v3 = vadd.f32 %v2884_v44, %v2656_v16  ;;  %v3595_v44 = vld [vmem:[%s8971_s6 + $0x40] sm:$0xff] }
 0x5b2   :  { %v8299_v27 = vadd.f32 %v6398_v60, %v2910_v26  ;;  %v9023_v60 = vld [vmem:[#allocation9_spill] sm:$0xff]  ;;  %v2900_v19 = vadd.f32 %v9032_v14, %v2641_v47  ;;  %v3589_v55 = vld [vmem:[%s8971_s6 + $0x10] sm:$0xff] }
 0x5b3   :  { %v3115_v24 = vpop.f32.mrf.mxu0  ;;  %v2903_v4 = vadd.f32 %v9024_v62, %v9023_v60  ;;  %v9027_v31 = vld [vmem:[#allocation23_spill] sm:$0xff]  ;;  %v6670_v26 = vpack.i.bf16 %v8323_v38, %v8340_v8 }
 0x5b4   :  { %v8312_v17 = vadd.f32 %v3115_v24, %v2908_v1  ;;  %v8325_v24 = vadd.f32 %v3112_v50, %v2907_v2  ;;  %v6660_v34 = vpack.i.bf16 %v8299_v27, %v8310_v11  ;;  %v9025_v50 = vld [vmem:[#allocation15_spill] sm:$0xff]  ;;  %v8343_v22 = vadd.f32 %v9027_v31, %v2904_v37  ;;  %v2887_v1 = vpop.f32.mrf.mxu1  ;;  %v9042_v37 = vld [vmem:[#allocation18_spill] sm:$0xff]  ;;  %v3590_v31 = vld [vmem:[%s8971_s6 + $0x18] sm:$0xff] }
 0x5b5   :  { %v6401_v56 = vpop.f32.mrf.mxu0  ;;  %v2659_v42 = vadd.f32 %v9025_v50, %v2398_v15  ;;  %v8359_v18 = vadd.f32 %v9036_v29, %v2903_v4  ;;  %v8371_v2 = vadd.f32 %v9041_v7, %v2900_v19  ;;  %v2917_v15 = vadd.f32 %v6373_v6, %v2658_v58  ;;  %v3591_v50 = vld [vmem:[%s8971_s6 + $0x20] sm:$0xff] }
 0x5b6   :  { %v8294_v46 = vadd.f32 %v6401_v56, %v2913_v5  ;;  %v6665_v20 = vpack.i.bf16 %v8312_v17, %v8325_v24  ;;  %v2901_v56 = vadd.f32 %v9031_v32, %v9030_v21 }
 0x5b7   :  { %v3128_v0 = vpop.f32.mrf.mxu0 }
 0x5b8   :  { %v8301_v48 = vadd.f32 %v3128_v0, %v2911_v43  ;;  %v9034_v0 = vld [vmem:[#allocation16_spill] sm:$0xff]  ;;  %v9038_v43 = vld [vmem:[#allocation5_spill] sm:$0xff] }
 0x5b9   :  { %v6402_v12 = vpop.f32.mrf.mxu0  ;;  %v2657_v5 = vadd.f32 %v9034_v0, %v2390_v25 }
 0x5ba   :  { %v8296_v33 = vadd.f32 %v6402_v12, %v2914_v54  ;;  %v9035_v54 = vld [vmem:[#allocation19_spill] sm:$0xff] }
 0x5bb   :  { %v3131_v40 = vpop.f32.mrf.mxu0  ;;  %v8356_v36 = vadd.f32 %v9035_v54, %v2902_v49  ;;  %v9037_v12 = vld [vmem:[#allocation7_spill] sm:$0xff]  ;;  %v2916_v30 = vadd.f32 %v2887_v1, %v2657_v5 }
 0x5bc   :  { %v6650_v13 = vpack.i.bf16 %v8296_v33, %v8294_v46  ;;  %v8305_v59 = vadd.f32 %v3131_v40, %v2912_v52  ;;  %v2899_v52 = vadd.f32 %v9038_v43, %v9037_v12  ;;  %v2918_v40 = vadd.f32 %v6374_v39, %v2659_v42  ;;  %v3594_v39 = vld [vmem:[%s8971_s6 + $0x38] sm:$0xff]  ;;  %v3592_v42 = vld [vmem:[%s8971_s6 + $0x28] sm:$0xff] }
 0x5bd   :  { %v6405_v35 = vpop.f32.mrf.mxu0 }
 0x5be   :  { %v6655_v53 = vpack.i.bf16 %v8305_v59, %v8301_v48  ;;  %6651 = vrot.lane.b32.xlu1 %v6650_v13, %s6925_s21  ;;  %v9040_v13 = vld [vmem:[#allocation17_spill] sm:$0xff]  ;;  %v8386_v49 = vadd.f32 %v6405_v35, %v2917_v15  ;;  %v3596_v35 = vld [vmem:[%s8971_s6 + $0x48] sm:$0xff] }
 0x5bf   :  { %v3144_v63 = vpop.f32.mrf.mxu0  ;;  %v8368_v9 = vadd.f32 %v9040_v13, %v2901_v56 }
 0x5c0   :  { %6656 = vrot.lane.b32.xlu0 %v6655_v53, %s6925_s21  ;;  %v6675_v53 = vpack.i.bf16 %v8343_v22, %v8359_v18  ;;  %v8391_v6 = vadd.f32 %v3144_v63, %v2915_v3  ;;  %v3593_v63 = vld [vmem:[%s8971_s6 + $0x30] sm:$0xff] }
 0x5c1   :  { %v6406_v57 = vpop.f32.mrf.mxu0  ;;  %v6680_v41 = vpack.i.bf16 %v8356_v36, %v8368_v9 }
 0x5c2   :  { %6661 = vrot.lane.b32.xlu1 %v6660_v34, %s6925_s21  ;;  %v8377_v34 = vadd.f32 %v9042_v37, %v2899_v52  ;;  %v8381_v25 = vadd.f32 %v6406_v57, %v2918_v40 }
 0x5c3   :  { %v3147_v47 = vpop.f32.mrf.mxu0 }
 0x5c4   :  { %6666 = vrot.lane.b32.xlu0 %v6665_v20, %s6925_s21  ;;  %v6685_v28 = vpack.i.bf16 %v8371_v2, %v8377_v34  ;;  %v8388_v60 = vadd.f32 %v3147_v47, %v2916_v30  ;;  %v6690_v62 = vpack.i.bf16 %v8381_v25, %v8386_v49  ;;  %v6847_v20 = vld [vmem:[%s8972_s5 + $0x4] ss:$8 sps:$4 sm:$0xff]  }
 0x5c5   :  { %5532 = vmatprep.mubr.msk.bf16.mxu1 %vm3344_vm5, %v6847_v20 }
 0x5c6   :  { %6671 = vrot.lane.b32.xlu1 %v6670_v26, %s6925_s21  ;;  %v6695_v4 = vpack.i.bf16 %v8388_v60, %v8391_v6 }
 0x5c8   :  { %6676 = vrot.lane.b32.xlu0 %v6675_v53, %s6925_s21 }
 0x5ca   :  { %6681 = vrot.lane.b32.xlu1 %v6680_v41, %s6925_s21 }
 0x5cc   :  { %6686 = vrot.lane.b32.xlu0 %v6685_v28, %s6925_s21 }
 0x5ce   :  { %6691 = vrot.lane.b32.xlu1 %v6690_v62, %s6925_s21 }
 0x5d0   :  { %6696 = vrot.lane.b32.xlu0 %v6695_v4, %s6925_s21 }
 0x5d2   :  { %3639 = vperm.xlu1 %6648, %v3595_v44  }
 0x5d4   :  { %3644 = vperm.xlu0 %6649, %v3596_v35  }
 0x5d6   :  { %3629 = vperm.xlu1 %6648, %v3593_v63  }
 0x5d8   :  { %3634 = vperm.xlu0 %6649, %v3594_v39  }
 0x5da   :  { %3619 = vperm.xlu1 %6648, %v3591_v50  }
 0x5dc   :  { %3624 = vperm.xlu0 %6649, %v3592_v42  }
 0x5de   :  { %3609 = vperm.xlu1 %6648, %v3589_v55  }
 0x5e0   :  { %3614 = vperm.xlu0 %6649, %v3590_v31  }
 0x5e2   :  { %3599 = vperm.xlu1 %6648, %v3587_v45  }
 0x5e4   :  { %3604 = vperm.xlu0 %6649, %v3588_v10  }
 0x630   :  { %v6652_v21 = vpop.permute.xlu1 %6651 }
 0x631   :  { %v6654_v32 = vunpack.i.h.bf16 %v6652_v21  ;;  %v6653_v56 = vunpack.i.l.bf16 %v6652_v21  ;;  %v6848_v21 = vld [vmem:[%s8972_s5 + $0x50] ss:$8 sps:$4 sm:$0xff]  }
 0x632   :  { %v6657_v14 = vpop.permute.xlu0 %6656 }
 0x633   :  { %v3274_v19 = vmax.f32 %v8296_v33, %v6654_v32  ;;  %v3273_v51 = vmax.f32 %v8294_v46, %v6653_v56  ;;  %v6659_v58 = vunpack.i.h.bf16 %v6657_v14  ;;  %v6658_v57 = vunpack.i.l.bf16 %v6657_v14  ;;  %v6855_v32 = vld [vmem:[%s8972_s5 + $0x10] ss:$8 sps:$4 sm:$0xff]   ;;  %v6856_v56 = vld [vmem:[%s8972_s5 + $0x60] ss:$8 sps:$4 sm:$0xff]   ;;  %v6857_v14 = vld [vmem:[%s8972_s5 + $0x24] ss:$8 sps:$4 sm:$0xff]  }
 0x634   :  { %v6662_v0 = vpop.permute.xlu1 %6661 }
 0x635   :  { %v3286_v5 = vpack.c.bf16 %v3274_v19, %v3273_v51  ;;  %v3272_v54 = vmax.f32 %v8305_v59, %v6659_v58  ;;  %v3271_v29 = vmax.f32 %v8301_v48, %v6658_v57  ;;  %v6664_v26 = vunpack.i.h.bf16 %v6662_v0  ;;  %v6859_v19 = vld [vmem:[%s8972_s5 + $0x74] ss:$8 sps:$4 sm:$0xff]   ;;  %v6861_v51 = vld [vmem:[%s8972_s5 + $0x20] ss:$8 sps:$4 sm:$0xff]   ;;  %v6862_v58 = vld [vmem:[%s8972_s5 + $0x70] ss:$8 sps:$4 sm:$0xff]  }
 0x636   :  { %v6663_v12 = vunpack.i.l.bf16 %v6662_v0  ;;  %v6667_v43 = vpop.permute.xlu0 %6666  ;;  %v6863_v57 = vld [vmem:[%s8972_s5 + $0x34] ss:$8 sps:$4 sm:$0xff]   ;;  %v6865_v0 = vld [vmem:[%s8972_s5 + $0x84] ss:$8 sps:$4 sm:$0xff]  }
 0x637   :  { %3361 = vmatpush1.bf16.msra.mxu1 %v3286_v5  ;;  %3505 = vmatpush1.bf16.msra.mxu0 %v3286_v5  ;;  %v3285_v52 = vpack.c.bf16 %v3272_v54, %v3271_v29  ;;  %v3270_v46 = vmax.f32 %v8299_v27, %v6664_v26  ;;  %v6669_v16 = vunpack.i.h.bf16 %v6667_v43  ;;  %v6668_v1 = vunpack.i.l.bf16 %v6667_v43  ;;  %v6867_v5 = vld [vmem:[%s8972_s5 + $0x30] ss:$8 sps:$4 sm:$0xff]   ;;  %v6868_v54 = vld [vmem:[%s8972_s5 + $0x80] ss:$8 sps:$4 sm:$0xff]   ;;  %v6869_v29 = vld [vmem:[%s8972_s5 + $0x44] ss:$8 sps:$4 sm:$0xff]  }
 0x638   :  { %3362 = vmatprep.subr.bf16.mxu1 %v9043_v23  ;;  %3506 = vmatprep.subr.bf16.mxu0 %v9043_v23  ;;  %v3269_v33 = vmax.f32 %v8310_v11, %v6663_v12  ;;  %v6672_v40 = vpop.permute.xlu1 %6671  ;;  %v6871_v26 = vld [vmem:[%s8972_s5 + $0x94] ss:$8 sps:$4 sm:$0xff]   ;;  %v6873_v12 = vld [vmem:[%s8972_s5 + $0x40] ss:$8 sps:$4 sm:$0xff]   ;;  %v6874_v43 = vld [vmem:[%s8972_s5 + $0x90] ss:$8 sps:$4 sm:$0xff]  }
 0x639   :  { %v6674_v48 = vunpack.i.h.bf16 %v6672_v40  ;;  %v6673_v59 = vunpack.i.l.bf16 %v6672_v40  ;;  %v3268_v7 = vmax.f32 %v8312_v17, %v6669_v16  ;;  %v3267_v53 = vmax.f32 %v8325_v24, %v6668_v1 }
 0x63a   :  { %v3284_v13 = vpack.c.bf16 %v3270_v46, %v3269_v33  ;;  %v6677_v15 = vpop.permute.xlu0 %6676 }
 0x63b   :  { %3363 = vmatpush1.bf16.msra.mxu1 %v3285_v52  ;;  %3507 = vmatpush1.bf16.msra.mxu0 %v3285_v52  ;;  %v3266_v27 = vmax.f32 %v8323_v38, %v6674_v48  ;;  %v3265_v11 = vmax.f32 %v8340_v8, %v6673_v59  ;;  %v3283_v47 = vpack.c.bf16 %v3268_v7, %v3267_v53  ;;  %v6679_v30 = vunpack.i.h.bf16 %v6677_v15 }
 0x63c   :  { %3364 = vmatprep.subr.bf16.mxu1 %v9043_v23  ;;  %3508 = vmatprep.subr.bf16.mxu0 %v9043_v23  ;;  %v6678_v37 = vunpack.i.l.bf16 %v6677_v15  ;;  %v6682_v41 = vpop.permute.xlu1 %6681 }
 0x63d   :  { %v3282_v17 = vpack.c.bf16 %v3266_v27, %v3265_v11  ;;  %v3264_v24 = vmax.f32 %v8343_v22, %v6679_v30  ;;  %v6684_v8 = vunpack.i.h.bf16 %v6682_v41  ;;  %v6683_v3 = vunpack.i.l.bf16 %v6682_v41 }
 0x63e   :  { %v3263_v38 = vmax.f32 %v8359_v18, %v6678_v37  ;;  %v6687_v28 = vpop.permute.xlu0 %6686 }
 0x63f   :  { %3365 = vmatpush1.bf16.msra.mxu1 %v3284_v13  ;;  %3509 = vmatpush1.bf16.msra.mxu0 %v3284_v13  ;;  %v6689_v62 = vunpack.i.h.bf16 %v6687_v28  ;;  %v6688_v4 = vunpack.i.l.bf16 %v6687_v28  ;;  %v3262_v35 = vmax.f32 %v8356_v36, %v6684_v8  ;;  %v3261_v63 = vmax.f32 %v8368_v9, %v6683_v3 }
 0x640   :  { %3366 = vmatprep.subr.bf16.mxu1 %v9043_v23  ;;  %3510 = vmatprep.subr.bf16.mxu0 %v9043_v23  ;;  %v3281_v44 = vpack.c.bf16 %v3264_v24, %v3263_v38  ;;  %v6692_v39 = vpop.permute.xlu1 %6691 }
 0x641   :  { %v3260_v22 = vmax.f32 %v8371_v2, %v6689_v62  ;;  %v3259_v18 = vmax.f32 %v8377_v34, %v6688_v4  ;;  %v3280_v50 = vpack.c.bf16 %v3262_v35, %v3261_v63  ;;  %v6694_v42 = vunpack.i.h.bf16 %v6692_v39 }
 0x642   :  { %v6693_v55 = vunpack.i.l.bf16 %v6692_v39  ;;  %v6697_v31 = vpop.permute.xlu0 %6696 }
 0x643   :  { %3367 = vmatpush1.bf16.msra.mxu1 %v3283_v47  ;;  %3511 = vmatpush1.bf16.msra.mxu0 %v3283_v47  ;;  %v3279_v36 = vpack.c.bf16 %v3260_v22, %v3259_v18  ;;  %v3278_v9 = vmax.f32 %v8381_v25, %v6694_v42  ;;  %v6699_v34 = vunpack.i.h.bf16 %v6697_v31  ;;  %v6698_v20 = vunpack.i.l.bf16 %v6697_v31 }
 0x644   :  { %3368 = vmatprep.subr.bf16.mxu1 %v9043_v23  ;;  %3512 = vmatprep.subr.bf16.mxu0 %v9043_v23  ;;  %v3277_v2 = vmax.f32 %v8386_v49, %v6693_v55  ;;  %v6845_v49 = vld [vmem:[%s8972_s5] ss:$8 sps:$4 sm:$0xff]  }
 0x645   :  { %v3276_v45 = vmax.f32 %v8388_v60, %v6699_v34  ;;  %v3275_v10 = vmax.f32 %v8391_v6, %v6698_v20  ;;  %v6851_v60 = vld [vmem:[%s8972_s5 + $0x14] ss:$8 sps:$4 sm:$0xff]   ;;  %v6853_v6 = vld [vmem:[%s8972_s5 + $0x64] ss:$8 sps:$4 sm:$0xff]  }
 0x646   :  { %v3288_v61 = vpack.c.bf16 %v3278_v9, %v3277_v2 }
 0x647   :  { %3369 = vmatpush1.bf16.msra.mxu1 %v3282_v17  ;;  %3513 = vmatpush1.bf16.msra.mxu0 %v3282_v17  ;;  %v3287_v25 = vpack.c.bf16 %v3276_v45, %v3275_v10 }
 0x648   :  { %3370 = vmatprep.subr.bf16.mxu1 %v9043_v23  ;;  %3514 = vmatprep.subr.bf16.mxu0 %v9043_v23 }
 0x64b   :  { %3371 = vmatpush1.bf16.msra.mxu1 %v3281_v44  ;;  %3515 = vmatpush1.bf16.msra.mxu0 %v3281_v44 }
 0x64c   :  { %3372 = vmatprep.subr.bf16.mxu1 %v9043_v23  ;;  %3516 = vmatprep.subr.bf16.mxu0 %v9043_v23 }
 0x64d   :  { %v3640_v47 = vpop.permute.xlu1 %3639 }
 0x64f   :  { %3373 = vmatpush1.bf16.msra.mxu1 %v3280_v50  ;;  %3517 = vmatpush1.bf16.msra.mxu0 %v3280_v50  ;;  %v3645_v15 = vpop.permute.xlu0 %3644 }
 0x650   :  { %3374 = vmatprep.subr.bf16.mxu1 %v9043_v23  ;;  %3518 = vmatprep.subr.bf16.mxu0 %v9043_v23 }
 0x651   :  { %v3630_v3 = vpop.permute.xlu1 %3629 }
 0x653   :  { %3375 = vmatpush1.bf16.msra.mxu1 %v3279_v36  ;;  %3519 = vmatpush1.bf16.msra.mxu0 %v3279_v36  ;;  %v3635_v24 = vpop.permute.xlu0 %3634 }
 0x654   :  { %3388 = vmatprep.subr.bf16.mxu1 %v9043_v23  ;;  %3532 = vmatprep.subr.bf16.mxu0 %v9043_v23 }
 0x655   :  { %v3620_v22 = vpop.permute.xlu1 %3619 }
 0x657   :  { %3389 = vmatpush2.bf16.msra.mxu1 %v3288_v61  ;;  %3533 = vmatpush2.bf16.msra.mxu0 %v3288_v61  ;;  %v3625_v35 = vpop.permute.xlu0 %3624 }
 0x658   :  { %3390 = vmatprep.subr.bf16.mxu1 %v9043_v23  ;;  %3534 = vmatprep.subr.bf16.mxu0 %v9043_v23 }
 0x659   :  { %v3610_v10 = vpop.permute.xlu1 %3609 }
 0x65b   :  { %3391 = vmatpush2.bf16.msra.mxu1 %v3287_v25  ;;  %3535 = vmatpush2.bf16.msra.mxu0 %v3287_v25  ;;  %v3615_v9 = vpop.permute.xlu0 %3614 }
 0x65e   :  { %3393 = vmatmul.mubr.bf16.vlgmr.msra.gmra.mxu1 %v6845_v49  ;;  %3537 = vmatmul.mubr.bf16.vlgmr.msra.gmra.mxu0 %v6848_v21 }
 0x65f   :  { %5533 = vmatprep.mubr.msk.bf16.mxu1 %vm3344_vm5, %v6851_v60  ;;  %5558 = vmatprep.mubr.msk.bf16.mxu0 %vm3344_vm5, %v6853_v6 }
 0x666   :  { %3401 = vmatmul.mubr.bf16.gmra.mxu1 %v6855_v32  ;;  %3545 = vmatmul.mubr.bf16.gmra.mxu0 %v6856_v56 }
 0x667   :  { %5534 = vmatprep.mubr.msk.bf16.mxu1 %vm3344_vm5, %v6857_v14  ;;  %5559 = vmatprep.mubr.msk.bf16.mxu0 %vm3344_vm5, %v6859_v19 }
 0x66e   :  { %3409 = vmatmul.mubr.bf16.gmra.mxu1 %v6861_v51  ;;  %3553 = vmatmul.mubr.bf16.gmra.mxu0 %v6862_v58 }
 0x66f   :  { %5535 = vmatprep.mubr.msk.bf16.mxu1 %vm3344_vm5, %v6863_v57  ;;  %5560 = vmatprep.mubr.msk.bf16.mxu0 %vm3344_vm5, %v6865_v0 }
 0x676   :  { %3417 = vmatmul.mubr.bf16.gmra.mxu1 %v6867_v5  ;;  %3561 = vmatmul.mubr.bf16.gmra.mxu0 %v6868_v54 }
 0x677   :  { %5536 = vmatprep.mubr.msk.bf16.mxu1 %vm3344_vm5, %v6869_v29  ;;  %5561 = vmatprep.mubr.msk.bf16.mxu0 %vm3344_vm5, %v6871_v26 }
 0x67e   :  { %3425 = vmatmul.mubr.bf16.gmra.mxu1 %v6873_v12  ;;  %3569 = vmatmul.mubr.bf16.gmra.mxu0 %v6874_v43 }
 0x71e   :  { %v8538_v52 = vpop.f32.mrf.mxu1  ;;  %v8540_v23 = vpop.f32.mrf.mxu0 }
 0x720   :  { %v3396_v46 = vpop.f32.mrf.mxu1  ;;  %v3540_v33 = vpop.f32.mrf.mxu0 }
 0x722   :  { %v8542_v16 = vpop.f32.mrf.mxu1  ;;  %v8544_v1 = vpop.f32.mrf.mxu0 }
 0x724   :  { %v3399_v40 = vpop.f32.mrf.mxu1  ;;  %v3543_v48 = vpop.f32.mrf.mxu0 }
 0x725   :  { %v3578_v40 = vmax.f32 %v8542_v16, %v8544_v1 }
 0x726   :  { %v3402_v59 = vpop.f32.mrf.mxu1  ;;  %v3546_v13 = vpop.f32.mrf.mxu0 }
 0x727   :  { %v3579_v2 = vmax.f32 %v3402_v59, %v3546_v13 }
 0x728   :  { %v3404_v7 = vpop.f32.mrf.mxu1  ;;  %v3548_v53 = vpop.f32.mrf.mxu0 }
 0x729   :  { %v3649_v6 = vadd.f32 %v3610_v10, %v3579_v2  ;;  %v3577_v7 = vmax.f32 %v8538_v52, %v8540_v23  ;;  %v4674_v2 = vld [vmem:[%s8974_s8 + $0x10] sm:$0xff]  ;;  %v4677_v10 = vld [vmem:[%s8974_s8 + $0x28] sm:$0xff] }
 0x72a   :  { %v3405_v27 = vpop.f32.mrf.mxu1  ;;  %v3549_v11 = vpop.f32.mrf.mxu0 }
 0x72b   :  { %v3580_v55 = vmax.f32 %v3405_v27, %v3549_v11  ;;  %v3659_v29 = vmax.f32 %v3649_v6, 0.0  ;;  %v4816_v6 = vld [vmem:[%s8975_s10 + $0x28] sm:$0xff] }
 0x72c   :  { %v3407_v30 = vpop.f32.mrf.mxu1  ;;  %v3551_v37 = vpop.f32.mrf.mxu0 }
 0x72d   :  { %v3650_v25 = vadd.f32 %v3615_v9, %v3580_v55  ;;  %v6894_v55 = vld [vmem:[%s8973_s7 + $0x38] ss:$0 sps:$4 sm:$0xff]  }
 0x72e   :  { %v3410_v41 = vpop.f32.mrf.mxu1  ;;  %v3554_v17 = vpop.f32.mrf.mxu0  ;;  %v4683_v9 = vld [vmem:[%s8974_s8 + $0x58] sm:$0xff] }
 0x72f   :  { %v3660_v58 = vmax.f32 %v3650_v25, 0.0  ;;  %v3581_v26 = vmax.f32 %v3410_v41, %v3554_v17  ;;  %v3600_v17 = vpop.permute.xlu1 %3599  ;;  %v4820_v25 = vld [vmem:[%s8975_s10 + $0x48] sm:$0xff] }
 0x730   :  { %v3412_v38 = vpop.f32.mrf.mxu1  ;;  %v3556_v8 = vpop.f32.mrf.mxu0 }
 0x731   :  { %v8552_v48 = vpack.c.bf16 %v3660_v58, %v3659_v29  ;;  %v3651_v53 = vadd.f32 %v3620_v22, %v3581_v26  ;;  %v6877_v8 = vld [vmem:[%s8973_s7] sm:$0xff]   ;;  %v5026_v58 = vld [vmem:[%s8976_s12 + $0x8] sm:$0xff] }
 0x732   :  { %v3413_v28 = vpop.f32.mrf.mxu1  ;;  %v3557_v62 = vpop.f32.mrf.mxu0  ;;  %6443 = vmatprep.mubr.msk.bf16.mxu0 %vm3766_vm6, %v6877_v8  ;;  %v4680_v22 = vld [vmem:[%s8974_s8 + $0x40] sm:$0xff]  ;;  %v6905_v8 = vld [vmem:[%s8973_s7 + $0xd4] sm:$0xff]  }
 0x733   :  { %v3582_v57 = vmax.f32 %v3413_v28, %v3557_v62  ;;  %v3661_v16 = vmax.f32 %v3651_v53, 0.0  ;;  %v6885_v28 = vld [vmem:[%s8973_s7 + $0x10] sm:$0xff]   ;;  %v6886_v62 = vld [vmem:[%s8973_s7 + $0x18] sm:$0xff]  }
 0x734   :  { %v3415_v4 = vpop.f32.mrf.mxu1  ;;  %v3559_v44 = vpop.f32.mrf.mxu0  ;;  %v6880_v53 = vld [vmem:[%s8973_s7 + $0x54] sm:$0xff]  }
 0x735   :  { %v3652_v59 = vadd.f32 %v3625_v35, %v3582_v57  ;;  %v6889_v4 = vld [vmem:[%s8973_s7 + $0x20] sm:$0xff]   ;;  %v4682_v35 = vld [vmem:[%s8974_s8 + $0x50] sm:$0xff] }
 0x736   :  { %v3418_v63 = vpop.f32.mrf.mxu1  ;;  %v3562_v39 = vpop.f32.mrf.mxu0  ;;  %v4684_v44 = vld [vmem:[%s8974_s8 + $0x60] sm:$0xff]  ;;  %v4813_v57 = vld [vmem:[%s8975_s10 + $0x10] sm:$0xff] }
 0x737   :  { %v3583_v18 = vmax.f32 %v3418_v63, %v3562_v39  ;;  %v3662_v37 = vmax.f32 %v3652_v59, 0.0  ;;  %v6890_v63 = vld [vmem:[%s8973_s7 + $0x28] sm:$0xff]   ;;  %v6893_v39 = vld [vmem:[%s8973_s7 + $0x30] sm:$0xff]  }
 0x738   :  { %v3420_v50 = vpop.f32.mrf.mxu1  ;;  %v3564_v42 = vpop.f32.mrf.mxu0  ;;  %v6879_v59 = vld [vmem:[%s8973_s7 + $0x4c] sm:$0xff]  }
 0x739   :  { %v3653_v34 = vadd.f32 %v3630_v3, %v3583_v18  ;;  %v3669_v52 = vpack.c.bf16 %v3662_v37, %v3661_v16  ;;  %v6878_v3 = vld [vmem:[%s8973_s7 + $0x8] sm:$0xff]   ;;  %v4686_v18 = vld [vmem:[%s8974_s8 + $0x70] sm:$0xff]  ;;  %v6899_v16 = vld [vmem:[%s8973_s7 + $0xbc] sm:$0xff]  }
 0x73a   :  { %v3421_v31 = vpop.f32.mrf.mxu1  ;;  %v3565_v36 = vpop.f32.mrf.mxu0  ;;  %v4678_v50 = vld [vmem:[%s8974_s8 + $0x30] sm:$0xff]  ;;  %v4685_v42 = vld [vmem:[%s8974_s8 + $0x68] sm:$0xff] }
 0x73b   :  { %v3584_v20 = vmax.f32 %v3421_v31, %v3565_v36  ;;  %v3663_v32 = vmax.f32 %v3653_v34, 0.0  ;;  %v6897_v31 = vld [vmem:[%s8973_s7 + $0xb4] sm:$0xff]   ;;  %v4676_v36 = vld [vmem:[%s8974_s8 + $0x20] sm:$0xff]  ;;  %v4681_v34 = vld [vmem:[%s8974_s8 + $0x48] sm:$0xff] }
 0x73c   :  { %v3423_v61 = vpop.f32.mrf.mxu1  ;;  %v3567_v45 = vpop.f32.mrf.mxu0 }
 0x73d   :  { %v3654_v49 = vadd.f32 %v3635_v24, %v3584_v20  ;;  %v3647_v24 = vadd.f32 %v3600_v17, %v3577_v7  ;;  %v4672_v20 = vld [vmem:[%s8974_s8] sm:$0xff]  ;;  %v4679_v61 = vld [vmem:[%s8974_s8 + $0x38] sm:$0xff]  ;;  %v4821_v45 = vld [vmem:[%s8975_s10 + $0x50] sm:$0xff] }
 0x73e   :  { %v3426_v21 = vpop.f32.mrf.mxu1  ;;  %v3570_v60 = vpop.f32.mrf.mxu0  ;;  %v6883_v17 = vld [vmem:[%s8973_s7 + $0x6c] sm:$0xff]  }
 0x73f   :  { %v3664_v56 = vmax.f32 %v3654_v49, 0.0  ;;  %v3585_v14 = vmax.f32 %v3426_v21, %v3570_v60  ;;  %v3657_v23 = vmax.f32 %v3647_v24, 0.0  ;;  %v4675_v49 = vld [vmem:[%s8974_s8 + $0x18] sm:$0xff]  ;;  %v4673_v60 = vld [vmem:[%s8974_s8 + $0x8] sm:$0xff] }
 0x740   :  { %v3428_v19 = vpop.f32.mrf.mxu1  ;;  %v3572_v51 = vpop.f32.mrf.mxu0  ;;  %v4818_v21 = vld [vmem:[%s8975_s10 + $0x38] sm:$0xff] }
 0x741   :  { %v8546_v0 = vpack.c.bf16 %v3664_v56, %v3663_v32  ;;  %v3655_v12 = vadd.f32 %v3640_v47, %v3585_v14  ;;  %v3605_v47 = vpop.permute.xlu0 %3604  ;;  %v4819_v32 = vld [vmem:[%s8975_s10 + $0x40] sm:$0xff]  ;;  %v4814_v56 = vld [vmem:[%s8975_s10 + $0x18] sm:$0xff]  ;;  %v4817_v14 = vld [vmem:[%s8975_s10 + $0x30] sm:$0xff] }
 0x742   :  { %v3429_v5 = vpop.f32.mrf.mxu1  ;;  %v3573_v54 = vpop.f32.mrf.mxu0  ;;  %v3648_v30 = vadd.f32 %v3605_v47, %v3578_v40  ;;  %v4812_v19 = vld [vmem:[%s8975_s10 + $0x8] sm:$0xff]  ;;  %v4815_v51 = vld [vmem:[%s8975_s10 + $0x20] sm:$0xff] }
 0x743   :  { %v3586_v43 = vmax.f32 %v3429_v5, %v3573_v54  ;;  %3714 = vrot.lane.b32.xlu0 %v8546_v0, %s6927_s14  ;;  %v3665_v27 = vmax.f32 %v3655_v12, 0.0  ;;  %v5025_v5 = vld [vmem:[%s8976_s12] sm:$0xff] }
 0x744   :  { %v3431_v46 = vpop.f32.mrf.mxu1  ;;  %v3575_v33 = vpop.f32.mrf.mxu0  ;;  %v3658_v1 = vmax.f32 %v3648_v30, 0.0  ;;  %v6876_v40 = vld [vmem:[%s8973_s7 + $0x44] sm:$0xff]  }
 0x745   :  { %v3656_v13 = vadd.f32 %v3645_v15, %v3586_v43  ;;  %v6875_v15 = vld [vmem:[%s8973_s7 + $0x3c] sm:$0xff]  }
 0x746   :  { %v3667_v38 = vpack.c.bf16 %v3658_v1, %v3657_v23  ;;  %6417 = vmatprep.mubr.msk.bf16.mxu1 %vm3766_vm6, %v6875_v15  ;;  %v6884_v23 = vld [vmem:[%s8973_s7 + $0x74] ss:$0 sps:$4 sm:$0xff]   ;;  %v6887_v15 = vld [vmem:[%s8973_s7 + $0x78] sm:$0xff]  }
 0x747   :  { %v3666_v11 = vmax.f32 %v3656_v13, 0.0  ;;  %3710 = vrot.lane.b32.xlu0 %v8552_v48, %s6927_s14 }
 0x749   :  { %v3671_v41 = vpack.c.bf16 %v3666_v11, %v3665_v27  ;;  %v6881_v11 = vld [vmem:[%s8973_s7 + $0x5c] sm:$0xff]  }
 0x74b   :  { %4069 = vrot.lane.b32.xlu0 %v3671_v41, %s6929_s1  ;;  %3716 = vrot.lane.b32.xlu1 %v3671_v41, %s6927_s14 }
 0x74c   :  { %6433 = vmatprep.subr.bf16.mxu0 %v3671_v41 }
 0x74d   :  { %6434 = vmatpush3.bf16.msra.mxu0 %v3671_v41 }
 0x74e   :  { %6435 = vmatprep.subr.bf16.mxu0 %v8546_v0 }
 0x74f   :  { %4065 = vrot.lane.b32.xlu0 %v3669_v52, %s6929_s1  ;;  %3712 = vrot.lane.b32.xlu1 %v3669_v52, %s6927_s14 }
 0x751   :  { %6436 = vmatpush3.bf16.msra.mxu0 %v8546_v0 }
 0x752   :  { %6437 = vmatprep.subr.bf16.mxu0 %v3669_v52 }
 0x753   :  { %4061 = vrot.lane.b32.xlu0 %v3667_v38, %s6929_s1  ;;  %3708 = vrot.lane.b32.xlu1 %v3667_v38, %s6927_s14 }
 0x755   :  { %6438 = vmatpush3.bf16.msra.mxu0 %v3669_v52 }
 0x756   :  { %6439 = vmatprep.subr.bf16.mxu0 %v8552_v48 }
 0x757   :  { %4487 = vrot.lane.b32.xlu0 %v3671_v41, %s6931_s16  ;;  %4067 = vrot.lane.b32.xlu1 %v8546_v0, %s6929_s1 }
 0x759   :  { %6440 = vmatpush3.bf16.msra.mxu0 %v8552_v48 }
 0x75a   :  { %6441 = vmatprep.subr.bf16.mxu0 %v3667_v38 }
 0x75b   :  { %4485 = vrot.lane.b32.xlu0 %v8546_v0, %s6931_s16  ;;  %4063 = vrot.lane.b32.xlu1 %v8552_v48, %s6929_s1 }
 0x75d   :  { %6442 = vmatpush3.bf16.msra.mxu0 %v3667_v38 }
 0x75f   :  { %4483 = vrot.lane.b32.xlu0 %v3669_v52, %s6931_s16  ;;  %4278 = vrot.lane.b32.xlu1 %v3671_v41, %s6932_s18  ;;  %v6882_v41 = vld [vmem:[%s8973_s7 + $0x64] sm:$0xff]  }
 0x760   :  { %6444 = vmatmul.mubr.msk.bf16.vlgmr.msra.gmra.mxu0 %vm3766_vm6, %v6878_v3 }
 0x761   :  { %6447 = vmatprep.mubr.msk.bf16.mxu0 %vm3766_vm6, %v6885_v28  ;;  %v6888_v28 = vld [vmem:[%s8973_s7 + $0x80] sm:$0xff]  }
 0x763   :  { %4481 = vrot.lane.b32.xlu0 %v8552_v48, %s6931_s16  ;;  %4276 = vrot.lane.b32.xlu1 %v8546_v0, %s6932_s18  ;;  %v4811_v0 = vld [vmem:[%s8975_s10] sm:$0xff] }
 0x767   :  { %4479 = vrot.lane.b32.xlu0 %v3667_v38, %s6931_s16  ;;  %4274 = vrot.lane.b32.xlu1 %v3669_v52, %s6932_s18  ;;  %v6901_v52 = vld [vmem:[%s8973_s7 + $0xc4] sm:$0xff]  }
 0x768   :  { %6448 = vmatmul.mubr.msk.bf16.gmra.mxu0 %vm3766_vm6, %v6886_v62  ;;  %v6891_v62 = vld [vmem:[%s8973_s7 + $0x88] sm:$0xff]  }
 0x769   :  { %6451 = vmatprep.mubr.msk.bf16.mxu0 %vm3766_vm6, %v6889_v4  ;;  %v6906_v4 = vld [vmem:[%s8973_s7 + $0xdc] sm:$0xff]  }
 0x76b   :  { %4749 = vperm.xlu0 %6649, %v4684_v44   ;;  %4272 = vrot.lane.b32.xlu1 %v8552_v48, %s6932_s18 }
 0x76f   :  { %4739 = vperm.xlu0 %6649, %v4682_v35   ;;  %4270 = vrot.lane.b32.xlu1 %v3667_v38, %s6932_s18  ;;  %v6902_v38 = vld [vmem:[%s8973_s7 + $0xcc] sm:$0xff]   ;;  %v6909_v35 = vld [vmem:[%s8973_s7 + $0xe4] sm:$0xff]  }
 0x770   :  { %6452 = vmatmul.mubr.msk.bf16.gmra.mxu0 %vm3766_vm6, %v6890_v63  ;;  %v6892_v63 = vld [vmem:[%s8973_s7 + $0x90] sm:$0xff]  }
 0x771   :  { %6455 = vmatprep.mubr.msk.bf16.mxu0 %vm3766_vm6, %v6893_v39  ;;  %v6895_v39 = vld [vmem:[%s8973_s7 + $0x98] sm:$0xff]  }
 0x773   :  { %4729 = vperm.xlu0 %6649, %v4680_v22   ;;  %4759 = vperm.xlu1 %6648, %v4686_v18   ;;  %v6910_v18 = vld [vmem:[%s8973_s7 + $0xec] ss:$0 sps:$4 sm:$0xff]  }
 0x777   :  { %4719 = vperm.xlu0 %6649, %v4678_v50   ;;  %4754 = vperm.xlu1 %6648, %v4685_v42   ;;  %v6896_v50 = vld [vmem:[%s8973_s7 + $0xa0] sm:$0xff]  }
 0x778   :  { %6456 = vmatmul.mubr.msk.bf16.gmra.mxu0 %vm3766_vm6, %v6894_v55  ;;  %v6898_v55 = vld [vmem:[%s8973_s7 + $0xa8] sm:$0xff]  }
 0x779   :  { %6495 = vmatprep.mubr.msk.bf16.mxu0 %vm3766_vm6, %v6897_v31  ;;  %v9044_v31 = vmov 0.0  }
 0x77b   :  { %4709 = vperm.xlu0 %6649, %v4676_v36   ;;  %4744 = vperm.xlu1 %6648, %v4683_v9   ;;  %v6900_v36 = vld [vmem:[%s8973_s7 + $0xb0] ss:$0 sps:$4 sm:$0xff]  }
 0x77c   :  { %v6903_v9 = vld [vmem:[%s8973_s7 + $0xf0] sm:$0xff]  }
 0x77f   :  { %4699 = vperm.xlu0 %6649, %v4674_v2   ;;  %4734 = vperm.xlu1 %6648, %v4681_v34   ;;  %v6904_v2 = vld [vmem:[%s8973_s7 + $0xf8] sm:$0xff]   ;;  %v6907_v34 = vld [vmem:[%s8973_s7 + $0x100] sm:$0xff]  }
 0x783   :  { %4689 = vperm.xlu0 %6649, %v4672_v20   ;;  %4724 = vperm.xlu1 %6648, %v4679_v61   ;;  %v6908_v20 = vld [vmem:[%s8973_s7 + $0x108] sm:$0xff]   ;;  %v6911_v61 = vld [vmem:[%s8973_s7 + $0x110] sm:$0xff]  }
 0x787   :  { %4874 = vperm.xlu0 %6649, %v4821_v45   ;;  %4714 = vperm.xlu1 %6648, %v4677_v10   ;;  %v6912_v45 = vld [vmem:[%s8973_s7 + $0x118] sm:$0xff]   ;;  %v6913_v10 = vld [vmem:[%s8973_s7 + $0x120] sm:$0xff]  }
 0x78b   :  { %4869 = vperm.xlu0 %6649, %v4820_v25   ;;  %4704 = vperm.xlu1 %6648, %v4675_v49  }
 0x78f   :  { %4859 = vperm.xlu0 %6649, %v4818_v21   ;;  %4694 = vperm.xlu1 %6648, %v4673_v60   ;;  %v6914_v60 = vld [vmem:[%s8973_s7 + $0x128] ss:$0 sps:$4 sm:$0xff]  }
 0x793   :  { %4849 = vperm.xlu0 %6649, %v4816_v6   ;;  %4864 = vperm.xlu1 %6648, %v4819_v32  }
 0x797   :  { %4839 = vperm.xlu0 %6649, %v4814_v56   ;;  %4854 = vperm.xlu1 %6648, %v4817_v14  }
 0x79b   :  { %4829 = vperm.xlu0 %6649, %v4812_v19   ;;  %4844 = vperm.xlu1 %6648, %v4815_v51  }
 0x79f   :  { %5034 = vperm.xlu0 %6649, %v5026_v58   ;;  %4834 = vperm.xlu1 %6648, %v4813_v57  }
 0x7a3   :  { %4824 = vperm.xlu1 %6648, %v4811_v0  }
 0x7a7   :  { %5029 = vperm.xlu1 %6648, %v5025_v5  }
 0x7b5   :  { %v3715_v29 = vpop.permute.xlu0 %3714 }
 0x7b9   :  { %v3711_v43 = vpop.permute.xlu0 %3710 }
 0x7bd   :  { %v3717_v54 = vpop.permute.xlu1 %3716  ;;  %v4070_v48 = vpop.permute.xlu0 %4069 }
 0x7be   :  { %6407 = vmatprep.subr.bf16.mxu1 %v3717_v54 }
 0x7bf   :  { %6408 = vmatpush3.bf16.msra.mxu1 %v3717_v54 }
 0x7c0   :  { %6409 = vmatprep.subr.bf16.mxu1 %v3715_v29 }
 0x7c1   :  { %v3713_v26 = vpop.permute.xlu1 %3712  ;;  %v4066_v27 = vpop.permute.xlu0 %4065 }
 0x7c3   :  { %6410 = vmatpush3.bf16.msra.mxu1 %v3715_v29 }
 0x7c4   :  { %6411 = vmatprep.subr.bf16.mxu1 %v3713_v26 }
 0x7c5   :  { %v3709_v12 = vpop.permute.xlu1 %3708  ;;  %v4062_v30 = vpop.permute.xlu0 %4061 }
 0x7c7   :  { %6412 = vmatpush3.bf16.msra.mxu1 %v3713_v26 }
 0x7c8   :  { %6413 = vmatprep.subr.bf16.mxu1 %v3711_v43 }
 0x7c9   :  { %v4068_v46 = vpop.permute.xlu1 %4067  ;;  %v4488_v1 = vpop.permute.xlu0 %4487 }
 0x7cb   :  { %6414 = vmatpush3.bf16.msra.mxu1 %v3711_v43 }
 0x7cc   :  { %6415 = vmatprep.subr.bf16.mxu1 %v3709_v12 }
 0x7cd   :  { %v4064_v33 = vpop.permute.xlu1 %4063  ;;  %v4486_v3 = vpop.permute.xlu0 %4485 }
 0x7cf   :  { %6416 = vmatpush3.bf16.msra.mxu1 %v3709_v12  ;;  %v6915_v12 = vld [vmem:[%s8977_s9] sm:$0xff]  }
 0x7d0   :  { %6459 = vmatprep.subr.bf16.mxu1 %v4070_v48 }
 0x7d1   :  { %v4279_v13 = vpop.permute.xlu1 %4278  ;;  %v4484_v44 = vpop.permute.xlu0 %4483 }
 0x7d2   :  { %6418 = vmatmul.mubr.msk.bf16.vlgmr.msra.gmra.mxu1 %vm3766_vm6, %v6876_v40  ;;  %6485 = vmatprep.subr.bf16.mxu0 %v4279_v13 }
 0x7d3   :  { %6460 = vmatpush3.bf16.msra.mxu1 %v4070_v48  ;;  %6486 = vmatpush3.bf16.msra.mxu0 %v4279_v13 }
 0x7d4   :  { %6461 = vmatprep.subr.bf16.mxu1 %v4068_v46  ;;  %6421 = vmatprep.mubr.msk.bf16.mxu1 %vm3766_vm6, %v6879_v59 }
 0x7d5   :  { %v4277_v7 = vpop.permute.xlu1 %4276  ;;  %v4482_v22 = vpop.permute.xlu0 %4481 }
 0x7d6   :  { %6487 = vmatprep.subr.bf16.mxu0 %v4277_v7 }
 0x7d7   :  { %6462 = vmatpush3.bf16.msra.mxu1 %v4068_v46  ;;  %6488 = vmatpush3.bf16.msra.mxu0 %v4277_v7 }
 0x7d8   :  { %6463 = vmatprep.subr.bf16.mxu1 %v4066_v27 }
 0x7d9   :  { %v4275_v47 = vpop.permute.xlu1 %4274  ;;  %v4480_v42 = vpop.permute.xlu0 %4479 }
 0x7da   :  { %6422 = vmatmul.mubr.msk.bf16.gmra.mxu1 %vm3766_vm6, %v6880_v53  ;;  %6489 = vmatprep.subr.bf16.mxu0 %v4275_v47 }
 0x7db   :  { %6464 = vmatpush3.bf16.msra.mxu1 %v4066_v27  ;;  %6490 = vmatpush3.bf16.msra.mxu0 %v4275_v47 }
 0x7dc   :  { %6465 = vmatprep.subr.bf16.mxu1 %v4064_v33  ;;  %6425 = vmatprep.mubr.msk.bf16.mxu1 %vm3766_vm6, %v6881_v11 }
 0x7dd   :  { %v4273_v37 = vpop.permute.xlu1 %4272 }
 0x7de   :  { %6491 = vmatprep.subr.bf16.mxu0 %v4273_v37 }
 0x7df   :  { %6466 = vmatpush3.bf16.msra.mxu1 %v4064_v33  ;;  %6492 = vmatpush3.bf16.msra.mxu0 %v4273_v37 }
 0x7e0   :  { %6467 = vmatprep.subr.bf16.mxu1 %v4062_v30 }
 0x7e1   :  { %v4271_v24 = vpop.permute.xlu1 %4270 }
 0x7e2   :  { %6426 = vmatmul.mubr.msk.bf16.gmra.mxu1 %vm3766_vm6, %v6882_v41  ;;  %6493 = vmatprep.subr.bf16.mxu0 %v4271_v24 }
 0x7e3   :  { %6468 = vmatpush3.bf16.msra.mxu1 %v4062_v30  ;;  %6494 = vmatpush3.bf16.msra.mxu0 %v4271_v24 }
 0x7e4   :  { %6511 = vmatprep.subr.bf16.mxu1 %v4488_v1  ;;  %6429 = vmatprep.mubr.msk.bf16.mxu1 %vm3766_vm6, %v6883_v17 }
 0x7e6   :  { %6496 = vmatmul.mubr.msk.bf16.vlgmr.msra.gmra.mxu0 %vm3766_vm6, %v6899_v16 }
 0x7e7   :  { %6499 = vmatprep.mubr.msk.bf16.mxu0 %vm3766_vm6, %v6901_v52 }
 0x7ea   :  { %6430 = vmatmul.mubr.msk.bf16.gmra.mxu1 %vm3766_vm6, %v6884_v23 }
 0x7eb   :  { %6469 = vmatprep.mubr.msk.bf16.mxu1 %vm3766_vm6, %v6887_v15 }
 0x7ee   :  { %6500 = vmatmul.mubr.msk.bf16.gmra.mxu0 %vm3766_vm6, %v6902_v38  ;;  %v8859_v23 = vpop.permute.xlu1 %4759 }
 0x7ef   :  { %6503 = vmatprep.mubr.msk.bf16.mxu0 %vm3766_vm6, %v6905_v8 }
 0x7f2   :  { %6470 = vmatmul.mubr.msk.bf16.vlgmr.msra.gmra.mxu1 %vm3766_vm6, %v6888_v28 }
 0x7f3   :  { %6512 = vmatpush3.bf16.msra.mxu1 %v4488_v1  ;;  %6473 = vmatprep.mubr.msk.bf16.mxu1 %vm3766_vm6, %v6891_v62  ;;  %v8863_v62 = vpop.permute.xlu0 %4749 }
 0x7f4   :  { %6513 = vmatprep.subr.bf16.mxu1 %v4486_v3  ;;  %9045 = vst [vmem:[#allocation8_spill] sm:$0xff] %v8863_v62 }
 0x7f6   :  { %6504 = vmatmul.mubr.msk.bf16.gmra.mxu0 %vm3766_vm6, %v6906_v4 }
 0x7f7   :  { %6514 = vmatpush3.bf16.msra.mxu1 %v4486_v3  ;;  %6507 = vmatprep.mubr.msk.bf16.mxu0 %vm3766_vm6, %v6909_v35 }
 0x7f8   :  { %6515 = vmatprep.subr.bf16.mxu1 %v4484_v44 }
 0x7fa   :  { %6474 = vmatmul.mubr.msk.bf16.gmra.mxu1 %vm3766_vm6, %v6892_v63 }
 0x7fb   :  { %6516 = vmatpush3.bf16.msra.mxu1 %v4484_v44  ;;  %6477 = vmatprep.mubr.msk.bf16.mxu1 %vm3766_vm6, %v6895_v39  ;;  %v8865_v39 = vpop.permute.xlu1 %4754 }
 0x7fc   :  { %6517 = vmatprep.subr.bf16.mxu1 %v4482_v22  ;;  %9046 = vst [vmem:[#allocation10_spill] sm:$0xff] %v8865_v39 }
 0x7fe   :  { %6508 = vmatmul.mubr.msk.bf16.gmra.mxu0 %vm3766_vm6, %v6910_v18 }
 0x7ff   :  { %6518 = vmatpush3.bf16.msra.mxu1 %v4482_v22  ;;  %6553 = vmatprep.mubr.msk.bf16.mxu0 %vm2952_vm7, %v6915_v12 }
 0x800   :  { %6519 = vmatprep.subr.bf16.mxu1 %v4480_v42 }
 0x802   :  { %6478 = vmatmul.mubr.msk.bf16.gmra.mxu1 %vm3766_vm6, %v6896_v50 }
 0x803   :  { %6520 = vmatpush3.bf16.msra.mxu1 %v4480_v42  ;;  %6481 = vmatprep.mubr.msk.bf16.mxu1 %vm3766_vm6, %v6898_v55 }
 0x804   :  { %6565 = vmatprep.subr.bf16.mxu1 %v9044_v31 }
 0x80a   :  { %6482 = vmatmul.mubr.msk.bf16.gmra.mxu1 %vm3766_vm6, %v6900_v36 }
 0x80b   :  { %6521 = vmatprep.mubr.msk.bf16.mxu1 %vm3766_vm6, %v6903_v9 }
 0x812   :  { %6522 = vmatmul.mubr.msk.bf16.vlgmr.msra.gmra.mxu1 %vm3766_vm6, %v6904_v2 }
 0x813   :  { %6525 = vmatprep.mubr.msk.bf16.mxu1 %vm3766_vm6, %v6907_v34 }
 0x81a   :  { %6526 = vmatmul.mubr.msk.bf16.gmra.mxu1 %vm3766_vm6, %v6908_v20 }
 0x81b   :  { %6529 = vmatprep.mubr.msk.bf16.mxu1 %vm3766_vm6, %v6911_v61  ;;  %v8871_v61 = vpop.permute.xlu0 %4739 }
 0x820   :  { %v6445_v25 = vpop.f32.mrf.mxu0 }
 0x822   :  { %6530 = vmatmul.mubr.msk.bf16.gmra.mxu1 %vm3766_vm6, %v6912_v45  ;;  %v3983_v49 = vpop.f32.mrf.mxu0 }
 0x823   :  { %6533 = vmatprep.mubr.msk.bf16.mxu1 %vm3766_vm6, %v6913_v10 }
 0x824   :  { %v6446_v21 = vpop.f32.mrf.mxu0 }
 0x826   :  { %v3986_v6 = vpop.f32.mrf.mxu0 }
 0x828   :  { %v6449_v32 = vpop.f32.mrf.mxu0 }
 0x82a   :  { %6534 = vmatmul.mubr.msk.bf16.gmra.mxu1 %vm3766_vm6, %v6914_v60  ;;  %v8821_v56 = vpop.f32.mrf.mxu0 }
 0x82b   :  { %6577 = vmatprep.mubr.msk.bf16.mxu1 %vm6924_vm0, %v9044_v31 }
 0x82c   :  { %v8825_v14 = vpop.f32.mrf.mxu0 }
 0x82e   :  { %v8827_v19 = vpop.f32.mrf.mxu0 }
 0x830   :  { %v8829_v51 = vpop.f32.mrf.mxu0 }
 0x832   :  { %v8831_v58 = vpop.f32.mrf.mxu0 }
 0x834   :  { %v8833_v57 = vpop.f32.mrf.mxu0 }
 0x836   :  { %v8835_v0 = vpop.f32.mrf.mxu0 }
 0x838   :  { %v8837_v5 = vpop.f32.mrf.mxu0 }
 0x83a   :  { %v8839_v54 = vpop.f32.mrf.mxu0 }
 0x83c   :  { %v6458_v29 = vpop.f32.mrf.mxu0 }
 0x83e   :  { %v8849_v27 = vpop.f32.mrf.mxu0 }
 0x892   :  { %v6419_v26 = vpop.f32.mrf.mxu1 }
 0x893   :  { %v3992_v8 = vadd.f32 %v6445_v25, %v6419_v26 }
 0x894   :  { %v3825_v43 = vpop.f32.mrf.mxu1 }
 0x895   :  { %v3984_v4 = vadd.f32 %v3983_v49, %v3825_v43 }
 0x896   :  { %v6420_v46 = vpop.f32.mrf.mxu1 }
 0x897   :  { %v3995_v22 = vadd.f32 %v6446_v21, %v6420_v46  ;;  %v8875_v21 = vpop.permute.xlu1 %4744 }
 0x898   :  { %v3828_v33 = vpop.f32.mrf.mxu1 }
 0x899   :  { %v3987_v36 = vadd.f32 %v3986_v6, %v3828_v33 }
 0x89a   :  { %v6423_v40 = vpop.f32.mrf.mxu1 }
 0x89b   :  { %v4008_v45 = vadd.f32 %v6449_v32, %v6423_v40  ;;  %v8883_v40 = vpop.permute.xlu0 %4729 }
 0x89c   :  { %v3841_v48 = vpop.f32.mrf.mxu1 }
 0x89d   :  { %v4000_v29 = vadd.f32 %v8821_v56, %v3841_v48  ;;  %v8888_v48 = vpop.permute.xlu1 %4734 }
 0x89e   :  { %v6424_v59 = vpop.f32.mrf.mxu1 }
 0x89f   :  { %v4011_v46 = vadd.f32 %v8825_v14, %v6424_v59 }
 0x8a0   :  { %v3844_v13 = vpop.f32.mrf.mxu1 }
 0x8a2   :  { %v8845_v7 = vpop.f32.mrf.mxu1 }
 0x8a4   :  { %v8847_v53 = vpop.f32.mrf.mxu1 }
 0x8a6   :  { %v8851_v11 = vpop.f32.mrf.mxu1  ;;  %v6497_v47 = vpop.f32.mrf.mxu0 }
 0x8a8   :  { %v8853_v30 = vpop.f32.mrf.mxu1  ;;  %v4386_v37 = vpop.f32.mrf.mxu0 }
 0x8aa   :  { %v8855_v41 = vpop.f32.mrf.mxu1  ;;  %v6498_v17 = vpop.f32.mrf.mxu0 }
 0x8ac   :  { %v8857_v24 = vpop.f32.mrf.mxu1  ;;  %v4389_v16 = vpop.f32.mrf.mxu0 }
 0x8ae   :  { %v6432_v1 = vpop.f32.mrf.mxu1  ;;  %v6501_v52 = vpop.f32.mrf.mxu0 }
 0x8b0   :  { %v8861_v15 = vpop.f32.mrf.mxu1  ;;  %v4402_v38 = vpop.f32.mrf.mxu0 }
 0x8b2   :  { %v6471_v3 = vpop.f32.mrf.mxu1  ;;  %v6502_v28 = vpop.f32.mrf.mxu0 }
 0x8b3   :  { %v4241_v44 = vadd.f32 %v6471_v3, %v3992_v8 }
 0x8b4   :  { %v4177_v35 = vpop.f32.mrf.mxu1  ;;  %v4405_v63 = vpop.f32.mrf.mxu0 }
 0x8b5   :  { %v4239_v18 = vadd.f32 %v4177_v35, %v3984_v4  ;;  %v4450_v50 = vadd.f32 %v6497_v47, %v4241_v44  ;;  %v4720_v35 = vpop.permute.xlu0 %4719 }
 0x8b6   :  { %v6472_v42 = vpop.f32.mrf.mxu1  ;;  %v8867_v55 = vpop.f32.mrf.mxu0 }
 0x8b7   :  { %v4242_v9 = vadd.f32 %v6472_v42, %v3995_v22  ;;  %v4448_v2 = vadd.f32 %v4386_v37, %v4239_v18  ;;  %v4725_v18 = vpop.permute.xlu1 %4724 }
 0x8b8   :  { %v4180_v34 = vpop.f32.mrf.mxu1  ;;  %v8869_v20 = vpop.f32.mrf.mxu0 }
 0x8b9   :  { %v4240_v10 = vadd.f32 %v4180_v34, %v3987_v36  ;;  %v4451_v25 = vadd.f32 %v6498_v17, %v4242_v9  ;;  %v4003_v17 = vadd.f32 %v8827_v19, %v3844_v13  ;;  %v4710_v9 = vpop.permute.xlu0 %4709 }
 0x8ba   :  { %v6475_v49 = vpop.f32.mrf.mxu1  ;;  %v8873_v60 = vpop.f32.mrf.mxu0 }
 0x8bb   :  { %v4245_v26 = vadd.f32 %v6475_v49, %v4008_v45  ;;  %v4449_v12 = vadd.f32 %v4389_v16, %v4240_v10  ;;  %v4715_v13 = vpop.permute.xlu1 %4714 }
 0x8bc   :  { %v4193_v6 = vpop.f32.mrf.mxu1  ;;  %v8878_v43 = vpop.f32.mrf.mxu0 }
 0x8bd   :  { %v4243_v33 = vadd.f32 %v4193_v6, %v4000_v29  ;;  %v4454_v47 = vadd.f32 %v6501_v52, %v4245_v26  ;;  %v4700_v45 = vpop.permute.xlu0 %4699 }
 0x8be   :  { %v6476_v37 = vpop.f32.mrf.mxu1  ;;  %v8881_v32 = vpop.f32.mrf.mxu0 }
 0x8bf   :  { %v4246_v1 = vadd.f32 %v6476_v37, %v4011_v46  ;;  %v4452_v8 = vadd.f32 %v4402_v38, %v4243_v33  ;;  %v4705_v29 = vpop.permute.xlu1 %4704 }
 0x8c0   :  { %v4196_v3 = vpop.f32.mrf.mxu1  ;;  %v8886_v56 = vpop.f32.mrf.mxu0 }
 0x8c1   :  { %v4244_v16 = vadd.f32 %v4196_v3, %v4003_v17  ;;  %v4455_v4 = vadd.f32 %v6502_v28, %v4246_v1  ;;  %v4690_v33 = vpop.permute.xlu0 %4689 }
 0x8c2   :  { %v6479_v44 = vpop.f32.mrf.mxu1  ;;  %v6510_v14 = vpop.f32.mrf.mxu0 }
 0x8c3   :  { %v4453_v59 = vadd.f32 %v4405_v63, %v4244_v16  ;;  %v4695_v16 = vpop.permute.xlu1 %4694  ;;  %v4024_v14 = vadd.f32 %v8829_v51, %v8845_v7 }
 0x8c4   :  { %v4209_v52 = vpop.f32.mrf.mxu1 }
 0x8c6   :  { %v6480_v22 = vpop.f32.mrf.mxu1 }
 0x8c8   :  { %v4212_v42 = vpop.f32.mrf.mxu1 }
 0x8ca   :  { %v6483_v36 = vpop.f32.mrf.mxu1 }
 0x8cc   :  { %v4225_v19 = vpop.f32.mrf.mxu1 }
 0x8ce   :  { %v6484_v38 = vpop.f32.mrf.mxu1 }
 0x8d0   :  { %v8890_v34 = vpop.f32.mrf.mxu1 }
 0x8d2   :  { %v6523_v10 = vpop.f32.mrf.mxu1 }
 0x8d3   :  { %v4659_v49 = vadd.f32 %v6523_v10, %v4450_v50  ;;  %v4249_v10 = vadd.f32 %v6479_v44, %v4024_v14 }
 0x8d4   :  { %v4595_v28 = vpop.f32.mrf.mxu1 }
 0x8d5   :  { %v4657_v26 = vadd.f32 %v4595_v28, %v4448_v2  ;;  %v4764_v63 = vadd.f32 %v4700_v45, %v4659_v49  ;;  %v4016_v2 = vadd.f32 %v8831_v58, %v8847_v53  ;;  %v4458_v44 = vadd.f32 %v8867_v55, %v4249_v10 }
 0x8d6   :  { %v6524_v6 = vpop.f32.mrf.mxu1 }
 0x8d7   :  { %v4660_v46 = vadd.f32 %v6524_v6, %v4451_v25  ;;  %v4762_v17 = vadd.f32 %v4690_v33, %v4657_v26  ;;  %v4779_v31 = vmax.f32 %v4764_v63, 0.0 }
 0x8d8   :  { %v4598_v37 = vpop.f32.mrf.mxu1 }
 0x8d9   :  { %v4765_v1 = vadd.f32 %v4705_v29, %v4660_v46  ;;  %v4658_v3 = vadd.f32 %v4598_v37, %v4449_v12  ;;  %v4777_v25 = vmax.f32 %v4762_v17, 0.0  ;;  %v4027_v12 = vadd.f32 %v8833_v57, %v8851_v11 }
 0x8da   :  { %v6527_v38 = vpop.f32.mrf.mxu1  ;;  %v4247_v29 = vadd.f32 %v4209_v52, %v4016_v2 }
 0x8db   :  { %v4780_v39 = vmax.f32 %v4765_v1, 0.0  ;;  %v4763_v62 = vadd.f32 %v4695_v16, %v4658_v3  ;;  %v4663_v50 = vadd.f32 %v6527_v38, %v4454_v47  ;;  %v4019_v47 = vadd.f32 %v8835_v0, %v8853_v30 }
 0x8dc   :  { %v4611_v45 = vpop.f32.mrf.mxu1  ;;  %v4250_v58 = vadd.f32 %v6480_v22, %v4027_v12  ;;  %v4456_v11 = vadd.f32 %v8869_v20, %v4247_v29  ;;  %v4032_v0 = vadd.f32 %v8839_v54, %v8857_v24  ;;  %v4035_v1 = vadd.f32 %v8849_v27, %v8861_v15  ;;  %v4437_v27 = vpop.f32.mrf.mxu0  ;;  %v9047_v12 = vld [vmem:[#allocation8_spill] sm:$0xff] }
 0x8dd   :  { %v4778_v49 = vmax.f32 %v4763_v62, 0.0  ;;  %v4661_v28 = vadd.f32 %v4611_v45, %v4452_v8  ;;  %v8896_v26 = vpack.c.bf16 %v4780_v39, %v4779_v31  ;;  %v4768_v7 = vadd.f32 %v4720_v35, %v4663_v50 }
 0x8de   :  { %v6528_v51 = vpop.f32.mrf.mxu1  ;;  %v4040_v39 = vadd.f32 %v8837_v5, %v8855_v41  ;;  %v4248_v57 = vadd.f32 %v4212_v42, %v4019_v47  ;;  %v4459_v55 = vadd.f32 %v8873_v60, %v4250_v58  ;;  %v4251_v5 = vadd.f32 %v4225_v19, %v4032_v0 }
 0x8df   :  { %v4664_v6 = vadd.f32 %v6528_v51, %v4455_v4  ;;  %v8900_v63 = vpack.c.bf16 %v4778_v49, %v4777_v25  ;;  %v4766_v62 = vadd.f32 %v4710_v9, %v4661_v28  ;;  %v4783_v4 = vmax.f32 %v4768_v7, 0.0  ;;  %v9048_v7 = vld [vmem:[#allocation10_spill] sm:$0xff] }
 0x8e0   :  { %v4614_v53 = vpop.f32.mrf.mxu1  ;;  %v4253_v30 = vadd.f32 %v6483_v36, %v4040_v39  ;;  %v4457_v20 = vadd.f32 %v8878_v43, %v4248_v57  ;;  %v4252_v19 = vadd.f32 %v8890_v34, %v4035_v1  ;;  %v4460_v16 = vadd.f32 %v8886_v56, %v4251_v5  ;;  %v4875_v39 = vpop.permute.xlu0 %4874 }
 0x8e1   :  { %v4769_v8 = vadd.f32 %v4725_v18, %v4664_v6  ;;  %v4662_v31 = vadd.f32 %v4614_v53, %v4453_v59  ;;  %v4781_v18 = vmax.f32 %v4766_v62, 0.0  ;;  %v6916_v53 = vld [vmem:[%s8977_s9 + $0x8] sm:$0xff]   ;;  %v6919_v62 = vld [vmem:[%s8977_s9 + $0x20] sm:$0xff]  }
 0x8e2   :  { %v6531_v52 = vpop.f32.mrf.mxu1  ;;  %v4462_v60 = vadd.f32 %v8881_v32, %v4253_v30  ;;  %v4461_v25 = vadd.f32 %v4437_v27, %v4252_v19 }
 0x8e3   :  { %v4784_v35 = vmax.f32 %v4769_v8, 0.0  ;;  %v4767_v46 = vadd.f32 %v4715_v13, %v4662_v31  ;;  %v4667_v33 = vadd.f32 %v6531_v52, %v4458_v44  ;;  %v6917_v44 = vld [vmem:[%s8977_s9 + $0x10] sm:$0xff]  }
 0x8e4   :  { %v4627_v22 = vpop.f32.mrf.mxu1 }
 0x8e5   :  { %v4782_v59 = vmax.f32 %v4767_v46, 0.0  ;;  %v4665_v9 = vadd.f32 %v4627_v22, %v4456_v11  ;;  %v4795_v37 = vpack.c.bf16 %v4784_v35, %v4783_v4  ;;  %v4772_v42 = vadd.f32 %v8871_v61, %v4667_v33  ;;  %v4870_v4 = vpop.permute.xlu0 %4869  ;;  %v4865_v46 = vpop.permute.xlu1 %4864 }
 0x8e6   :  { %v6532_v41 = vpop.f32.mrf.mxu1 }
 0x8e7   :  { %v4668_v17 = vadd.f32 %v6532_v41, %v4459_v55  ;;  %v4794_v13 = vpack.c.bf16 %v4782_v59, %v4781_v18  ;;  %v4770_v54 = vadd.f32 %v8883_v40, %v4665_v9  ;;  %v4787_v14 = vmax.f32 %v4772_v42, 0.0 }
 0x8e8   :  { %v4630_v24 = vpop.f32.mrf.mxu1 }
 0x8e9   :  { %v4773_v36 = vadd.f32 %v8875_v21, %v4668_v17  ;;  %v4666_v3 = vadd.f32 %v4630_v24, %v4457_v20  ;;  %v4785_v2 = vmax.f32 %v4770_v54, 0.0  ;;  %v4860_v30 = vpop.permute.xlu0 %4859  ;;  %v4855_v18 = vpop.permute.xlu1 %4854 }
 0x8ea   :  { %v6535_v43 = vpop.f32.mrf.mxu1 }
 0x8eb   :  { %v4788_v61 = vmax.f32 %v4773_v36, 0.0  ;;  %v4771_v38 = vadd.f32 %v8888_v48, %v4666_v3  ;;  %v4671_v50 = vadd.f32 %v6535_v43, %v4462_v60  ;;  %v9049_v3 = vmov 0.0  }
 0x8ec   :  { %v4643_v15 = vpop.f32.mrf.mxu1 }
 0x8ed   :  { %v4786_v40 = vmax.f32 %v4771_v38, 0.0  ;;  %v4776_v10 = vadd.f32 %v8859_v23, %v4671_v50  ;;  %v4669_v32 = vadd.f32 %v4643_v15, %v4460_v16  ;;  %v4797_v45 = vpack.c.bf16 %v4788_v61, %v4787_v14  ;;  %v4850_v20 = vpop.permute.xlu0 %4849  ;;  %v4845_v54 = vpop.permute.xlu1 %4844 }
 0x8ee   :  { %v6536_v21 = vpop.f32.mrf.mxu1 }
 0x8ef   :  { %v4791_v49 = vmax.f32 %v4776_v10, 0.0  ;;  %v4796_v34 = vpack.c.bf16 %v4786_v40, %v4785_v2  ;;  %v4774_v29 = vadd.f32 %v9047_v12, %v4669_v32 }
 0x8f0   :  { %v4646_v28 = vpop.f32.mrf.mxu1 }
 0x8f1   :  { %v4799_v56 = vpack.c.bf16 %v4791_v49, %v4791_v49  ;;  %v4670_v51 = vadd.f32 %v4646_v28, %v4461_v25  ;;  %v4789_v47 = vmax.f32 %v4774_v29, 0.0  ;;  %v4840_v14 = vpop.permute.xlu0 %4839  ;;  %v4835_v50 = vpop.permute.xlu1 %4834 }
 0x8f3   :  { %v4775_v48 = vadd.f32 %v9048_v7, %v4670_v51  ;;  %6586 = vmatprep.subr.msk.bf16.mxu0 %vm1589_vm3, %v4799_v56  ;;  %v4924_v6 = vsel %vm1589_vm3, %v4799_v56, 0  ;;  %v6921_v7 = vld [vmem:[%s8978_s11] sm:$0xff]  }
 0x8f4   :  { %6538 = vmatpush3.bf16.msra.mxu0 %v4924_v6 }
 0x8f5   :  { %v4790_v23 = vmax.f32 %v4775_v48, 0.0  ;;  %v4830_v32 = vpop.permute.xlu0 %4829  ;;  %v4825_v49 = vpop.permute.xlu1 %4824 }
 0x8f7   :  { %v4798_v58 = vpack.c.bf16 %v4790_v23, %v4789_v47 }
 0x8f9   :  { %6539 = vmatprep.subr.bf16.mxu0 %v4798_v58  ;;  %v5030_v48 = vpop.permute.xlu1 %5029 }
 0x8fa   :  { %6540 = vmatpush3.bf16.msra.mxu0 %v4798_v58  ;;  %v5035_v58 = vpop.permute.xlu0 %5034 }
 0x8fb   :  { %6541 = vmatprep.subr.bf16.mxu0 %v4797_v45 }
 0x8fe   :  { %6542 = vmatpush3.bf16.msra.mxu0 %v4797_v45 }
 0x8ff   :  { %6543 = vmatprep.subr.bf16.mxu0 %v4796_v34 }
 0x902   :  { %6544 = vmatpush3.bf16.msra.mxu0 %v4796_v34 }
 0x903   :  { %6545 = vmatprep.subr.bf16.mxu0 %v4795_v37 }
 0x906   :  { %6546 = vmatpush3.bf16.msra.mxu0 %v4795_v37 }
 0x907   :  { %6547 = vmatprep.subr.bf16.mxu0 %v4794_v13 }
 0x90a   :  { %6548 = vmatpush3.bf16.msra.mxu0 %v4794_v13 }
 0x90b   :  { %6549 = vmatprep.subr.bf16.mxu0 %v8896_v26 }
 0x90e   :  { %6550 = vmatpush3.bf16.msra.mxu0 %v8896_v26  ;;  %v6918_v26 = vld [vmem:[%s8977_s9 + $0x18] sm:$0xff]  }
 0x90f   :  { %6551 = vmatprep.subr.bf16.mxu0 %v8900_v63 }
 0x912   :  { %6552 = vmatpush3.bf16.msra.mxu0 %v8900_v63  ;;  %v6920_v63 = vld [vmem:[%s8977_s9 + $0x28] ss:$0 sps:$4 sm:$0xff]  }
 0x915   :  { %6554 = vmatmul.mubr.msk.bf16.vlgmr.msra.gmra.mxu0 %vm2952_vm7, %v6916_v53 }
 0x916   :  { %6557 = vmatprep.mubr.msk.bf16.mxu0 %vm2952_vm7, %v6917_v44 }
 0x91d   :  { %6558 = vmatmul.mubr.msk.bf16.gmra.mxu0 %vm2952_vm7, %v6918_v26 }
 0x91e   :  { %6561 = vmatprep.mubr.msk.bf16.mxu0 %vm2952_vm7, %v6919_v62 }
 0x925   :  { %6562 = vmatmul.mubr.msk.bf16.gmra.mxu0 %vm2952_vm7, %v6920_v63 }
 0x9d5   :  { %v6555_v8 = vpop.f32.mrf.mxu0 }
 0x9d6   :  { %v4969_v40 = vadd.f32 %v6555_v8, %v4835_v50 }
 0x9d7   :  { %v4960_v31 = vpop.f32.mrf.mxu0 }
 0x9d8   :  { %v5008_v34 = vmax.f32 %v4969_v40, 0.0  ;;  %v4961_v28 = vadd.f32 %v4960_v31, %v4825_v49 }
 0x9d9   :  { %v6556_v57 = vpop.f32.mrf.mxu0 }
 0x9da   :  { %v4972_v2 = vadd.f32 %v6556_v57, %v4840_v14  ;;  %v5006_v29 = vmax.f32 %v4961_v28, 0.0 }
 0x9db   :  { %v4963_v11 = vpop.f32.mrf.mxu0 }
 0x9dc   :  { %v5009_v45 = vmax.f32 %v4972_v2, 0.0  ;;  %v4964_v21 = vadd.f32 %v4963_v11, %v4830_v32 }
 0x9dd   :  { %v6559_v52 = vpop.f32.mrf.mxu0 }
 0x9de   :  { %v4985_v24 = vadd.f32 %v6559_v52, %v4855_v18  ;;  %v5018_v56 = vpack.c.bf16 %v5009_v45, %v5008_v34  ;;  %v5007_v12 = vmax.f32 %v4964_v21, 0.0 }
 0x9df   :  { %v4976_v35 = vpop.f32.mrf.mxu0 }
 0x9e0   :  { %v5012_v61 = vmax.f32 %v4985_v24, 0.0  ;;  %v4977_v38 = vadd.f32 %v4976_v35, %v4845_v54  ;;  %v5017_v51 = vpack.c.bf16 %v5007_v12, %v5006_v29 }
 0x9e1   :  { %v6560_v33 = vpop.f32.mrf.mxu0 }
 0x9e2   :  { %v4988_v17 = vadd.f32 %v6560_v33, %v4860_v30  ;;  %v5010_v10 = vmax.f32 %v4977_v38, 0.0 }
 0x9e3   :  { %v4979_v0 = vpop.f32.mrf.mxu0 }
 0x9e4   :  { %v5013_v19 = vmax.f32 %v4988_v17, 0.0  ;;  %v4980_v16 = vadd.f32 %v4979_v0, %v4850_v20 }
 0x9e5   :  { %v6563_v55 = vpop.f32.mrf.mxu0 }
 0x9e6   :  { %v5001_v22 = vadd.f32 %v6563_v55, %v4875_v39  ;;  %v5020_v27 = vpack.c.bf16 %v5013_v19, %v5012_v61  ;;  %v5011_v15 = vmax.f32 %v4980_v16, 0.0 }
 0x9e7   :  { %v4992_v59 = vpop.f32.mrf.mxu0 }
 0x9e8   :  { %v5016_v9 = vmax.f32 %v5001_v22, 0.0  ;;  %v4993_v41 = vadd.f32 %v4992_v59, %v4865_v46  ;;  %v5019_v25 = vpack.c.bf16 %v5011_v15, %v5010_v10 }
 0x9e9   :  { %v6564_v37 = vpop.f32.mrf.mxu0 }
 0x9ea   :  { %v5022_v5 = vpack.c.bf16 %v5016_v9, %v5016_v9  ;;  %v5014_v60 = vmax.f32 %v4993_v41, 0.0 }
 0x9eb   :  { %v4995_v42 = vpop.f32.mrf.mxu0 }
 0x9ec   :  { %v4996_v13 = vadd.f32 %v4995_v42, %v4870_v4  ;;  %v5046_v1 = vsel %vm1589_vm3, %v5022_v5, 0 }
 0x9ed   :  { %6566 = vmatpush3.bf16.msra.mxu1 %v5046_v1 }
 0x9ee   :  { %v5015_v36 = vmax.f32 %v4996_v13, 0.0  ;;  %6567 = vmatprep.subr.bf16.mxu1 %v9049_v3 }
 0x9f0   :  { %v5021_v43 = vpack.c.bf16 %v5015_v36, %v5014_v60 }
 0x9f2   :  { %6568 = vmatpush3.bf16.msra.mxu1 %v5021_v43 }
 0x9f3   :  { %6569 = vmatprep.subr.bf16.mxu1 %v9049_v3 }
 0x9f6   :  { %6570 = vmatpush3.bf16.msra.mxu1 %v5020_v27 }
 0x9f7   :  { %6571 = vmatprep.subr.bf16.mxu1 %v9049_v3 }
 0x9fa   :  { %6572 = vmatpush3.bf16.msra.mxu1 %v5019_v25 }
 0x9fb   :  { %6573 = vmatprep.subr.bf16.mxu1 %v9049_v3 }
 0x9fe   :  { %6574 = vmatpush3.bf16.msra.mxu1 %v5018_v56 }
 0x9ff   :  { %6575 = vmatprep.subr.bf16.mxu1 %v9049_v3 }
 0xa02   :  { %6576 = vmatpush3.bf16.msra.mxu1 %v5017_v51 }
 0xa05   :  { %6578 = vmatmul.mubr.msk.bf16.vlgmr.msra.gmra.mxu1 %vm2059_vm4, %v6921_v7 }
 0xac5   :  { %v5082_v6 = vpop.f32.mrf.mxu1 }
 0xac6   :  { %v5083_v47 = vadd.f32 %v5082_v6, %v5030_v48 }
 0xac7   :  { %v6579_v23 = vpop.f32.mrf.mxu1 }
 0xac8   :  { %5089 = vst [vmem:[%s8979_s13] sm:$0xff] %v5083_v47 }
 0xac9   :  { %v5085_v53 = vpop.f32.mrf.mxu1 }
 0xaca   :  { %v5086_v44 = vadd.f32 %v5085_v53, %v5035_v58 }
 0xacb   :  { %v6580_v26 = vpop.f32.mrf.mxu1 }
 0xacc   :  { %5090 = vst [vmem:[%s8979_s13 + $0x8] sm:$0xff] %v5086_v44 }

</bundles_post_ra>
